<compile_context>
chip_gen: v7x
topology: tpu7x:2x2x1
jax: 0.10.0
libtpu: 0.0.40
codegen_flags: <defaults>
</compile_context>

<pallas_src>
import functools
import math

import jax
import jax.numpy as jnp
from jax.experimental import pallas as pl
from jax.experimental.pallas import tpu as pltpu

# ---- Small config consistent with the module's constructor (channels, size) ----
BATCH = 2
CHANNELS = 64          # embed dim; must be divisible by the 4 attention heads
SIZE = 8               # spatial size -> H = W = 8
SEQ = SIZE * SIZE      # 64 tokens
NHEAD = 4
HEAD_DIM = CHANNELS // NHEAD
LN_EPS = 1e-5          # PyTorch LayerNorm default


def _layernorm(x, g, b):
    """LayerNorm over the last axis (biased variance, eps=1e-5) — matches PyTorch."""
    mu = jnp.mean(x, axis=-1, keepdims=True)
    xc = x - mu
    var = jnp.mean(xc * xc, axis=-1, keepdims=True)
    return xc * jax.lax.rsqrt(var + LN_EPS) * g + b


# ---------------------------------------------------------------------------
# Fully fused SelfAttention forward kernel (LN -> MHA -> residual -> FF -> residual)
# ---------------------------------------------------------------------------
def _self_attention_kernel(x_ref, ln1_g_ref, ln1_b_ref,
                           wqkv_ref, bqkv_ref, wo_ref, bo_ref,
                           ln2_g_ref, ln2_b_ref,
                           w1_ref, b1_ref, w2_ref, b2_ref,
                           out_ref, qkv_s_ref, *, batch, seq, channels, nhead):
    B, S, C = batch, seq, channels
    hd = C // nhead
    bf16 = jnp.bfloat16

    x = x_ref[...]                                              # (B*S, C) f32 tokens

    # ---- self.ln on the attention input, once on the full slab ----
    x_ln = _layernorm(x, ln1_g_ref[...], ln1_b_ref[...])

    # ---- fused QKV projection: (B*S, C) @ (C, 3C), bf16 MXU / f32 accumulate ----
    qkv = jnp.dot(x_ln.astype(bf16), wqkv_ref[...],
                  preferred_element_type=jnp.float32) + bqkv_ref[...]   # (B*S, 3C) f32
    # Park in a bf16 VMEM scratch: per-head slices become ref loads, not in-register
    # cross-lane selects on a live (128, 192) value.
    qkv_s_ref[...] = qkv.astype(bf16)

    def head_stack(col0):
        # Build a (B*nhead, S, hd) stack (head-major batch index bh = h*B + b) using
        # only ref slices, leading-dim reshapes and a leading-dim concatenate.
        return jnp.concatenate(
            [qkv_s_ref[:, col0 + h * hd: col0 + (h + 1) * hd].reshape(B, S, hd)
             for h in range(nhead)],
            axis=0)

    q = head_stack(0)          # bf16, 1/sqrt(hd) already folded into weights/bias
    k = head_stack(C)
    v = head_stack(2 * C)

    # ---- ONE batched contraction + ONE softmax pass over all B*nhead pairs ----
    s = jnp.einsum("bqd,bkd->bqk", q, k,
                   preferred_element_type=jnp.float32)          # (B*nhead, S, S)
    s = s - jnp.max(s, axis=-1, keepdims=True)
    p = jnp.exp(s)
    p = p * pl.reciprocal(jnp.sum(p, axis=-1, keepdims=True), approx=True)
    ctx = jnp.einsum("bqk,bkd->bqd", p.astype(bf16), v,
                     preferred_element_type=jnp.float32)        # (B*nhead, S, hd)

    # ---- heads contiguous along lanes -> (B*S, C); single K=C out-projection ----
    ctx_all = jnp.concatenate(
        [ctx[h * B:(h + 1) * B].reshape(B * S, hd) for h in range(nhead)], axis=-1)
    attn = jnp.dot(ctx_all.astype(bf16), wo_ref[...],
                   preferred_element_type=jnp.float32) + bo_ref[...]    # (B*S, C)

    # ---- residual 1 (un-normalized tokens), then ff_self once on all B*S rows ----
    h1 = attn + x
    h_ln = _layernorm(h1, ln2_g_ref[...], ln2_b_ref[...])
    f = jnp.dot(h_ln.astype(bf16), w1_ref[...],
                preferred_element_type=jnp.float32) + b1_ref[...]
    f = f * pl.reciprocal(1.0 + jnp.exp(-f), approx=True)       # SiLU (EUP exp + rcp)
    f = jnp.dot(f.astype(bf16), w2_ref[...],
                preferred_element_type=jnp.float32) + b2_ref[...]
    y = f + h1                                                  # (B*S, C)

    # ---- single unmasked full-lane store: (S, B*C) with batches packed in lanes ----
    out_ref[...] = jnp.concatenate([y[b * S:(b + 1) * S, :] for b in range(B)],
                                   axis=-1)


# ---------------------------------------------------------------------------
# Wrapper: layout plumbing (B,C,H,W) <-> flat token slabs + single pallas_call
# ---------------------------------------------------------------------------
def self_attention_forward(params, x):
    B, C, H, W = x.shape
    S = H * W
    # (B, C, H, W) -> (B, S, C) -> (B*S, C)
    # TODO(synk): fold these two XLA layout transposes into the kernel (review item 8);
    # left in XLA to guarantee clean Mosaic lowering at these sub-lane-tile shapes.
    x2d = jnp.transpose(x.reshape(B, C, S), (0, 2, 1)).reshape(B * S, C)
    x2d = x2d.astype(jnp.float32)

    bf16 = jnp.bfloat16
    args = (x2d,
            params["ln1_g"], params["ln1_b"],
            params["wqkv_t"].astype(bf16), params["bqkv"],
            params["wo_t"].astype(bf16), params["bo"],
            params["ln2_g"], params["ln2_b"],
            params["w1_t"].astype(bf16), params["b1"],
            params["w2_t"].astype(bf16), params["b2"])

    kernel = functools.partial(_self_attention_kernel,
                               batch=B, seq=S, channels=C, nhead=NHEAD)
    vmem_spec = pl.BlockSpec(memory_space=pltpu.MemorySpace.VMEM)

    out_slab = pl.pallas_call(
        kernel,
        out_shape=jax.ShapeDtypeStruct((S, B * C), jnp.float32),  # lane-dense (64, 128)
        in_specs=[vmem_spec] * len(args),
        out_specs=vmem_spec,
        scratch_shapes=[pltpu.VMEM((B * S, 3 * C), jnp.bfloat16)],
    )(*args)

    # (S, B*C) -> (S, B, C) -> (B, C, S) -> (B, C, H, W)
    return jnp.transpose(out_slab.reshape(S, B, C), (1, 2, 0)).reshape(B, C, H, W)


# ---------------------------------------------------------------------------
# Parameters (deterministic synthetic init; shapes mirror the PyTorch module)
# ---------------------------------------------------------------------------
def init_params(key, channels=CHANNELS, nhead=NHEAD):
    hd = channels // nhead
    ks = jax.random.split(key, 8)
    s = 0.02
    # PyTorch stores Linear/in_proj weights as (out, in); we pre-transpose so the kernel
    # computes x @ W_t == x @ W.T.  Fold the 1/sqrt(head_dim) attention scale into Q.
    wqkv_t = jax.random.normal(ks[0], (channels, 3 * channels), jnp.float32) * s
    bqkv = jax.random.normal(ks[1], (1, 3 * channels), jnp.float32) * s
    scale = 1.0 / math.sqrt(hd)
    wqkv_t = wqkv_t.at[:, :channels].multiply(scale)
    bqkv = bqkv.at[:, :channels].multiply(scale)
    return dict(
        ln1_g=jnp.ones((1, channels), jnp.float32),
        ln1_b=jnp.zeros((1, channels), jnp.float32),
        wqkv_t=wqkv_t,
        bqkv=bqkv,
        wo_t=jax.random.normal(ks[2], (channels, channels), jnp.float32) * s,
        bo=jax.random.normal(ks[3], (1, channels), jnp.float32) * s,
        ln2_g=jnp.ones((1, channels), jnp.float32),
        ln2_b=jnp.zeros((1, channels), jnp.float32),
        w1_t=jax.random.normal(ks[4], (channels, channels), jnp.float32) * s,
        b1=jax.random.normal(ks[5], (1, channels), jnp.float32) * s,
        w2_t=jax.random.normal(ks[6], (channels, channels), jnp.float32) * s,
        b2=jax.random.normal(ks[7], (1, channels), jnp.float32) * s,
    )


# ---------------------------------------------------------------------------
# Pure-JAX reference (non-Pallas, f32 'highest' precision) for the correctness check
# ---------------------------------------------------------------------------
def _reference_forward(params, x):
    B, C, H, W = x.shape
    S = H * W
    hd = C // NHEAD
    hp = "highest"
    xs = jnp.transpose(x.reshape(B, C, S), (0, 2, 1))            # (B, S, C)

    def ln(v, g, b):
        mu = jnp.mean(v, axis=-1, keepdims=True)
        var = jnp.mean(jnp.square(v - mu), axis=-1, keepdims=True)
        return (v - mu) * jax.lax.rsqrt(var + LN_EPS) * g + b

    x_ln = ln(xs, params["ln1_g"], params["ln1_b"])
    qkv = jnp.matmul(x_ln, params["wqkv_t"], precision=hp) + params["bqkv"]
    q = qkv[..., :C].reshape(B, S, NHEAD, hd)
    k = qkv[..., C:2 * C].reshape(B, S, NHEAD, hd)
    v = qkv[..., 2 * C:].reshape(B, S, NHEAD, hd)
    s = jnp.einsum("bqhd,bkhd->bhqk", q, k, precision=hp)        # scale already folded
    p = jax.nn.softmax(s, axis=-1)
    o = jnp.einsum("bhqk,bkhd->bqhd", p, v, precision=hp).reshape(B, S, C)
    attn = jnp.matmul(o, params["wo_t"], precision=hp) + params["bo"]
    h1 = attn + xs
    hl = ln(h1, params["ln2_g"], params["ln2_b"])
    f = jnp.matmul(hl, params["w1_t"], precision=hp) + params["b1"]
    f = jax.nn.silu(f)
    f = jnp.matmul(f, params["w2_t"], precision=hp) + params["b2"]
    out = f + h1
    return jnp.transpose(out, (0, 2, 1)).reshape(B, C, H, W)


if __name__ == "__main__":
    key = jax.random.PRNGKey(0)
    pkey, xkey = jax.random.split(key)
    params = init_params(pkey)
    x = jax.random.normal(xkey, (BATCH, CHANNELS, SIZE, SIZE), jnp.float32)

    out = jax.jit(self_attention_forward)(params, x)
    jax.block_until_ready(out)

    assert out.shape == (BATCH, CHANNELS, SIZE, SIZE) and out.dtype == jnp.float32
    ref = _reference_forward(params, x)
    max_err = float(jnp.max(jnp.abs(out - ref)))
    assert bool(jnp.allclose(out, ref, rtol=5e-3, atol=5e-3)), (
        "max abs diff = %g" % max_err)
    print("KERNEL_OK")
</pallas_src>

<mosaic_0001>
module attributes {stable_mosaic.version = 11 : i64} {
  func.func @_self_attention_kernel(%arg0: memref<128x64xf32, #tpu.memory_space<vmem>>, %arg1: memref<1x64xf32, #tpu.memory_space<vmem>>, %arg2: memref<1x64xf32, #tpu.memory_space<vmem>>, %arg3: memref<64x192xbf16, #tpu.memory_space<vmem>>, %arg4: memref<1x192xf32, #tpu.memory_space<vmem>>, %arg5: memref<64x64xbf16, #tpu.memory_space<vmem>>, %arg6: memref<1x64xf32, #tpu.memory_space<vmem>>, %arg7: memref<1x64xf32, #tpu.memory_space<vmem>>, %arg8: memref<1x64xf32, #tpu.memory_space<vmem>>, %arg9: memref<64x64xbf16, #tpu.memory_space<vmem>>, %arg10: memref<1x64xf32, #tpu.memory_space<vmem>>, %arg11: memref<64x64xbf16, #tpu.memory_space<vmem>>, %arg12: memref<1x64xf32, #tpu.memory_space<vmem>>, %arg13: memref<64x128xf32, #tpu.memory_space<vmem>>, %arg14: memref<128x192xbf16, #tpu.memory_space<vmem>>) attributes {dimension_semantics = [], scalar_prefetch = 0 : i64, scratch_operands = 1 : i64, tpu.core_type = #tpu.core_type<tc>} {
    %c0 = arith.constant 0 : index
    %c0_0 = arith.constant 0 : index
    %0 = vector.load %arg0[%c0, %c0_0] : memref<128x64xf32, #tpu.memory_space<vmem>>, vector<128x64xf32>
    %c0_1 = arith.constant 0 : index
    %c0_2 = arith.constant 0 : index
    %1 = vector.load %arg1[%c0_1, %c0_2] : memref<1x64xf32, #tpu.memory_space<vmem>>, vector<1x64xf32>
    %c0_3 = arith.constant 0 : index
    %c0_4 = arith.constant 0 : index
    %2 = vector.load %arg2[%c0_3, %c0_4] : memref<1x64xf32, #tpu.memory_space<vmem>>, vector<1x64xf32>
    %cst = arith.constant dense<0.000000e+00> : vector<128xf32>
    %3 = vector.multi_reduction <add>, %0, %cst [1] : vector<128x64xf32> to vector<128xf32>
    %4 = vector.shape_cast %3 : vector<128xf32> to vector<128x1xf32>
    %cst_5 = arith.constant 6.400000e+01 : f32
    %5 = vector.broadcast %cst_5 : f32 to vector<128x1xf32>
    %6 = arith.divf %4, %5 : vector<128x1xf32>
    %7 = vector.broadcast %6 : vector<128x1xf32> to vector<128x64xf32>
    %8 = arith.subf %0, %7 : vector<128x64xf32>
    %9 = arith.mulf %8, %8 : vector<128x64xf32>
    %cst_6 = arith.constant dense<0.000000e+00> : vector<128xf32>
    %10 = vector.multi_reduction <add>, %9, %cst_6 [1] : vector<128x64xf32> to vector<128xf32>
    %11 = vector.shape_cast %10 : vector<128xf32> to vector<128x1xf32>
    %cst_7 = arith.constant 6.400000e+01 : f32
    %12 = vector.broadcast %cst_7 : f32 to vector<128x1xf32>
    %13 = arith.divf %11, %12 : vector<128x1xf32>
    %cst_8 = arith.constant 9.99999974E-6 : f32
    %14 = vector.broadcast %cst_8 : f32 to vector<128x1xf32>
    %15 = arith.addf %13, %14 : vector<128x1xf32>
    %16 = math.rsqrt %15 : vector<128x1xf32>
    %17 = vector.broadcast %16 : vector<128x1xf32> to vector<128x64xf32>
    %18 = arith.mulf %8, %17 : vector<128x64xf32>
    %19 = vector.broadcast %1 : vector<1x64xf32> to vector<128x64xf32>
    %20 = arith.mulf %18, %19 : vector<128x64xf32>
    %21 = vector.broadcast %2 : vector<1x64xf32> to vector<128x64xf32>
    %22 = arith.addf %20, %21 : vector<128x64xf32>
    %23 = arith.truncf %22 : vector<128x64xf32> to vector<128x64xbf16>
    %c0_9 = arith.constant 0 : index
    %c0_10 = arith.constant 0 : index
    %24 = vector.load %arg3[%c0_9, %c0_10] : memref<64x192xbf16, #tpu.memory_space<vmem>>, vector<64x192xbf16>
    %cst_11 = arith.constant dense<0.000000e+00> : vector<128x192xf32>
    %25 = tpu.matmul %23, %24, %cst_11 {dimension_numbers = #tpu.dot_dimension_numbers<[1], [0], [0], [1], [0, 0, 1, 1], [], []>} : vector<128x64xbf16>, vector<64x192xbf16>, vector<128x192xf32> -> vector<128x192xf32>
    %c0_12 = arith.constant 0 : index
    %c0_13 = arith.constant 0 : index
    %26 = vector.load %arg4[%c0_12, %c0_13] : memref<1x192xf32, #tpu.memory_space<vmem>>, vector<1x192xf32>
    %27 = vector.broadcast %26 : vector<1x192xf32> to vector<128x192xf32>
    %28 = arith.addf %25, %27 : vector<128x192xf32>
    %29 = arith.truncf %28 : vector<128x192xf32> to vector<128x192xbf16>
    %c0_14 = arith.constant 0 : index
    %c0_15 = arith.constant 0 : index
    %30 = vector.load %arg14[%c0_14, %c0_15] : memref<128x192xbf16, #tpu.memory_space<vmem>>, vector<128x192xbf16>
    tpu.vector_store %arg14[%c0_14, %c0_15], %29 {strides = array<i32>} : memref<128x192xbf16, #tpu.memory_space<vmem>>, vector<128x192xbf16>,
    %c0_16 = arith.constant 0 : index
    %c0_17 = arith.constant 0 : index
    %31 = vector.load %arg14[%c0_16, %c0_17] : memref<128x192xbf16, #tpu.memory_space<vmem>>, vector<128x16xbf16>
    %32 = vector.shape_cast %31 : vector<128x16xbf16> to vector<2x64x16xbf16>
    %c0_18 = arith.constant 0 : index
    %c16 = arith.constant 16 : index
    %33 = vector.load %arg14[%c0_18, %c16] : memref<128x192xbf16, #tpu.memory_space<vmem>>, vector<128x16xbf16>
    %34 = vector.shape_cast %33 : vector<128x16xbf16> to vector<2x64x16xbf16>
    %c0_19 = arith.constant 0 : index
    %c32 = arith.constant 32 : index
    %35 = vector.load %arg14[%c0_19, %c32] : memref<128x192xbf16, #tpu.memory_space<vmem>>, vector<128x16xbf16>
    %36 = vector.shape_cast %35 : vector<128x16xbf16> to vector<2x64x16xbf16>
    %c0_20 = arith.constant 0 : index
    %c48 = arith.constant 48 : index
    %37 = vector.load %arg14[%c0_20, %c48] : memref<128x192xbf16, #tpu.memory_space<vmem>>, vector<128x16xbf16>
    %38 = vector.shape_cast %37 : vector<128x16xbf16> to vector<2x64x16xbf16>
    %39 = tpu.concatenate %32, %34, %36, %38 in 0 : vector<2x64x16xbf16>, vector<2x64x16xbf16>, vector<2x64x16xbf16>, vector<2x64x16xbf16> -> vector<8x64x16xbf16>
    %c0_21 = arith.constant 0 : index
    %c64 = arith.constant 64 : index
    %40 = vector.load %arg14[%c0_21, %c64] : memref<128x192xbf16, #tpu.memory_space<vmem>>, vector<128x16xbf16>
    %41 = vector.shape_cast %40 : vector<128x16xbf16> to vector<2x64x16xbf16>
    %c0_22 = arith.constant 0 : index
    %c80 = arith.constant 80 : index
    %42 = vector.load %arg14[%c0_22, %c80] : memref<128x192xbf16, #tpu.memory_space<vmem>>, vector<128x16xbf16>
    %43 = vector.shape_cast %42 : vector<128x16xbf16> to vector<2x64x16xbf16>
    %c0_23 = arith.constant 0 : index
    %c96 = arith.constant 96 : index
    %44 = vector.load %arg14[%c0_23, %c96] : memref<128x192xbf16, #tpu.memory_space<vmem>>, vector<128x16xbf16>
    %45 = vector.shape_cast %44 : vector<128x16xbf16> to vector<2x64x16xbf16>
    %c0_24 = arith.constant 0 : index
    %c112 = arith.constant 112 : index
    %46 = vector.load %arg14[%c0_24, %c112] : memref<128x192xbf16, #tpu.memory_space<vmem>>, vector<128x16xbf16>
    %47 = vector.shape_cast %46 : vector<128x16xbf16> to vector<2x64x16xbf16>
    %48 = tpu.concatenate %41, %43, %45, %47 in 0 : vector<2x64x16xbf16>, vector<2x64x16xbf16>, vector<2x64x16xbf16>, vector<2x64x16xbf16> -> vector<8x64x16xbf16>
    %c0_25 = arith.constant 0 : index
    %c128 = arith.constant 128 : index
    %49 = vector.load %arg14[%c0_25, %c128] : memref<128x192xbf16, #tpu.memory_space<vmem>>, vector<128x16xbf16>
    %50 = vector.shape_cast %49 : vector<128x16xbf16> to vector<2x64x16xbf16>
    %c0_26 = arith.constant 0 : index
    %c144 = arith.constant 144 : index
    %51 = vector.load %arg14[%c0_26, %c144] : memref<128x192xbf16, #tpu.memory_space<vmem>>, vector<128x16xbf16>
    %52 = vector.shape_cast %51 : vector<128x16xbf16> to vector<2x64x16xbf16>
    %c0_27 = arith.constant 0 : index
    %c160 = arith.constant 160 : index
    %53 = vector.load %arg14[%c0_27, %c160] : memref<128x192xbf16, #tpu.memory_space<vmem>>, vector<128x16xbf16>
    %54 = vector.shape_cast %53 : vector<128x16xbf16> to vector<2x64x16xbf16>
    %c0_28 = arith.constant 0 : index
    %c176 = arith.constant 176 : index
    %55 = vector.load %arg14[%c0_28, %c176] : memref<128x192xbf16, #tpu.memory_space<vmem>>, vector<128x16xbf16>
    %56 = vector.shape_cast %55 : vector<128x16xbf16> to vector<2x64x16xbf16>
    %57 = tpu.concatenate %50, %52, %54, %56 in 0 : vector<2x64x16xbf16>, vector<2x64x16xbf16>, vector<2x64x16xbf16>, vector<2x64x16xbf16> -> vector<8x64x16xbf16>
    "tpu.trace_start"() <{level = 10 : i32, message = "bqd,bkd->bqk"}> : () -> ()
    %cst_29 = arith.constant dense<0.000000e+00> : vector<8x64x64xf32>
    %58 = tpu.matmul %39, %48, %cst_29 {dimension_numbers = #tpu.dot_dimension_numbers<[2], [2], [1], [1], [0, 0, 0, 1, 1, 1], [0], [0]>} : vector<8x64x16xbf16>, vector<8x64x16xbf16>, vector<8x64x64xf32> -> vector<8x64x64xf32>
    "tpu.trace_stop"() : () -> ()
    %cst_30 = arith.constant dense<0xFF800000> : vector<8x64xf32>
    %59 = vector.multi_reduction <maximumf>, %58, %cst_30 [2] : vector<8x64x64xf32> to vector<8x64xf32>
    %60 = vector.shape_cast %59 : vector<8x64xf32> to vector<8x64x1xf32>
    %61 = vector.broadcast %60 : vector<8x64x1xf32> to vector<8x64x64xf32>
    %62 = arith.subf %58, %61 : vector<8x64x64xf32>
    %63 = math.exp %62 : vector<8x64x64xf32>
    %cst_31 = arith.constant dense<0.000000e+00> : vector<8x64xf32>
    %64 = vector.multi_reduction <add>, %63, %cst_31 [2] : vector<8x64x64xf32> to vector<8x64xf32>
    %65 = vector.shape_cast %64 : vector<8x64xf32> to vector<8x64x1xf32>
    %66 = tpu.reciprocal %65 {approx = true} : vector<8x64x1xf32> -> vector<8x64x1xf32>
    %67 = vector.broadcast %66 : vector<8x64x1xf32> to vector<8x64x64xf32>
    %68 = arith.mulf %63, %67 : vector<8x64x64xf32>
    %69 = arith.truncf %68 : vector<8x64x64xf32> to vector<8x64x64xbf16>
    "tpu.trace_start"() <{level = 10 : i32, message = "bqk,bkd->bqd"}> : () -> ()
    %cst_32 = arith.constant dense<0.000000e+00> : vector<8x64x16xf32>
    %70 = tpu.matmul %69, %57, %cst_32 {dimension_numbers = #tpu.dot_dimension_numbers<[2], [1], [1], [2], [0, 0, 0, 1, 1, 2], [0], [0]>} : vector<8x64x64xbf16>, vector<8x64x16xbf16>, vector<8x64x16xf32> -> vector<8x64x16xf32>
    "tpu.trace_stop"() : () -> ()
    %71 = vector.extract_strided_slice %70 {offsets = [0, 0, 0], sizes = [2, 64, 16], strides = [1, 1, 1]} : vector<8x64x16xf32> to vector<2x64x16xf32>
    %72 = vector.shape_cast %71 : vector<2x64x16xf32> to vector<128x16xf32>
    %73 = vector.extract_strided_slice %70 {offsets = [2, 0, 0], sizes = [2, 64, 16], strides = [1, 1, 1]} : vector<8x64x16xf32> to vector<2x64x16xf32>
    %74 = vector.shape_cast %73 : vector<2x64x16xf32> to vector<128x16xf32>
    %75 = vector.extract_strided_slice %70 {offsets = [4, 0, 0], sizes = [2, 64, 16], strides = [1, 1, 1]} : vector<8x64x16xf32> to vector<2x64x16xf32>
    %76 = vector.shape_cast %75 : vector<2x64x16xf32> to vector<128x16xf32>
    %77 = vector.extract_strided_slice %70 {offsets = [6, 0, 0], sizes = [2, 64, 16], strides = [1, 1, 1]} : vector<8x64x16xf32> to vector<2x64x16xf32>
    %78 = vector.shape_cast %77 : vector<2x64x16xf32> to vector<128x16xf32>
    %79 = tpu.concatenate %72, %74, %76, %78 in 1 : vector<128x16xf32>, vector<128x16xf32>, vector<128x16xf32>, vector<128x16xf32> -> vector<128x64xf32>
    %80 = arith.truncf %79 : vector<128x64xf32> to vector<128x64xbf16>
    %c0_33 = arith.constant 0 : index
    %c0_34 = arith.constant 0 : index
    %81 = vector.load %arg5[%c0_33, %c0_34] : memref<64x64xbf16, #tpu.memory_space<vmem>>, vector<64x64xbf16>
    %cst_35 = arith.constant dense<0.000000e+00> : vector<128x64xf32>
    %82 = tpu.matmul %80, %81, %cst_35 {dimension_numbers = #tpu.dot_dimension_numbers<[1], [0], [0], [1], [0, 0, 1, 1], [], []>} : vector<128x64xbf16>, vector<64x64xbf16>, vector<128x64xf32> -> vector<128x64xf32>
    %c0_36 = arith.constant 0 : index
    %c0_37 = arith.constant 0 : index
    %83 = vector.load %arg6[%c0_36, %c0_37] : memref<1x64xf32, #tpu.memory_space<vmem>>, vector<1x64xf32>
    %84 = vector.broadcast %83 : vector<1x64xf32> to vector<128x64xf32>
    %85 = arith.addf %82, %84 : vector<128x64xf32>
    %86 = arith.addf %85, %0 : vector<128x64xf32>
    %c0_38 = arith.constant 0 : index
    %c0_39 = arith.constant 0 : index
    %87 = vector.load %arg7[%c0_38, %c0_39] : memref<1x64xf32, #tpu.memory_space<vmem>>, vector<1x64xf32>
    %c0_40 = arith.constant 0 : index
    %c0_41 = arith.constant 0 : index
    %88 = vector.load %arg8[%c0_40, %c0_41] : memref<1x64xf32, #tpu.memory_space<vmem>>, vector<1x64xf32>
    %cst_42 = arith.constant dense<0.000000e+00> : vector<128xf32>
    %89 = vector.multi_reduction <add>, %86, %cst_42 [1] : vector<128x64xf32> to vector<128xf32>
    %90 = vector.shape_cast %89 : vector<128xf32> to vector<128x1xf32>
    %cst_43 = arith.constant 6.400000e+01 : f32
    %91 = vector.broadcast %cst_43 : f32 to vector<128x1xf32>
    %92 = arith.divf %90, %91 : vector<128x1xf32>
    %93 = vector.broadcast %92 : vector<128x1xf32> to vector<128x64xf32>
    %94 = arith.subf %86, %93 : vector<128x64xf32>
    %95 = arith.mulf %94, %94 : vector<128x64xf32>
    %cst_44 = arith.constant dense<0.000000e+00> : vector<128xf32>
    %96 = vector.multi_reduction <add>, %95, %cst_44 [1] : vector<128x64xf32> to vector<128xf32>
    %97 = vector.shape_cast %96 : vector<128xf32> to vector<128x1xf32>
    %cst_45 = arith.constant 6.400000e+01 : f32
    %98 = vector.broadcast %cst_45 : f32 to vector<128x1xf32>
    %99 = arith.divf %97, %98 : vector<128x1xf32>
    %cst_46 = arith.constant 9.99999974E-6 : f32
    %100 = vector.broadcast %cst_46 : f32 to vector<128x1xf32>
    %101 = arith.addf %99, %100 : vector<128x1xf32>
    %102 = math.rsqrt %101 : vector<128x1xf32>
    %103 = vector.broadcast %102 : vector<128x1xf32> to vector<128x64xf32>
    %104 = arith.mulf %94, %103 : vector<128x64xf32>
    %105 = vector.broadcast %87 : vector<1x64xf32> to vector<128x64xf32>
    %106 = arith.mulf %104, %105 : vector<128x64xf32>
    %107 = vector.broadcast %88 : vector<1x64xf32> to vector<128x64xf32>
    %108 = arith.addf %106, %107 : vector<128x64xf32>
    %109 = arith.truncf %108 : vector<128x64xf32> to vector<128x64xbf16>
    %c0_47 = arith.constant 0 : index
    %c0_48 = arith.constant 0 : index
    %110 = vector.load %arg9[%c0_47, %c0_48] : memref<64x64xbf16, #tpu.memory_space<vmem>>, vector<64x64xbf16>
    %cst_49 = arith.constant dense<0.000000e+00> : vector<128x64xf32>
    %111 = tpu.matmul %109, %110, %cst_49 {dimension_numbers = #tpu.dot_dimension_numbers<[1], [0], [0], [1], [0, 0, 1, 1], [], []>} : vector<128x64xbf16>, vector<64x64xbf16>, vector<128x64xf32> -> vector<128x64xf32>
    %c0_50 = arith.constant 0 : index
    %c0_51 = arith.constant 0 : index
    %112 = vector.load %arg10[%c0_50, %c0_51] : memref<1x64xf32, #tpu.memory_space<vmem>>, vector<1x64xf32>
    %113 = vector.broadcast %112 : vector<1x64xf32> to vector<128x64xf32>
    %114 = arith.addf %111, %113 : vector<128x64xf32>
    %cst_52 = arith.constant 0.000000e+00 : f32
    %115 = vector.broadcast %cst_52 : f32 to vector<128x64xf32>
    %116 = arith.subf %115, %114 : vector<128x64xf32>
    %117 = math.exp %116 : vector<128x64xf32>
    %cst_53 = arith.constant 1.000000e+00 : f32
    %118 = vector.broadcast %cst_53 : f32 to vector<128x64xf32>
    %119 = arith.addf %118, %117 : vector<128x64xf32>
    %120 = tpu.reciprocal %119 {approx = true} : vector<128x64xf32> -> vector<128x64xf32>
    %121 = arith.mulf %114, %120 : vector<128x64xf32>
    %122 = arith.truncf %121 : vector<128x64xf32> to vector<128x64xbf16>
    %c0_54 = arith.constant 0 : index
    %c0_55 = arith.constant 0 : index
    %123 = vector.load %arg11[%c0_54, %c0_55] : memref<64x64xbf16, #tpu.memory_space<vmem>>, vector<64x64xbf16>
    %cst_56 = arith.constant dense<0.000000e+00> : vector<128x64xf32>
    %124 = tpu.matmul %122, %123, %cst_56 {dimension_numbers = #tpu.dot_dimension_numbers<[1], [0], [0], [1], [0, 0, 1, 1], [], []>} : vector<128x64xbf16>, vector<64x64xbf16>, vector<128x64xf32> -> vector<128x64xf32>
    %c0_57 = arith.constant 0 : index
    %c0_58 = arith.constant 0 : index
    %125 = vector.load %arg12[%c0_57, %c0_58] : memref<1x64xf32, #tpu.memory_space<vmem>>, vector<1x64xf32>
    %126 = vector.broadcast %125 : vector<1x64xf32> to vector<128x64xf32>
    %127 = arith.addf %124, %126 : vector<128x64xf32>
    %128 = arith.addf %127, %86 : vector<128x64xf32>
    %129 = vector.extract_strided_slice %128 {offsets = [0, 0], sizes = [64, 64], strides = [1, 1]} : vector<128x64xf32> to vector<64x64xf32>
    %130 = vector.extract_strided_slice %128 {offsets = [64, 0], sizes = [64, 64], strides = [1, 1]} : vector<128x64xf32> to vector<64x64xf32>
    %131 = tpu.concatenate %129, %130 in 1 : vector<64x64xf32>, vector<64x64xf32> -> vector<64x128xf32>
    %c0_59 = arith.constant 0 : index
    %c0_60 = arith.constant 0 : index
    %132 = vector.load %arg13[%c0_59, %c0_60] : memref<64x128xf32, #tpu.memory_space<vmem>>, vector<64x128xf32>
    tpu.vector_store %arg13[%c0_59, %c0_60], %131 {strides = array<i32>} : memref<64x128xf32, #tpu.memory_space<vmem>>, vector<64x128xf32>,
    return
  }
}

</mosaic_0001>

<bundles_post_ra>
// kernel: self_attention_forward.1
= control target key start
LH: loop header
LB: loop body
LE: loop exit
PB: predicated region body
PF: predicated region fallthrough
CT: control target
= control target key end

     0   :  { %vm63_vm0 = vcmask 523264   ;;  %vm714_vm1 = vcmask 130048   ;;  %s5228_s25 = smov 64   ;;  %s5229_s26 = smov 96   ;;  %vm3043_vm2 = vcmask 261120   ;;  %vm3060_vm3 = vcmask 392192   ;;  %s7323_s0 = inlined_call_operand.vmem [shape: f32[128,64], index: 0, kind: input, shape index: {}]   ;;  %s7324_s3 = inlined_call_operand.vmem [shape: bf16[64,192], index: 3, kind: input, shape index: {}]   ;;  %s7325_s1 = inlined_call_operand.vmem [shape: f32[1,64], index: 1, kind: input, shape index: {}]   ;;  %s7326_s2 = inlined_call_operand.vmem [shape: f32[1,64], index: 2, kind: input, shape index: {}]   ;;  %s7327_s4 = inlined_call_operand.vmem [shape: f32[1,192], index: 4, kind: input, shape index: {}]   ;;  %s7328_s5 = inlined_call_operand.vmem [shape: bf16[64,64], index: 5, kind: input, shape index: {}]   ;;  %s7329_s6 = inlined_call_operand.vmem [shape: f32[1,64], index: 6, kind: input, shape index: {}]   ;;  %s7330_s9 = inlined_call_operand.vmem [shape: bf16[64,64], index: 9, kind: input, shape index: {}]   ;;  %s7331_s7 = inlined_call_operand.vmem [shape: f32[1,64], index: 7, kind: input, shape index: {}]   ;;  %s7332_s8 = inlined_call_operand.vmem [shape: f32[1,64], index: 8, kind: input, shape index: {}]   ;;  %s7333_s11 = inlined_call_operand.vmem [shape: bf16[64,64], index: 11, kind: input, shape index: {}]   ;;  %s7334_s10 = inlined_call_operand.vmem [shape: f32[1,64], index: 10, kind: input, shape index: {}]   ;;  %s7335_s12 = inlined_call_operand.vmem [shape: f32[1,64], index: 12, kind: input, shape index: {}]   ;;  %s7336_s13 = inlined_call_operand.vmem [shape: f32[64,128], index: 13, kind: output, shape index: {}]  }
   0x1   :  { %v45_v0 = vld [vmem:[%s7323_s0] sm:$0xff]  ;;  %v47_v1 = vld [vmem:[%s7323_s0 + $0x10] sm:$0xff]  ;;  %v46_v2 = vld [vmem:[%s7323_s0 + $0x8] sm:$0xff]  ;;  %s5230_s27 = smov 80   ;;  %s5231_s28 = smov 16  }
   0x2   :  { %v64_v3 = vsel %vm63_vm0, %v45_v0, 0.0  ;;  %v70_v4 = vsel %vm63_vm0, %v47_v1, 0.0  ;;  %v48_v5 = vld [vmem:[%s7323_s0 + $0x18] sm:$0xff]  ;;  %v67_v6 = vsel %vm63_vm0, %v46_v2, 0.0  ;;  %v49_v8 = vld [vmem:[%s7323_s0 + $0x20] sm:$0xff]  ;;  %v50_v9 = vld [vmem:[%s7323_s0 + $0x28] sm:$0xff] }
   0x3   :  { %65 = vadd.xlane.f32.xlu0 %v64_v3  ;;  %71 = vadd.xlane.f32.xlu1 %v70_v4  ;;  %v73_v7 = vsel %vm63_vm0, %v48_v5, 0.0  ;;  %v76_v10 = vsel %vm63_vm0, %v49_v8, 0.0  ;;  %v79_v11 = vsel %vm63_vm0, %v50_v9, 0.0  ;;  %v5331_v12 = vld [vmem:[%s7323_s0 + $0x30] sm:$0xff]  ;;  %v5336_v13 = vld [vmem:[%s7323_s0 + $0x38] sm:$0xff]  ;;  %v5345_v16 = vld [vmem:[%s7323_s0 + $0x40] sm:$0xff] }
   0x4   :  { %v82_v14 = vsel %vm63_vm0, %v5331_v12, 0.0  ;;  %v85_v15 = vsel %vm63_vm0, %v5336_v13, 0.0  ;;  %v5350_v17 = vld [vmem:[%s7323_s0 + $0x48] sm:$0xff]  ;;  %v88_v18 = vsel %vm63_vm0, %v5345_v16, 0.0  ;;  %v5359_v20 = vld [vmem:[%s7323_s0 + $0x50] sm:$0xff]  ;;  %v5364_v21 = vld [vmem:[%s7323_s0 + $0x58] sm:$0xff] }
   0x5   :  { %v91_v19 = vsel %vm63_vm0, %v5350_v17, 0.0  ;;  %v94_v22 = vsel %vm63_vm0, %v5359_v20, 0.0  ;;  %v97_v23 = vsel %vm63_vm0, %v5364_v21, 0.0  ;;  %v5373_v24 = vld [vmem:[%s7323_s0 + $0x60] sm:$0xff]  ;;  %v5378_v25 = vld [vmem:[%s7323_s0 + $0x68] sm:$0xff]  ;;  %v5387_v28 = vld [vmem:[%s7323_s0 + $0x70] sm:$0xff] }
   0x6   :  { %v100_v26 = vsel %vm63_vm0, %v5373_v24, 0.0  ;;  %v103_v27 = vsel %vm63_vm0, %v5378_v25, 0.0  ;;  %v5392_v29 = vld [vmem:[%s7323_s0 + $0x78] sm:$0xff]  ;;  %v106_v30 = vsel %vm63_vm0, %v5387_v28, 0.0  ;;  %s5232_s29 = smov 32   ;;  %s5233_s21 = smov 48  }
   0x7   :  { %68 = vadd.xlane.f32.xlu0 %v67_v6  ;;  %74 = vadd.xlane.f32.xlu1 %v73_v7  ;;  %v109_v31 = vsel %vm63_vm0, %v5392_v29, 0.0 }
   0xb   :  { %77 = vadd.xlane.f32.xlu0 %v76_v10  ;;  %80 = vadd.xlane.f32.xlu1 %v79_v11 }
   0xf   :  { %83 = vadd.xlane.f32.xlu0 %v82_v14  ;;  %86 = vadd.xlane.f32.xlu1 %v85_v15 }
  0x13   :  { %89 = vadd.xlane.f32.xlu0 %v88_v18  ;;  %92 = vadd.xlane.f32.xlu1 %v91_v19 }
  0x17   :  { %95 = vadd.xlane.f32.xlu0 %v94_v22  ;;  %98 = vadd.xlane.f32.xlu1 %v97_v23 }
  0x1b   :  { %101 = vadd.xlane.f32.xlu0 %v100_v26  ;;  %104 = vadd.xlane.f32.xlu1 %v103_v27 }
  0x1f   :  { %107 = vadd.xlane.f32.xlu0 %v106_v30  ;;  %110 = vadd.xlane.f32.xlu1 %v109_v31 }
  0x90   :  { %v66_v32 = vpop.xlane.xlu0 %65  ;;  %v72_v33 = vpop.xlane.xlu1 %71 }
  0x91   :  { %v113_v34 = vmul.f32 0.015625, %v66_v32  ;;  %v115_v35 = vmul.f32 0.015625, %v72_v33 }
  0x93   :  { %v5398_v36 = vsub.f32 %v45_v0, %v113_v34  ;;  %v5400_v37 = vsub.f32 %v47_v1, %v115_v35 }
  0x94   :  { %v69_v38 = vpop.xlane.xlu0 %68  ;;  %v75_v39 = vpop.xlane.xlu1 %74 }
  0x95   :  { %v114_v40 = vmul.f32 0.015625, %v69_v38  ;;  %v116_v41 = vmul.f32 0.015625, %v75_v39  ;;  %v145_v42 = vmul.f32 %v5398_v36, %v5398_v36  ;;  %v147_v43 = vmul.f32 %v5400_v37, %v5400_v37 }
  0x97   :  { %v5406_v44 = vsub.f32 %v46_v2, %v114_v40  ;;  %v5408_v45 = vsub.f32 %v48_v5, %v116_v41  ;;  %v161_v46 = vsel %vm63_vm0, %v145_v42, 0.0  ;;  %v167_v49 = vsel %vm63_vm0, %v147_v43, 0.0 }
  0x98   :  { %162 = vadd.xlane.f32.xlu0 %v161_v46  ;;  %v78_v47 = vpop.xlane.xlu0 %77  ;;  %v81_v48 = vpop.xlane.xlu1 %80 }
  0x99   :  { %v117_v50 = vmul.f32 0.015625, %v78_v47  ;;  %v118_v51 = vmul.f32 0.015625, %v81_v48  ;;  %v146_v52 = vmul.f32 %v5406_v44, %v5406_v44  ;;  %v148_v53 = vmul.f32 %v5408_v45, %v5408_v45 }
  0x9b   :  { %v5416_v54 = vsub.f32 %v49_v8, %v117_v50  ;;  %v5418_v55 = vsub.f32 %v50_v9, %v118_v51  ;;  %v164_v56 = vsel %vm63_vm0, %v146_v52, 0.0  ;;  %v170_v59 = vsel %vm63_vm0, %v148_v53, 0.0  ;;  %v4801_v53 = vld [vmem:[%s7324_s3 + $0x14] ss:$8 sps:$4 sm:$0xff]  }
  0x9c   :  { %168 = vadd.xlane.f32.xlu0 %v167_v49  ;;  %165 = vadd.xlane.f32.xlu1 %v164_v56  ;;  %v84_v57 = vpop.xlane.xlu0 %83  ;;  %v87_v58 = vpop.xlane.xlu1 %86  ;;  %v4798_v49 = vld [vmem:[%s7324_s3 + $0x4] ss:$8 sps:$4 sm:$0xff]  }
  0x9d   :  { %v119_v60 = vmul.f32 0.015625, %v84_v57  ;;  %v120_v61 = vmul.f32 0.015625, %v87_v58  ;;  %v149_v62 = vmul.f32 %v5416_v54, %v5416_v54  ;;  %v150_v63 = vmul.f32 %v5418_v55, %v5418_v55  ;;  %409 = vmatprep.subr.bf16.mxu0 %v4798_v49  ;;  %v4803_v57 = vld [vmem:[%s7324_s3 + $0x10] ss:$8 sps:$4 sm:$0xff]   ;;  %v4804_v58 = vld [vmem:[%s7324_s3 + $0x24] ss:$8 sps:$4 sm:$0xff]  }
  0x9f   :  { %v5427_v0 = vsub.f32 %v5331_v12, %v119_v60  ;;  %v5430_v1 = vsub.f32 %v5336_v13, %v120_v61  ;;  %v173_v2 = vsel %vm63_vm0, %v149_v62, 0.0  ;;  %v176_v5 = vsel %vm63_vm0, %v150_v63, 0.0  ;;  %v4807_v60 = vld [vmem:[%s7324_s3 + $0x34] ss:$8 sps:$4 sm:$0xff]   ;;  %v4809_v61 = vld [vmem:[%s7324_s3 + $0x30] ss:$8 sps:$4 sm:$0xff]  }
  0xa0   :  { %171 = vadd.xlane.f32.xlu1 %v170_v59  ;;  %174 = vadd.xlane.f32.xlu0 %v173_v2  ;;  %v90_v3 = vpop.xlane.xlu0 %89  ;;  %v93_v4 = vpop.xlane.xlu1 %92  ;;  %v4806_v59 = vld [vmem:[%s7324_s3 + $0x20] ss:$8 sps:$4 sm:$0xff]   ;;  %v5226_v62 = vmov 0  }
  0xa1   :  { %v121_v6 = vmul.f32 0.015625, %v90_v3  ;;  %v122_v7 = vmul.f32 0.015625, %v93_v4  ;;  %v151_v8 = vmul.f32 %v5427_v0, %v5427_v0  ;;  %v152_v9 = vmul.f32 %v5430_v1, %v5430_v1  ;;  %441 = vmatprep.mubr.bf16.mxu0 %v5226_v62 }
  0xa3   :  { %v5439_v10 = vsub.f32 %v5345_v16, %v121_v6  ;;  %v5442_v11 = vsub.f32 %v5350_v17, %v122_v7  ;;  %v179_v12 = vsel %vm63_vm0, %v151_v8, 0.0  ;;  %v182_v15 = vsel %vm63_vm0, %v152_v9, 0.0 }
  0xa4   :  { %177 = vadd.xlane.f32.xlu1 %v176_v5  ;;  %180 = vadd.xlane.f32.xlu0 %v179_v12  ;;  %v96_v13 = vpop.xlane.xlu0 %95  ;;  %v99_v14 = vpop.xlane.xlu1 %98 }
  0xa5   :  { %v123_v18 = vmul.f32 0.015625, %v96_v13  ;;  %v124_v19 = vmul.f32 0.015625, %v99_v14  ;;  %v153_v22 = vmul.f32 %v5439_v10, %v5439_v10  ;;  %v154_v16 = vmul.f32 %v5442_v11, %v5442_v11 }
  0xa7   :  { %v5451_v23 = vsub.f32 %v5359_v20, %v123_v18  ;;  %v5454_v17 = vsub.f32 %v5364_v21, %v124_v19  ;;  %v185_v26 = vsel %vm63_vm0, %v153_v22, 0.0  ;;  %v188_v31 = vsel %vm63_vm0, %v154_v16, 0.0 }
  0xa8   :  { %183 = vadd.xlane.f32.xlu1 %v182_v15  ;;  %186 = vadd.xlane.f32.xlu0 %v185_v26  ;;  %v102_v27 = vpop.xlane.xlu0 %101  ;;  %v105_v30 = vpop.xlane.xlu1 %104 }
  0xa9   :  { %v125_v32 = vmul.f32 0.015625, %v102_v27  ;;  %v126_v33 = vmul.f32 0.015625, %v105_v30  ;;  %v155_v34 = vmul.f32 %v5451_v23, %v5451_v23  ;;  %v156_v20 = vmul.f32 %v5454_v17, %v5454_v17 }
  0xab   :  { %v5463_v35 = vsub.f32 %v5373_v24, %v125_v32  ;;  %v5466_v21 = vsub.f32 %v5378_v25, %v126_v33  ;;  %v191_v38 = vsel %vm63_vm0, %v155_v34, 0.0  ;;  %v194_v41 = vsel %vm63_vm0, %v156_v20, 0.0  ;;  %v5517_v34 = vld [vmem:[%s7325_s1] ss:$0 sm:$0xff] }
  0xac   :  { %189 = vadd.xlane.f32.xlu1 %v188_v31  ;;  %192 = vadd.xlane.f32.xlu0 %v191_v38  ;;  %v108_v39 = vpop.xlane.xlu0 %107  ;;  %v111_v40 = vpop.xlane.xlu1 %110 }
  0xad   :  { %v127_v42 = vmul.f32 0.015625, %v108_v39  ;;  %v128_v43 = vmul.f32 0.015625, %v111_v40  ;;  %v157_v46 = vmul.f32 %v5463_v35, %v5463_v35  ;;  %v158_v24 = vmul.f32 %v5466_v21, %v5466_v21 }
  0xaf   :  { %v5475_v47 = vsub.f32 %v5387_v28, %v127_v42  ;;  %v5478_v25 = vsub.f32 %v5392_v29, %v128_v43  ;;  %v197_v48 = vsel %vm63_vm0, %v157_v46, 0.0  ;;  %v200_v50 = vsel %vm63_vm0, %v158_v24, 0.0  ;;  %v4800_v29 = vld [vmem:[%s7324_s3] ss:$8 sps:$4 sm:$0xff]  }
  0xb0   :  { %195 = vadd.xlane.f32.xlu1 %v194_v41  ;;  %198 = vadd.xlane.f32.xlu0 %v197_v48 }
  0xb1   :  { %v159_v51 = vmul.f32 %v5475_v47, %v5475_v47  ;;  %v160_v28 = vmul.f32 %v5478_v25, %v5478_v25  ;;  %410 = vmatpush1.bf16.msra.mxu0 %v4800_v29 }
  0xb2   :  { %411 = vmatprep.subr.bf16.mxu0 %v4801_v53 }
  0xb3   :  { %v203_v52 = vsel %vm63_vm0, %v159_v51, 0.0  ;;  %v206_v56 = vsel %vm63_vm0, %v160_v28, 0.0 }
  0xb4   :  { %201 = vadd.xlane.f32.xlu1 %v200_v50  ;;  %204 = vadd.xlane.f32.xlu0 %v203_v52 }
  0xb5   :  { %412 = vmatpush1.bf16.msra.mxu0 %v4803_v57 }
  0xb6   :  { %413 = vmatprep.subr.bf16.mxu0 %v4804_v58 }
  0xb8   :  { %207 = vadd.xlane.f32.xlu1 %v206_v56 }
  0xb9   :  { %414 = vmatpush1.bf16.msra.mxu0 %v4806_v59 }
  0xba   :  { %415 = vmatprep.subr.bf16.mxu0 %v4807_v60 }
  0xbd   :  { %416 = vmatpush1.bf16.msra.mxu0 %v4809_v61 }
 0x125   :  { %v163_v63 = vpop.xlane.xlu0 %162 }
 0x126   :  { %v209_v2 = vmul.f32 0.015625, %v163_v63 }
 0x128   :  { %v225_v3 = vadd.f32 1e-05, %v209_v2 }
 0x129   :  { %v166_v4 = vpop.xlane.xlu1 %165  ;;  %v169_v5 = vpop.xlane.xlu0 %168 }
 0x12a   :  { %4822 = vrsqrt.f32 %v225_v3  ;;  %v210_v6 = vmul.f32 0.015625, %v166_v4  ;;  %v211_v7 = vmul.f32 0.015625, %v169_v5 }
 0x12c   :  { %v226_v8 = vadd.f32 1e-05, %v210_v6  ;;  %v227_v9 = vadd.f32 1e-05, %v211_v7 }
 0x12d   :  { %v172_v12 = vpop.xlane.xlu1 %171  ;;  %v175_v13 = vpop.xlane.xlu0 %174 }
 0x12e   :  { %4824 = vrsqrt.f32 %v226_v8  ;;  %v212_v14 = vmul.f32 0.015625, %v172_v12  ;;  %v213_v18 = vmul.f32 0.015625, %v175_v13 }
 0x12f   :  { %4826 = vrsqrt.f32 %v227_v9 }
 0x130   :  { %v228_v15 = vadd.f32 1e-05, %v212_v14  ;;  %v229_v26 = vadd.f32 1e-05, %v213_v18 }
 0x131   :  { %v178_v19 = vpop.xlane.xlu1 %177  ;;  %v181_v30 = vpop.xlane.xlu0 %180 }
 0x132   :  { %4828 = vrsqrt.f32 %v228_v15  ;;  %v214_v22 = vmul.f32 0.015625, %v178_v19  ;;  %v215_v38 = vmul.f32 0.015625, %v181_v30 }
 0x134   :  { %v4823_v16 = vpop.eup %4822  ;;  %v230_v27 = vadd.f32 1e-05, %v214_v22  ;;  %v231_v48 = vadd.f32 1e-05, %v215_v38 }
 0x135   :  { %v184_v31 = vpop.xlane.xlu1 %183  ;;  %v257_v32 = vmul.f32 %v4823_v16, %v5398_v36  ;;  %v5524_v36 = vld [vmem:[%s7326_s2] ss:$0 sm:$0xff]  ;;  %v187_v49 = vpop.xlane.xlu0 %186 }
 0x136   :  { %4830 = vrsqrt.f32 %v230_v27  ;;  %v216_v33 = vmul.f32 0.015625, %v184_v31  ;;  %v217_v57 = vmul.f32 0.015625, %v187_v49 }
 0x137   :  { %4832 = vrsqrt.f32 %v229_v26  ;;  %v279_v40 = vmul.f32 %v5517_v34, %v257_v32 }
 0x138   :  { %v4825_v20 = vpop.eup %4824  ;;  %v232_v42 = vadd.f32 1e-05, %v216_v33  ;;  %v233_v63 = vadd.f32 1e-05, %v217_v57 }
 0x139   :  { %v258_v39 = vmul.f32 %v4825_v20, %v5406_v44  ;;  %v4827_v41 = vpop.eup %4826  ;;  %v190_v43 = vpop.xlane.xlu1 %189  ;;  %v301_v50 = vadd.f32 %v5524_v36, %v279_v40 }
 0x13a   :  { %v259_v44 = vmul.f32 %v4827_v41, %v5400_v37  ;;  %4834 = vrsqrt.f32 %v232_v42  ;;  %v218_v29 = vmul.f32 0.015625, %v190_v43  ;;  %v193_v2 = vpop.xlane.xlu0 %192 }
 0x13b   :  { %v280_v46 = vmul.f32 %v5517_v34, %v258_v39  ;;  %4836 = vrsqrt.f32 %v231_v48  ;;  %v219_v9 = vmul.f32 0.015625, %v193_v2 }
 0x13c   :  { %v4829_v24 = vpop.eup %4828  ;;  %v281_v58 = vmul.f32 %v5517_v34, %v259_v44  ;;  %v234_v60 = vadd.f32 1e-05, %v218_v29 }
 0x13d   :  { %v302_v51 = vadd.f32 %v5524_v36, %v280_v46  ;;  %v260_v28 = vmul.f32 %v4829_v24, %v5408_v45  ;;  %v196_v61 = vpop.xlane.xlu1 %195  ;;  %v235_v18 = vadd.f32 1e-05, %v219_v9 }
 0x13e   :  { %v303_v3 = vadd.f32 %v5524_v36, %v281_v58  ;;  %4838 = vrsqrt.f32 %v234_v60  ;;  %v220_v5 = vmul.f32 0.015625, %v196_v61  ;;  %v199_v19 = vpop.xlane.xlu0 %198 }
 0x13f   :  { %v317_v52 = vpack.c.bf16 %v302_v51, %v301_v50  ;;  %v282_v53 = vmul.f32 %v5517_v34, %v260_v28  ;;  %4840 = vrsqrt.f32 %v233_v63  ;;  %v221_v32 = vmul.f32 0.015625, %v199_v19 }
 0x140   :  { %v4831_v56 = vpop.eup %4830 }
 0x141   :  { %4025 = vmatmul.mubr.msk.bf16.vlgmr.msra.gmra.mrb[0].mxu0 %vm63_vm0, %v317_v52  ;;  %v4833_v59 = vpop.eup %4832  ;;  %v304_v37 = vadd.f32 %v5524_v36, %v282_v53  ;;  %v262_v45 = vmul.f32 %v4831_v56, %v5418_v55  ;;  %v236_v55 = vadd.f32 1e-05, %v220_v5  ;;  %v202_v14 = vpop.xlane.xlu1 %201  ;;  %v237_v40 = vadd.f32 1e-05, %v221_v32 }
 0x142   :  { %451 = vmatprep.mubr.bf16.mxu0 %v5226_v62  ;;  %v261_v4 = vmul.f32 %v4833_v59, %v5416_v54  ;;  %v222_v26 = vmul.f32 0.015625, %v202_v14  ;;  %v205_v41 = vpop.xlane.xlu0 %204 }
 0x143   :  { %v318_v6 = vpack.c.bf16 %v304_v37, %v303_v3  ;;  %v284_v7 = vmul.f32 %v5517_v34, %v262_v45  ;;  %4842 = vrsqrt.f32 %v236_v55  ;;  %v223_v50 = vmul.f32 0.015625, %v205_v41 }
 0x144   :  { %v4835_v8 = vpop.eup %4834  ;;  %v283_v12 = vmul.f32 %v5517_v34, %v261_v4  ;;  %4844 = vrsqrt.f32 %v235_v18 }
 0x145   :  { %v4837_v13 = vpop.eup %4836  ;;  %v306_v15 = vadd.f32 %v5524_v36, %v284_v7  ;;  %v264_v54 = vmul.f32 %v4835_v8, %v5430_v1  ;;  %v238_v1 = vadd.f32 1e-05, %v222_v26  ;;  %v208_v38 = vpop.xlane.xlu1 %207  ;;  %v239_v29 = vadd.f32 1e-05, %v223_v50 }
 0x146   :  { %v305_v22 = vadd.f32 %v5524_v36, %v283_v12  ;;  %v263_v16 = vmul.f32 %v4837_v13, %v5427_v0  ;;  %v224_v46 = vmul.f32 0.015625, %v208_v38 }
 0x147   :  { %v286_v30 = vmul.f32 %v5517_v34, %v264_v54  ;;  %4846 = vrsqrt.f32 %v238_v1 }
 0x148   :  { %v319_v27 = vpack.c.bf16 %v306_v15, %v305_v22  ;;  %v4839_v31 = vpop.eup %4838  ;;  %v285_v33 = vmul.f32 %v5517_v34, %v263_v16  ;;  %4848 = vrsqrt.f32 %v237_v40 }
 0x149   :  { %4026 = vmatmul.mubr.msk.bf16.gmra.mrb[4].mxu0 %vm63_vm0, %v318_v6  ;;  %v4841_v20 = vpop.eup %4840  ;;  %v308_v39 = vadd.f32 %v5524_v36, %v286_v30  ;;  %v266_v0 = vmul.f32 %v4839_v31, %v5442_v11  ;;  %v240_v11 = vadd.f32 1e-05, %v224_v46 }
 0x14a   :  { %461 = vmatprep.mubr.bf16.mxu0 %v5226_v62  ;;  %v307_v42 = vadd.f32 %v5524_v36, %v285_v33  ;;  %v265_v43 = vmul.f32 %v4841_v20, %v5439_v10 }
 0x14b   :  { %v288_v48 = vmul.f32 %v5517_v34, %v266_v0  ;;  %4850 = vrsqrt.f32 %v240_v11 }
 0x14c   :  { %v320_v24 = vpack.c.bf16 %v308_v39, %v307_v42  ;;  %v287_v51 = vmul.f32 %v5517_v34, %v265_v43  ;;  %4852 = vrsqrt.f32 %v239_v29 }
 0x14d   :  { %v4843_v49 = vpop.eup %4842  ;;  %v310_v28 = vadd.f32 %v5524_v36, %v288_v48 }
 0x14e   :  { %v4845_v44 = vpop.eup %4844  ;;  %v268_v10 = vmul.f32 %v4843_v49, %v5454_v17  ;;  %v309_v52 = vadd.f32 %v5524_v36, %v287_v51 }
 0x14f   :  { %v267_v53 = vmul.f32 %v4845_v44, %v5451_v23 }
 0x150   :  { %v321_v56 = vpack.c.bf16 %v310_v28, %v309_v52  ;;  %v290_v57 = vmul.f32 %v5517_v34, %v268_v10 }
 0x151   :  { %4027 = vmatmul.mubr.msk.bf16.gmra.mrb[8].mxu0 %vm63_vm0, %v319_v27  ;;  %v4847_v58 = vpop.eup %4846  ;;  %v289_v59 = vmul.f32 %v5517_v34, %v267_v53 }
 0x152   :  { %471 = vmatprep.mubr.bf16.mxu0 %v5226_v62  ;;  %v4849_v60 = vpop.eup %4848  ;;  %v312_v17 = vadd.f32 %v5524_v36, %v290_v57  ;;  %v270_v61 = vmul.f32 %v4847_v58, %v5466_v21 }
 0x153   :  { %v311_v37 = vadd.f32 %v5524_v36, %v289_v59  ;;  %v269_v23 = vmul.f32 %v4849_v60, %v5463_v35 }
 0x154   :  { %v292_v63 = vmul.f32 %v5517_v34, %v270_v61 }
 0x155   :  { %v322_v45 = vpack.c.bf16 %v312_v17, %v311_v37  ;;  %v4851_v2 = vpop.eup %4850  ;;  %v291_v3 = vmul.f32 %v5517_v34, %v269_v23 }
 0x156   :  { %v4853_v4 = vpop.eup %4852  ;;  %v314_v5 = vadd.f32 %v5524_v36, %v292_v63  ;;  %v272_v6 = vmul.f32 %v4851_v2, %v5478_v25  ;;  %v335_v25 = vlaneseq }
 0x157   :  { %v313_v21 = vadd.f32 %v5524_v36, %v291_v3  ;;  %v271_v7 = vmul.f32 %v4853_v4, %v5475_v47  ;;  %v333_v47 = vld [vmem:[%s7327_s4] sm:$0x3]  ;;  %s5227_s4 = smov 112  }
 0x158   :  { %v294_v8 = vmul.f32 %v5517_v34, %v272_v6  ;;  %v336_v14 = vshrl.u32 %v335_v25, 7 }
 0x159   :  { %4028 = vmatmul.mubr.msk.bf16.gmra.mrb[12].mxu0 %vm63_vm0, %v320_v24  ;;  %v323_v35 = vpack.c.bf16 %v314_v5, %v313_v21  ;;  %v293_v9 = vmul.f32 %v5517_v34, %v271_v7 }
 0x15a   :  { %481 = vmatprep.mubr.bf16.mxu0 %v5226_v62  ;;  %v316_v12 = vadd.f32 %v5524_v36, %v294_v8  ;;  %v337_v15 = vsub.s32 0, %v336_v14  ;;  %v341_v54 = vsub.s32 1, %v336_v14 }
 0x15b   :  { %v315_v13 = vadd.f32 %v5524_v36, %v293_v9 }
 0x15c   :  { %v5589_v18 = vrot.slane %v333_v47, %v337_v15  ;;  %v5591_v19 = vrot.slane %v333_v47, %v341_v54 }
 0x15d   :  { %v324_v55 = vpack.c.bf16 %v316_v12, %v315_v13 }
 0x161   :  { %4029 = vmatmul.mubr.msk.bf16.gmra.mrb[16].mxu0 %vm63_vm0, %v321_v56 }
 0x162   :  { %491 = vmatprep.mubr.bf16.mxu0 %v5226_v62 }
 0x169   :  { %4030 = vmatmul.mubr.msk.bf16.gmra.mrb[20].mxu0 %vm63_vm0, %v322_v45 }
 0x16a   :  { %501 = vmatprep.mubr.bf16.mxu0 %v5226_v62 }
 0x171   :  { %4031 = vmatmul.mubr.msk.bf16.gmra.mrb[24].mxu0 %vm63_vm0, %v323_v35 }
 0x172   :  { %511 = vmatprep.mubr.bf16.mxu0 %v5226_v62 }
 0x179   :  { %4032 = vmatmul.mubr.msk.bf16.gmra.mrb[28].mxu0 %vm63_vm0, %v324_v55 }
 0x214   :  { %v443_v34 = vpop.f32.mrb[0].mxu0 }
 0x215   :  { %v445_v62 = vpop.f32.mrb[1].mxu0  ;;  %v444_v36 = vadd.f32 %v443_v34, %v5589_v18 }
 0x216   :  { %v447_v22 = vpop.f32.mrb[2].mxu0  ;;  %v446_v27 = vadd.f32 %v445_v62, %v5591_v19 }
 0x217   :  { %v448_v16 = vadd.f32 %v447_v22, %v5589_v18  ;;  %v449_v26 = vpop.f32.mrb[3].mxu0 }
 0x218   :  { %v450_v30 = vadd.f32 %v449_v26, %v5591_v19 }
 0x219   :  { %v5597_v31 = vpack.c.bf16 %v448_v16, %v444_v36 }
 0x21a   :  { %v523_v32 = vpack.c.bf16 %v450_v30, %v446_v27 }
 0x21b   :  { %570 = vrot.lane.b32.xlu0 %v5597_v31, %s5227_s4  ;;  %4310 = vmatprep.mubr.msk.bf16.mxu1 %vm714_vm1, %v5597_v31 }
 0x21c   :  { %539 = vst.msk [vmem:[#allocation2 + $0x8] sm:$0xff] %vm63_vm0, %v523_v32  ;;  %v453_v33 = vpop.f32.mrb[4].mxu0 }
 0x21d   :  { %v455_v20 = vpop.f32.mrb[5].mxu0  ;;  %v454_v38 = vadd.f32 %v453_v33, %v5589_v18 }
 0x21e   :  { %v457_v1 = vpop.f32.mrb[6].mxu0  ;;  %v456_v40 = vadd.f32 %v455_v20, %v5591_v19 }
 0x21f   :  { %v458_v39 = vadd.f32 %v457_v1, %v5589_v18  ;;  %v459_v0 = vpop.f32.mrb[7].mxu0 }
 0x220   :  { %v460_v41 = vadd.f32 %v459_v0, %v5591_v19 }
 0x221   :  { %v5608_v42 = vpack.c.bf16 %v458_v39, %v454_v38 }
 0x222   :  { %v525_v43 = vpack.c.bf16 %v460_v41, %v456_v40 }
 0x223   :  { %572 = vrot.lane.b32.xlu1 %v5608_v42, %s5227_s4 }
 0x224   :  { %541 = vst.msk [vmem:[#allocation2 + $0x18] sm:$0xff] %vm63_vm0, %v525_v43  ;;  %v463_v46 = vpop.f32.mrb[8].mxu0 }
 0x225   :  { %v465_v24 = vpop.f32.mrb[9].mxu0  ;;  %v464_v49 = vadd.f32 %v463_v46, %v5589_v18 }
 0x226   :  { %v467_v48 = vpop.f32.mrb[10].mxu0  ;;  %v466_v44 = vadd.f32 %v465_v24, %v5591_v19 }
 0x227   :  { %v468_v50 = vadd.f32 %v467_v48, %v5589_v18  ;;  %v469_v51 = vpop.f32.mrb[11].mxu0  ;;  %706 = vrot.lane.b32.xlu1 %v5597_v31, %s5228_s25 }
 0x228   :  { %v470_v11 = vadd.f32 %v469_v51, %v5591_v19 }
 0x229   :  { %v5619_v28 = vpack.c.bf16 %v468_v50, %v464_v49 }
 0x22a   :  { %v527_v10 = vpack.c.bf16 %v470_v11, %v466_v44 }
 0x22b   :  { %574 = vrot.lane.b32.xlu1 %v5619_v28, %s5227_s4 }
 0x22c   :  { %543 = vst.msk [vmem:[#allocation2 + $0x28] sm:$0xff] %vm63_vm0, %v527_v10  ;;  %v473_v29 = vpop.f32.mrb[12].mxu0 }
 0x22d   :  { %v475_v52 = vpop.f32.mrb[13].mxu0  ;;  %v474_v56 = vadd.f32 %v473_v29, %v5589_v18 }
 0x22e   :  { %v477_v53 = vpop.f32.mrb[14].mxu0  ;;  %v476_v59 = vadd.f32 %v475_v52, %v5591_v19 }
 0x22f   :  { %v478_v57 = vadd.f32 %v477_v53, %v5589_v18  ;;  %v479_v58 = vpop.f32.mrb[15].mxu0  ;;  %708 = vrot.lane.b32.xlu1 %v5608_v42, %s5228_s25 }
 0x230   :  { %v480_v60 = vadd.f32 %v479_v58, %v5591_v19 }
 0x231   :  { %v5630_v17 = vpack.c.bf16 %v478_v57, %v474_v56 }
 0x232   :  { %v529_v61 = vpack.c.bf16 %v480_v60, %v476_v59 }
 0x234   :  { %545 = vst.msk [vmem:[#allocation2 + $0x38] sm:$0xff] %vm63_vm0, %v529_v61  ;;  %v483_v37 = vpop.f32.mrb[16].mxu0 }
 0x235   :  { %v485_v23 = vpop.f32.mrb[17].mxu0  ;;  %v484_v63 = vadd.f32 %v483_v37, %v5589_v18 }
 0x236   :  { %v487_v45 = vpop.f32.mrb[18].mxu0  ;;  %v486_v4 = vadd.f32 %v485_v23, %v5591_v19 }
 0x237   :  { %v488_v2 = vadd.f32 %v487_v45, %v5589_v18  ;;  %v489_v3 = vpop.f32.mrb[19].mxu0 }
 0x238   :  { %v490_v5 = vadd.f32 %v489_v3, %v5591_v19 }
 0x239   :  { %v5637_v6 = vpack.c.bf16 %v488_v2, %v484_v63 }
 0x23a   :  { %v531_v21 = vpack.c.bf16 %v490_v5, %v486_v4 }
 0x23b   :  { %578 = vrot.lane.b32.xlu0 %v5637_v6, %s5227_s4 }
 0x23c   :  { %547 = vst.msk [vmem:[#allocation2 + $0x48] sm:$0xff] %vm63_vm0, %v531_v21  ;;  %v493_v7 = vpop.f32.mrb[20].mxu0 }
 0x23d   :  { %v495_v35 = vpop.f32.mrb[21].mxu0  ;;  %v494_v9 = vadd.f32 %v493_v7, %v5589_v18 }
 0x23e   :  { %v497_v8 = vpop.f32.mrb[22].mxu0  ;;  %v496_v55 = vadd.f32 %v495_v35, %v5591_v19 }
 0x23f   :  { %v498_v12 = vadd.f32 %v497_v8, %v5589_v18  ;;  %v499_v13 = vpop.f32.mrb[23].mxu0  ;;  %576 = vrot.lane.b32.xlu0 %v5630_v17, %s5227_s4 }
 0x240   :  { %v500_v25 = vadd.f32 %v499_v13, %v5591_v19 }
 0x241   :  { %v5648_v14 = vpack.c.bf16 %v498_v12, %v494_v9 }
 0x242   :  { %v533_v15 = vpack.c.bf16 %v500_v25, %v496_v55 }
 0x243   :  { %710 = vrot.lane.b32.xlu0 %v5619_v28, %s5228_s25  ;;  %580 = vrot.lane.b32.xlu1 %v5648_v14, %s5227_s4 }
 0x244   :  { %549 = vst.msk [vmem:[#allocation2 + $0x58] sm:$0xff] %vm63_vm0, %v533_v15  ;;  %v503_v47 = vpop.f32.mrb[24].mxu0 }
 0x245   :  { %v505_v54 = vpop.f32.mrb[25].mxu0  ;;  %v504_v62 = vadd.f32 %v503_v47, %v5589_v18 }
 0x246   :  { %v507_v34 = vpop.f32.mrb[26].mxu0  ;;  %v506_v16 = vadd.f32 %v505_v54, %v5591_v19 }
 0x247   :  { %v508_v22 = vadd.f32 %v507_v34, %v5589_v18  ;;  %v509_v36 = vpop.f32.mrb[27].mxu0  ;;  %586 = vrot.lane.b32.xlu0 %v5597_v31, %s5229_s26 }
 0x248   :  { %v510_v26 = vadd.f32 %v509_v36, %v5591_v19 }
 0x249   :  { %v5661_v27 = vpack.c.bf16 %v508_v22, %v504_v62 }
 0x24a   :  { %v535_v30 = vpack.c.bf16 %v510_v26, %v506_v16 }
 0x24b   :  { %582 = vrot.lane.b32.xlu1 %v5661_v27, %s5227_s4 }
 0x24c   :  { %551 = vst.msk [vmem:[#allocation2 + $0x68] sm:$0xff] %vm63_vm0, %v535_v30  ;;  %v513_v32 = vpop.f32.mrb[28].mxu0 }
 0x24d   :  { %v515_v33 = vpop.f32.mrb[29].mxu0  ;;  %v514_v1 = vadd.f32 %v513_v32, %v5589_v18 }
 0x24e   :  { %v517_v20 = vpop.f32.mrb[30].mxu0  ;;  %v516_v0 = vadd.f32 %v515_v33, %v5591_v19 }
 0x24f   :  { %v518_v38 = vadd.f32 %v517_v20, %v5589_v18  ;;  %v519_v39 = vpop.f32.mrb[31].mxu0  ;;  %712 = vrot.lane.b32.xlu1 %v5630_v17, %s5228_s25 }
 0x250   :  { %v520_v40 = vadd.f32 %v519_v39, %v5591_v19 }
 0x251   :  { %v5672_v41 = vpack.c.bf16 %v518_v38, %v514_v1  ;;  %v5857_v1 = vld [vmem:[#allocation2 + $0x8] sm:$0xff] }
 0x252   :  { %v537_v43 = vpack.c.bf16 %v520_v40, %v516_v0  ;;  %v5865_v40 = vld [vmem:[#allocation2 + $0x38] sm:$0xff] }
 0x253   :  { %588 = vrot.lane.b32.xlu1 %v5608_v42, %s5229_s26  ;;  %584 = vrot.lane.b32.xlu0 %v5672_v41, %s5227_s4 }
 0x254   :  { %553 = vst.msk [vmem:[#allocation2 + $0x78] sm:$0xff] %vm63_vm0, %v537_v43  ;;  %v623_v43 = vld [vmem:[#allocation2 + $0x58] sm:$0xff] }
 0x257   :  { %590 = vrot.lane.b32.xlu1 %v5619_v28, %s5229_s26  ;;  %804 = vrot.lane.b32.xlu0 %v5637_v6, %s5228_s25 }
 0x25b   :  { %806 = vrot.lane.b32.xlu1 %v5648_v14, %s5228_s25  ;;  %594 = vrot.lane.b32.xlu0 %v5637_v6, %s5229_s26 }
 0x25f   :  { %596 = vrot.lane.b32.xlu1 %v5648_v14, %s5229_s26  ;;  %592 = vrot.lane.b32.xlu0 %v5630_v17, %s5229_s26 }
 0x263   :  { %808 = vrot.lane.b32.xlu0 %v5661_v27, %s5228_s25 }
 0x267   :  { %598 = vrot.lane.b32.xlu0 %v5661_v27, %s5229_s26 }
 0x26b   :  { %810 = vrot.lane.b32.xlu0 %v5672_v41, %s5228_s25 }
 0x26f   :  { %600 = vrot.lane.b32.xlu0 %v5672_v41, %s5229_s26 }
 0x28d   :  { %v571_v18 = vpop.permute.xlu0 %570 }
 0x28e   :  { %4342 = vmatprep.mubr.msk.bf16.mxu0 %vm714_vm1, %v571_v18  ;;  %901 = vrot.lane.b32.xlu1 %v571_v18, %s5228_s25 }
 0x292   :  { %602 = vrot.lane.b32.xlu1 %v5597_v31, %s5230_s27 }
 0x295   :  { %v5703_v19 = vpop.permute.xlu1 %572 }
 0x296   :  { %903 = vrot.lane.b32.xlu1 %v5703_v19, %s5228_s25 }
 0x299   :  { %v707_v46 = vpop.permute.xlu1 %706 }
 0x29a   :  { %4638 = vmatprep.subr.msk.bf16.mxu1 %vm714_vm1, %v707_v46  ;;  %604 = vrot.lane.b32.xlu1 %v5608_v42, %s5230_s27  ;;  %v728_v24 = vsel %vm714_vm1, %v707_v46, 0 }
 0x29b   :  { %4303 = vmatpush3.bf16.xpose.msra.mxu1 %v728_v24 }
 0x29d   :  { %v5711_v48 = vpop.permute.xlu1 %574 }
 0x29e   :  { %905 = vrot.lane.b32.xlu0 %v5711_v48, %s5228_s25 }
 0x2a1   :  { %v709_v31 = vpop.permute.xlu1 %708 }
 0x2a2   :  { %4639 = vmatprep.subr.msk.bf16.mxu1 %vm714_vm1, %v709_v31  ;;  %606 = vrot.lane.b32.xlu0 %v5619_v28, %s5230_s27  ;;  %v731_v49 = vsel %vm714_vm1, %v709_v31, 0  ;;  %v625_v31 = vld [vmem:[#allocation2 + $0x78] sm:$0xff] }
 0x2a3   :  { %4305 = vmatpush3.bf16.xpose.msra.mxu1 %v731_v49 }
 0x2ad   :  { %v579_v50 = vpop.permute.xlu0 %578 }
 0x2ae   :  { %998 = vrot.lane.b32.xlu1 %v579_v50, %s5228_s25 }
 0x2b1   :  { %v5720_v51 = vpop.permute.xlu0 %576 }
 0x2b2   :  { %610 = vrot.lane.b32.xlu1 %v5637_v6, %s5230_s27  ;;  %907 = vrot.lane.b32.xlu0 %v5720_v51, %s5228_s25 }
 0x2b5   :  { %v5726_v44 = vpop.permute.xlu1 %580  ;;  %v711_v11 = vpop.permute.xlu0 %710 }
 0x2b6   :  { %1000 = vrot.lane.b32.xlu1 %v5726_v44, %s5228_s25  ;;  %608 = vrot.lane.b32.xlu0 %v5630_v17, %s5230_s27  ;;  %v734_v10 = vsel %vm714_vm1, %v711_v11, 0 }
 0x2b7   :  { %4640 = vmatprep.subr.msk.bf16.mxu1 %vm714_vm1, %v711_v11 }
 0x2b8   :  { %4307 = vmatpush3.bf16.xpose.msra.mxu1 %v734_v10 }
 0x2b9   :  { %v5736_v29 = vpop.permute.xlu0 %586 }
 0x2ba   :  { %612 = vrot.lane.b32.xlu1 %v5648_v14, %s5230_s27 }
 0x2bd   :  { %v5738_v52 = vpop.permute.xlu1 %582 }
 0x2be   :  { %1002 = vrot.lane.b32.xlu0 %v5738_v52, %s5228_s25  ;;  %1095 = vrot.lane.b32.xlu1 %v5736_v29, %s5228_s25 }
 0x2c1   :  { %v713_v53 = vpop.permute.xlu1 %712 }
 0x2c2   :  { %614 = vrot.lane.b32.xlu0 %v5661_v27, %s5230_s27  ;;  %4641 = vmatprep.subr.msk.bf16.mxu1 %vm714_vm1, %v713_v53  ;;  %v737_v56 = vsel %vm714_vm1, %v713_v53, 0  ;;  %v624_v53 = vld [vmem:[#allocation2 + $0x68] sm:$0xff] }
 0x2c3   :  { %4309 = vmatpush3.bf16.xpose.msra.mxu1 %v737_v56 }
 0x2c5   :  { %v5748_v57 = vpop.permute.xlu1 %588  ;;  %v5750_v58 = vpop.permute.xlu0 %584 }
 0x2c6   :  { %1097 = vrot.lane.b32.xlu0 %v5748_v57, %s5228_s25  ;;  %1004 = vrot.lane.b32.xlu1 %v5750_v58, %s5228_s25 }
 0x2c9   :  { %v5756_v59 = vpop.permute.xlu1 %590  ;;  %v805_v60 = vpop.permute.xlu0 %804 }
 0x2ca   :  { %1099 = vrot.lane.b32.xlu0 %v5756_v59, %s5228_s25  ;;  %4311 = vmatmul.mubr.msk.bf16.vlgmr.msra.gmra.mrb[0].mxu1 %vm714_vm1, %v5608_v42  ;;  %v825_v61 = vsel %vm714_vm1, %v805_v60, 0 }
 0x2cb   :  { %616 = vrot.lane.b32.xlu1 %v5672_v41, %s5230_s27  ;;  %4642 = vmatprep.subr.msk.bf16.mxu1 %vm714_vm1, %v805_v60 }
 0x2cc   :  { %4314 = vmatprep.mubr.msk.bf16.mxu1 %vm714_vm1, %v5619_v28  ;;  %4319 = vmatpush3.bf16.xpose.msra.mxu1 %v825_v61 }
 0x2cd   :  { %v807_v37 = vpop.permute.xlu1 %806  ;;  %v5768_v23 = vpop.permute.xlu0 %594 }
 0x2ce   :  { %4643 = vmatprep.subr.msk.bf16.mxu1 %vm714_vm1, %v807_v37  ;;  %v828_v28 = vsel %vm714_vm1, %v807_v37, 0 }
 0x2cf   :  { %1192 = vrot.lane.b32.xlu1 %v5768_v23, %s5228_s25 }
 0x2d1   :  { %v5773_v42 = vpop.permute.xlu1 %596  ;;  %v5775_v45 = vpop.permute.xlu0 %592 }
 0x2d2   :  { %4315 = vmatmul.mubr.msk.bf16.gmra.mrb[4].mxu1 %vm714_vm1, %v5630_v17  ;;  %1101 = vrot.lane.b32.xlu0 %v5775_v45, %s5228_s25 }
 0x2d3   :  { %1194 = vrot.lane.b32.xlu1 %v5773_v42, %s5228_s25  ;;  %4326 = vmatprep.mubr.msk.bf16.mxu1 %vm714_vm1, %v5637_v6 }
 0x2d4   :  { %4321 = vmatpush3.bf16.xpose.msra.mxu1 %v828_v28 }
 0x2d5   :  { %v809_v63 = vpop.permute.xlu0 %808 }
 0x2d6   :  { %4644 = vmatprep.subr.msk.bf16.mxu1 %vm714_vm1, %v809_v63  ;;  %v831_v17 = vsel %vm714_vm1, %v809_v63, 0 }
 0x2d9   :  { %v5787_v2 = vpop.permute.xlu0 %598 }
 0x2da   :  { %1196 = vrot.lane.b32.xlu0 %v5787_v2, %s5228_s25 }
 0x2dc   :  { %4323 = vmatpush3.bf16.xpose.msra.mxu1 %v831_v17 }
 0x2dd   :  { %v811_v3 = vpop.permute.xlu0 %810 }
 0x2de   :  { %4645 = vmatprep.subr.msk.bf16.mxu1 %vm714_vm1, %v811_v3  ;;  %v834_v5 = vsel %vm714_vm1, %v811_v3, 0 }
 0x2e1   :  { %v5793_v4 = vpop.permute.xlu0 %600 }
 0x2e2   :  { %1198 = vrot.lane.b32.xlu0 %v5793_v4, %s5228_s25 }
 0x2e4   :  { %4325 = vmatpush3.bf16.xpose.msra.mxu1 %v834_v5 }
 0x2eb   :  { %4327 = vmatmul.mubr.msk.bf16.vlgmr.msra.gmra.mrb[8].mxu1 %vm714_vm1, %v5648_v14 }
 0x2ec   :  { %4330 = vmatprep.mubr.msk.bf16.mxu1 %vm714_vm1, %v5661_v27 }
 0x2f3   :  { %4331 = vmatmul.mubr.msk.bf16.gmra.mrb[12].mxu1 %vm714_vm1, %v5672_v41 }
 0x2f4   :  { %4358 = vmatprep.mubr.msk.bf16.mxu1 %vm714_vm1, %v579_v50  ;;  %v5886_v50 = vld [vmem:[#allocation2 + $0x28] sm:$0xff] }
 0x300   :  { %v902_v6 = vpop.permute.xlu1 %901 }
 0x301   :  { %4646 = vmatprep.subr.msk.bf16.mxu0 %vm714_vm1, %v902_v6  ;;  %v922_v21 = vsel %vm714_vm1, %v902_v6, 0 }
 0x302   :  { %4335 = vmatpush3.bf16.xpose.msra.mxu0 %v922_v21 }
 0x304   :  { %v5807_v7 = vpop.permute.xlu1 %602 }
 0x305   :  { %1289 = vrot.lane.b32.xlu1 %v5807_v7, %s5228_s25 }
 0x308   :  { %v904_v35 = vpop.permute.xlu1 %903 }
 0x309   :  { %4647 = vmatprep.subr.msk.bf16.mxu0 %vm714_vm1, %v904_v35  ;;  %v925_v8 = vsel %vm714_vm1, %v904_v35, 0 }
 0x30a   :  { %4337 = vmatpush3.bf16.xpose.msra.mxu0 %v925_v8 }
 0x30c   :  { %v5813_v9 = vpop.permute.xlu1 %604 }
 0x30d   :  { %1291 = vrot.lane.b32.xlu1 %v5813_v9, %s5228_s25 }
 0x310   :  { %v906_v12 = vpop.permute.xlu0 %905 }
 0x311   :  { %4648 = vmatprep.subr.msk.bf16.mxu0 %vm714_vm1, %v906_v12  ;;  %v928_v13 = vsel %vm714_vm1, %v906_v12, 0 }
 0x312   :  { %4339 = vmatpush3.bf16.xpose.msra.mxu0 %v928_v13 }
 0x314   :  { %v5819_v55 = vpop.permute.xlu0 %606 }
 0x315   :  { %1293 = vrot.lane.b32.xlu0 %v5819_v55, %s5228_s25 }
 0x320   :  { %v999_v25 = vpop.permute.xlu1 %998 }
 0x321   :  { %4650 = vmatprep.subr.msk.bf16.mxu1 %vm714_vm1, %v999_v25  ;;  %v1019_v14 = vsel %vm714_vm1, %v999_v25, 0 }
 0x322   :  { %4351 = vmatpush3.bf16.xpose.msra.mxu1 %v1019_v14 }
 0x324   :  { %v5825_v15 = vpop.permute.xlu1 %610  ;;  %v908_v47 = vpop.permute.xlu0 %907 }
 0x325   :  { %1386 = vrot.lane.b32.xlu1 %v5825_v15, %s5228_s25  ;;  %4649 = vmatprep.subr.msk.bf16.mxu0 %vm714_vm1, %v908_v47  ;;  %v931_v54 = vsel %vm714_vm1, %v908_v47, 0 }
 0x326   :  { %4341 = vmatpush3.bf16.xpose.msra.mxu0 %v931_v54 }
 0x328   :  { %v1001_v34 = vpop.permute.xlu1 %1000  ;;  %v5831_v62 = vpop.permute.xlu0 %608 }
 0x329   :  { %4651 = vmatprep.subr.msk.bf16.mxu1 %vm714_vm1, %v1001_v34  ;;  %1295 = vrot.lane.b32.xlu0 %v5831_v62, %s5228_s25  ;;  %v1022_v22 = vsel %vm714_vm1, %v1001_v34, 0 }
 0x32a   :  { %4353 = vmatpush3.bf16.xpose.msra.mxu1 %v1022_v22 }
 0x32c   :  { %v5837_v36 = vpop.permute.xlu1 %612 }
 0x32d   :  { %1388 = vrot.lane.b32.xlu1 %v5837_v36, %s5228_s25  ;;  %4343 = vmatmul.mubr.msk.bf16.vlgmr.msra.gmra.mrb[32].mxu0 %vm714_vm1, %v5703_v19  ;;  %v5874_v19 = vld [vmem:[#allocation2 + $0x18] sm:$0xff] }
 0x32e   :  { %4346 = vmatprep.mubr.msk.bf16.mxu0 %vm714_vm1, %v5711_v48 }
 0x330   :  { %v1096_v16 = vpop.permute.xlu1 %1095  ;;  %v1003_v26 = vpop.permute.xlu0 %1002 }
 0x331   :  { %4652 = vmatprep.subr.msk.bf16.mxu1 %vm714_vm1, %v1003_v26  ;;  %4654 = vmatprep.subr.msk.bf16.mxu0 %vm714_vm1, %v1096_v16  ;;  %v1025_v27 = vsel %vm714_vm1, %v1003_v26, 0  ;;  %v1116_v30 = vsel %vm714_vm1, %v1096_v16, 0 }
 0x332   :  { %4355 = vmatpush3.bf16.xpose.msra.mxu1 %v1025_v27  ;;  %4367 = vmatpush3.bf16.xpose.msra.mxu0 %v1116_v30 }
 0x334   :  { %v5849_v32 = vpop.permute.xlu0 %614 }
 0x335   :  { %4347 = vmatmul.mubr.msk.bf16.gmra.mrb[36].mxu0 %vm714_vm1, %v5720_v51  ;;  %1390 = vrot.lane.b32.xlu0 %v5849_v32, %s5228_s25  ;;  %v5893_v51 = vld [vmem:[#allocation2 + $0x48] sm:$0xff] }
 0x336   :  { %4374 = vmatprep.mubr.msk.bf16.mxu0 %vm714_vm1, %v5736_v29 }
 0x338   :  { %v1005_v33 = vpop.permute.xlu1 %1004  ;;  %v1098_v20 = vpop.permute.xlu0 %1097 }
 0x339   :  { %4653 = vmatprep.subr.msk.bf16.mxu1 %vm714_vm1, %v1005_v33  ;;  %634 = vrot.lane.b32.xlu0 %v5857_v1, %s5227_s4  ;;  %v1028_v38 = vsel %vm714_vm1, %v1005_v33, 0  ;;  %v1119_v39 = vsel %vm714_vm1, %v1098_v20, 0 }
 0x33a   :  { %4655 = vmatprep.subr.msk.bf16.mxu0 %vm714_vm1, %v1098_v20  ;;  %4357 = vmatpush3.bf16.xpose.msra.mxu1 %v1028_v38 }
 0x33b   :  { %4369 = vmatpush3.bf16.xpose.msra.mxu0 %v1119_v39 }
 0x33c   :  { %v1100_v0 = vpop.permute.xlu0 %1099 }
 0x33d   :  { %v5867_v41 = vpop.permute.xlu1 %616  ;;  %640 = vrot.lane.b32.xlu0 %v5865_v40, %s5227_s4  ;;  %4656 = vmatprep.subr.msk.bf16.mxu0 %vm714_vm1, %v1100_v0  ;;  %v1122_v46 = vsel %vm714_vm1, %v1100_v0, 0 }
 0x33e   :  { %1392 = vrot.lane.b32.xlu1 %v5867_v41, %s5228_s25 }
 0x341   :  { %v1193_v18 = vpop.permute.xlu1 %1192  ;;  %4359 = vmatmul.mubr.msk.bf16.vlgmr.msra.gmra.mrb[16].mxu1 %vm714_vm1, %v5726_v44  ;;  %644 = vrot.lane.b32.xlu0 %v623_v43, %s5227_s4 }
 0x342   :  { %636 = vrot.lane.b32.xlu1 %v5874_v19, %s5227_s4  ;;  %4658 = vmatprep.subr.msk.bf16.mxu1 %vm714_vm1, %v1193_v18  ;;  %v1213_v24 = vsel %vm714_vm1, %v1193_v18, 0 }
 0x343   :  { %4362 = vmatprep.mubr.msk.bf16.mxu1 %vm714_vm1, %v5738_v52  ;;  %4371 = vmatpush3.bf16.xpose.msra.mxu0 %v1122_v46 }
 0x344   :  { %4383 = vmatpush3.bf16.xpose.msra.mxu1 %v1213_v24  ;;  %v1102_v48 = vpop.permute.xlu0 %1101 }
 0x345   :  { %v1195_v49 = vpop.permute.xlu1 %1194  ;;  %648 = vrot.lane.b32.xlu0 %v625_v31, %s5227_s4  ;;  %4657 = vmatprep.subr.msk.bf16.mxu0 %vm714_vm1, %v1102_v48  ;;  %v1125_v44 = vsel %vm714_vm1, %v1102_v48, 0 }
 0x346   :  { %638 = vrot.lane.b32.xlu1 %v5886_v50, %s5227_s4  ;;  %4659 = vmatprep.subr.msk.bf16.mxu1 %vm714_vm1, %v1195_v49  ;;  %v1216_v11 = vsel %vm714_vm1, %v1195_v49, 0 }
 0x349   :  { %4363 = vmatmul.mubr.msk.bf16.gmra.mrb[20].mxu1 %vm714_vm1, %v5750_v58  ;;  %668 = vrot.lane.b32.xlu0 %v623_v43, %s5229_s26 }
 0x34a   :  { %642 = vrot.lane.b32.xlu1 %v5893_v51, %s5227_s4  ;;  %4390 = vmatprep.mubr.msk.bf16.mxu1 %vm714_vm1, %v5768_v23 }
 0x34b   :  { %4373 = vmatpush3.bf16.xpose.msra.mxu0 %v1125_v44 }
 0x34c   :  { %4385 = vmatpush3.bf16.xpose.msra.mxu1 %v1216_v11  ;;  %v1197_v10 = vpop.permute.xlu0 %1196 }
 0x34d   :  { %672 = vrot.lane.b32.xlu0 %v625_v31, %s5229_s26  ;;  %4660 = vmatprep.subr.msk.bf16.mxu1 %vm714_vm1, %v1197_v10  ;;  %v1219_v29 = vsel %vm714_vm1, %v1197_v10, 0 }
 0x34e   :  { %658 = vrot.lane.b32.xlu1 %v5857_v1, %s5229_s26 }
 0x352   :  { %660 = vrot.lane.b32.xlu1 %v5874_v19, %s5229_s26  ;;  %4375 = vmatmul.mubr.msk.bf16.vlgmr.msra.gmra.mrb[40].mxu0 %vm714_vm1, %v5748_v57 }
 0x353   :  { %4378 = vmatprep.mubr.msk.bf16.mxu0 %vm714_vm1, %v5756_v59 }
 0x354   :  { %4387 = vmatpush3.bf16.xpose.msra.mxu1 %v1219_v29  ;;  %v1199_v52 = vpop.permute.xlu0 %1198 }
 0x355   :  { %4661 = vmatprep.subr.msk.bf16.mxu1 %vm714_vm1, %v1199_v52  ;;  %v1222_v56 = vsel %vm714_vm1, %v1199_v52, 0 }
 0x356   :  { %646 = vrot.lane.b32.xlu1 %v624_v53, %s5227_s4 }
 0x35a   :  { %662 = vrot.lane.b32.xlu1 %v5886_v50, %s5229_s26  ;;  %4379 = vmatmul.mubr.msk.bf16.gmra.mrb[44].mxu0 %vm714_vm1, %v5775_v45 }
 0x35b   :  { %4406 = vmatprep.mubr.msk.bf16.mxu0 %vm714_vm1, %v5807_v7 }
 0x35c   :  { %4389 = vmatpush3.bf16.xpose.msra.mxu1 %v1222_v56 }
 0x35e   :  { %664 = vrot.lane.b32.xlu1 %v5865_v40, %s5229_s26 }
 0x362   :  { %666 = vrot.lane.b32.xlu1 %v5893_v51, %s5229_s26 }
 0x363   :  { %4391 = vmatmul.mubr.msk.bf16.vlgmr.msra.gmra.mrb[24].mxu1 %vm714_vm1, %v5773_v42 }
 0x364   :  { %4394 = vmatprep.mubr.msk.bf16.mxu1 %vm714_vm1, %v5787_v2 }
 0x366   :  { %682 = vrot.lane.b32.xlu1 %v5857_v1, %s5230_s27 }
 0x36a   :  { %684 = vrot.lane.b32.xlu1 %v5874_v19, %s5230_s27 }
 0x36b   :  { %4395 = vmatmul.mubr.msk.bf16.gmra.mrb[28].mxu1 %vm714_vm1, %v5793_v4 }
 0x36c   :  { %4422 = vmatprep.mubr.msk.bf16.mxu1 %vm714_vm1, %v5825_v15 }
 0x36e   :  { %670 = vrot.lane.b32.xlu1 %v624_v53, %s5229_s26 }
 0x372   :  { %686 = vrot.lane.b32.xlu1 %v5886_v50, %s5230_s27 }
 0x376   :  { %688 = vrot.lane.b32.xlu1 %v5865_v40, %s5230_s27 }
 0x377   :  { %v1290_v57 = vpop.permute.xlu1 %1289 }
 0x378   :  { %4662 = vmatprep.subr.msk.bf16.mxu0 %vm714_vm1, %v1290_v57  ;;  %v1310_v58 = vsel %vm714_vm1, %v1290_v57, 0 }
 0x379   :  { %4399 = vmatpush3.bf16.xpose.msra.mxu0 %v1310_v58 }
 0x37a   :  { %690 = vrot.lane.b32.xlu1 %v5893_v51, %s5230_s27 }
 0x37e   :  { %692 = vrot.lane.b32.xlu1 %v623_v43, %s5230_s27 }
 0x37f   :  { %v1292_v59 = vpop.permute.xlu1 %1291 }
 0x380   :  { %4663 = vmatprep.subr.msk.bf16.mxu0 %vm714_vm1, %v1292_v59  ;;  %v1313_v60 = vsel %vm714_vm1, %v1292_v59, 0 }
 0x381   :  { %4401 = vmatpush3.bf16.xpose.msra.mxu0 %v1313_v60 }
 0x387   :  { %v1294_v61 = vpop.permute.xlu0 %1293 }
 0x388   :  { %4664 = vmatprep.subr.msk.bf16.mxu0 %vm714_vm1, %v1294_v61  ;;  %v1316_v37 = vsel %vm714_vm1, %v1294_v61, 0 }
 0x389   :  { %4403 = vmatpush3.bf16.xpose.msra.mxu0 %v1316_v37 }
 0x397   :  { %v1387_v23 = vpop.permute.xlu1 %1386 }
 0x398   :  { %4666 = vmatprep.subr.msk.bf16.mxu1 %vm714_vm1, %v1387_v23  ;;  %v1407_v42 = vsel %vm714_vm1, %v1387_v23, 0 }
 0x399   :  { %4415 = vmatpush3.bf16.xpose.msra.mxu1 %v1407_v42 }
 0x39b   :  { %v1296_v45 = vpop.permute.xlu0 %1295 }
 0x39c   :  { %4665 = vmatprep.subr.msk.bf16.mxu0 %vm714_vm1, %v1296_v45  ;;  %v1319_v28 = vsel %vm714_vm1, %v1296_v45, 0 }
 0x39d   :  { %v5958_v63 = vpop.f32.mrb[0].mxu1  ;;  %4405 = vmatpush3.bf16.xpose.msra.mxu0 %v1319_v28 }
 0x39e   :  { %v5960_v2 = vpop.f32.mrb[1].mxu1  ;;  %4430 = vmatprep.subr.bf16.mxu0 %v5857_v1  ;;  %v1489_v17 = vsel %vm63_vm0, %v5958_v63, -inf }
 0x39f   :  { %v5965_v3 = vpop.f32.mrb[2].mxu1  ;;  %v1389_v4 = vpop.permute.xlu1 %1388  ;;  %1490 = vmax.xlane.f32.xlu0 %v1489_v17  ;;  %v1483_v7 = vsel %vm63_vm0, %v5960_v2, -inf }
 0x3a0   :  { %v5967_v5 = vpop.f32.mrb[3].mxu1  ;;  %4667 = vmatprep.subr.msk.bf16.mxu1 %vm714_vm1, %v1389_v4  ;;  %v1410_v6 = vsel %vm714_vm1, %v1389_v4, 0  ;;  %v1492_v12 = vsel %vm63_vm0, %v5965_v3, -inf }
 0x3a1   :  { %4417 = vmatpush3.bf16.xpose.msra.mxu1 %v1410_v6  ;;  %v1486_v21 = vsel %vm63_vm0, %v5967_v5, -inf }
 0x3a2   :  { %1487 = vmax.xlane.f32.xlu1 %v1486_v21 }
 0x3a3   :  { %1484 = vmax.xlane.f32.xlu0 %v1483_v7 }
 0x3a4   :  { %4407 = vmatmul.mubr.msk.bf16.vlgmr.msra.gmra.mrb[48].mxu0 %vm714_vm1, %v5813_v9 }
 0x3a5   :  { %v5977_v35 = vpop.f32.mrb[4].mxu1  ;;  %4410 = vmatprep.mubr.msk.bf16.mxu0 %vm714_vm1, %v5819_v55  ;;  %4431 = vmatpush3.bf16.msra.mxu0 %v5857_v1 }
 0x3a6   :  { %v5982_v8 = vpop.f32.mrb[5].mxu1  ;;  %4432 = vmatprep.subr.bf16.mxu0 %v5874_v19  ;;  %v1501_v15 = vsel %vm63_vm0, %v5977_v35, -inf }
 0x3a7   :  { %v5987_v13 = vpop.f32.mrb[6].mxu1  ;;  %1493 = vmax.xlane.f32.xlu0 %v1492_v12  ;;  %v1391_v25 = vpop.permute.xlu0 %1390  ;;  %v1495_v54 = vsel %vm63_vm0, %v5982_v8, -inf }
 0x3a8   :  { %v5989_v14 = vpop.f32.mrb[7].mxu1  ;;  %4668 = vmatprep.subr.msk.bf16.mxu1 %vm714_vm1, %v1391_v25  ;;  %v1504_v9 = vsel %vm63_vm0, %v5987_v13, -inf  ;;  %v1413_v55 = vsel %vm714_vm1, %v1391_v25, 0 }
 0x3a9   :  { %1505 = vmax.xlane.f32.xlu1 %v1504_v9  ;;  %4419 = vmatpush3.bf16.xpose.msra.mxu1 %v1413_v55  ;;  %v1498_v47 = vsel %vm63_vm0, %v5989_v14, -inf }
 0x3aa   :  { %4433 = vmatpush3.bf16.msra.mxu0 %v5874_v19 }
 0x3ab   :  { %4434 = vmatprep.subr.bf16.mxu0 %v5886_v50  ;;  %1502 = vmax.xlane.f32.xlu0 %v1501_v15  ;;  %v635_v16 = vpop.permute.xlu0 %634 }
 0x3ac   :  { %4411 = vmatmul.mubr.msk.bf16.gmra.mrb[52].mxu0 %vm714_vm1, %v5831_v62 }
 0x3ad   :  { %1499 = vmax.xlane.f32.xlu1 %v1498_v47 }
 0x3ae   :  { %4435 = vmatpush3.bf16.msra.mxu0 %v5886_v50 }
 0x3af   :  { %4436 = vmatprep.subr.bf16.mxu0 %v5865_v40  ;;  %1496 = vmax.xlane.f32.xlu0 %v1495_v54  ;;  %v641_v38 = vpop.permute.xlu0 %640 }
 0x3b0   :  { %v1393_v34 = vpop.permute.xlu1 %1392 }
 0x3b1   :  { %4669 = vmatprep.subr.msk.bf16.mxu1 %vm714_vm1, %v1393_v34  ;;  %v1416_v22 = vsel %vm714_vm1, %v1393_v34, 0 }
 0x3b2   :  { %4421 = vmatpush3.bf16.xpose.msra.mxu1 %v1416_v22  ;;  %4437 = vmatpush3.bf16.msra.mxu0 %v5865_v40 }
 0x3b3   :  { %4446 = vmatprep.subr.bf16.mxu0 %v5893_v51  ;;  %4462 = vmatprep.subr.bf16.mxu1 %v635_v16  ;;  %v6108_v9 = vpop.permute.xlu0 %644 }
 0x3b4   :  { %v637_v62 = vpop.permute.xlu1 %636  ;;  %7390 = vst [vmem:[#allocation13_spill] sm:$0xff] %v6108_v9 }
 0x3b7   :  { %v6118_v34 = vpop.permute.xlu0 %648 }
 0x3b8   :  { %v639_v26 = vpop.permute.xlu1 %638  ;;  %7392 = vst [vmem:[#allocation15_spill] sm:$0xff] %v6118_v34 }
 0x3b9   :  { %4423 = vmatmul.mubr.msk.bf16.vlgmr.msra.gmra.mrb[32].mxu1 %vm714_vm1, %v5837_v36 }
 0x3ba   :  { %4426 = vmatprep.mubr.msk.bf16.mxu1 %vm714_vm1, %v5849_v32  ;;  %4463 = vmatpush3.bf16.msra.mxu1 %v635_v16 }
 0x3bb   :  { %4464 = vmatprep.subr.bf16.mxu1 %v637_v62 }
 0x3bc   :  { %v6021_v20 = vpop.permute.xlu1 %642 }
 0x3bd   :  { %7380 = vst [vmem:[#allocation3_spill] sm:$0xff] %v6021_v20 }
 0x3be   :  { %v6015_v27 = vpop.f32.mrb[8].mxu1  ;;  %4465 = vmatpush3.bf16.msra.mxu1 %v637_v62 }
 0x3bf   :  { %v6017_v30 = vpop.f32.mrb[9].mxu1  ;;  %4466 = vmatprep.subr.bf16.mxu1 %v639_v26  ;;  %v1513_v33 = vsel %vm63_vm0, %v6015_v27, -inf }
 0x3c0   :  { %v6023_v1 = vpop.f32.mrb[10].mxu1  ;;  %1514 = vmax.xlane.f32.xlu0 %v1513_v33  ;;  %v1507_v39 = vsel %vm63_vm0, %v6017_v30, -inf  ;;  %v6035_v40 = vpop.permute.xlu1 %658 }
 0x3c1   :  { %v6025_v36 = vpop.f32.mrb[11].mxu1  ;;  %4427 = vmatmul.mubr.msk.bf16.gmra.mrb[36].mxu1 %vm714_vm1, %v5867_v41  ;;  %v1516_v32 = vsel %vm63_vm0, %v6023_v1, -inf  ;;  %7381 = vst [vmem:[#allocation4_spill] sm:$0xff] %v6035_v40 }
 0x3c2   :  { %1517 = vmax.xlane.f32.xlu1 %v1516_v32  ;;  %4467 = vmatpush3.bf16.msra.mxu1 %v639_v26  ;;  %v1510_v0 = vsel %vm63_vm0, %v6025_v36, -inf  ;;  %v6130_v32 = vpop.permute.xlu0 %668 }
 0x3c3   :  { %4468 = vmatprep.subr.bf16.mxu1 %v641_v38  ;;  %7394 = vst [vmem:[#allocation17_spill] sm:$0xff] %v6130_v32 }
 0x3c4   :  { %1508 = vmax.xlane.f32.xlu0 %v1507_v39  ;;  %v6054_v49 = vpop.permute.xlu1 %660 }
 0x3c5   :  { %7382 = vst [vmem:[#allocation5_spill] sm:$0xff] %v6054_v49 }
 0x3c6   :  { %1511 = vmax.xlane.f32.xlu1 %v1510_v0  ;;  %v6037_v43 = vpop.f32.mrb[12].mxu1  ;;  %4469 = vmatpush3.bf16.msra.mxu1 %v641_v38 }
 0x3c7   :  { %v6039_v41 = vpop.f32.mrb[13].mxu1  ;;  %4494 = vmatprep.subr.bf16.mxu1 %v6035_v40  ;;  %v1525_v18 = vsel %vm63_vm0, %v6037_v43, -inf }
 0x3c8   :  { %v6044_v19 = vpop.f32.mrb[14].mxu1  ;;  %1526 = vmax.xlane.f32.xlu0 %v1525_v18  ;;  %v1519_v48 = vsel %vm63_vm0, %v6039_v41, -inf  ;;  %v6056_v50 = vpop.permute.xlu1 %646 }
 0x3c9   :  { %v6046_v46 = vpop.f32.mrb[15].mxu1  ;;  %v1528_v24 = vsel %vm63_vm0, %v6044_v19, -inf  ;;  %7383 = vst [vmem:[#allocation6_spill] sm:$0xff] %v6056_v50 }
 0x3ca   :  { %1529 = vmax.xlane.f32.xlu1 %v1528_v24  ;;  %v1522_v31 = vsel %vm63_vm0, %v6046_v46, -inf }
 0x3cc   :  { %1520 = vmax.xlane.f32.xlu0 %v1519_v48  ;;  %v6058_v51 = vpop.permute.xlu1 %662  ;;  %v6142_v48 = vpop.permute.xlu0 %672 }
 0x3cd   :  { %7384 = vst [vmem:[#allocation7_spill] sm:$0xff] %v6058_v51  ;;  %7396 = vst [vmem:[#allocation19_spill] sm:$0xff] %v6142_v48 }
 0x3ce   :  { %1523 = vmax.xlane.f32.xlu1 %v1522_v31 }
 0x3d0   :  { %v6060_v44 = vpop.permute.xlu1 %664 }
 0x3d1   :  { %7385 = vst [vmem:[#allocation8_spill] sm:$0xff] %v6060_v44 }
 0x3d4   :  { %v6064_v10 = vpop.permute.xlu1 %666 }
 0x3d5   :  { %7386 = vst [vmem:[#allocation9_spill] sm:$0xff] %v6064_v10 }
 0x3d8   :  { %v6078_v59 = vpop.permute.xlu1 %682 }
 0x3d9   :  { %7387 = vst [vmem:[#allocation10_spill] sm:$0xff] %v6078_v59 }
 0x3dc   :  { %v6094_v17 = vpop.permute.xlu1 %684 }
 0x3dd   :  { %7388 = vst [vmem:[#allocation11_spill] sm:$0xff] %v6094_v17 }
 0x3e0   :  { %v6100_v21 = vpop.permute.xlu1 %670 }
 0x3e1   :  { %7389 = vst [vmem:[#allocation12_spill] sm:$0xff] %v6100_v21 }
 0x3e4   :  { %v6116_v54 = vpop.permute.xlu1 %686 }
 0x3e5   :  { %7391 = vst [vmem:[#allocation14_spill] sm:$0xff] %v6116_v54 }
 0x3e8   :  { %v6126_v26 = vpop.permute.xlu1 %688 }
 0x3e9   :  { %7393 = vst [vmem:[#allocation16_spill] sm:$0xff] %v6126_v26 }
 0x3ec   :  { %v6132_v38 = vpop.permute.xlu1 %690 }
 0x3ed   :  { %7395 = vst [vmem:[#allocation18_spill] sm:$0xff] %v6132_v38 }
 0x400   :  { %v6062_v11 = vpop.f32.mrb[32].mxu0 }
 0x401   :  { %v6066_v29 = vpop.f32.mrb[33].mxu0  ;;  %v1537_v52 = vsel %vm63_vm0, %v6062_v11, -inf }
 0x402   :  { %v6070_v53 = vpop.f32.mrb[34].mxu0  ;;  %1538 = vmax.xlane.f32.xlu0 %v1537_v52  ;;  %v1531_v58 = vsel %vm63_vm0, %v6066_v29, -inf }
 0x403   :  { %v6072_v56 = vpop.f32.mrb[35].mxu0  ;;  %v1540_v57 = vsel %vm63_vm0, %v6070_v53, -inf }
 0x404   :  { %1541 = vmax.xlane.f32.xlu1 %v1540_v57  ;;  %v1534_v60 = vsel %vm63_vm0, %v6072_v56, -inf }
 0x406   :  { %1532 = vmax.xlane.f32.xlu0 %v1531_v58  ;;  %v6150_v58 = vpop.permute.xlu1 %692 }
 0x407   :  { %7397 = vst [vmem:[#allocation20_spill] sm:$0xff] %v6150_v58 }
 0x408   :  { %1535 = vmax.xlane.f32.xlu1 %v1534_v60  ;;  %v6082_v61 = vpop.f32.mrb[36].mxu0 }
 0x409   :  { %v6084_v37 = vpop.f32.mrb[37].mxu0  ;;  %v1549_v23 = vsel %vm63_vm0, %v6082_v61, -inf }
 0x40a   :  { %v6088_v42 = vpop.f32.mrb[38].mxu0  ;;  %1550 = vmax.xlane.f32.xlu0 %v1549_v23  ;;  %v1543_v4 = vsel %vm63_vm0, %v6084_v37, -inf }
 0x40b   :  { %v6090_v45 = vpop.f32.mrb[39].mxu0  ;;  %v1552_v28 = vsel %vm63_vm0, %v6088_v42, -inf }
 0x40c   :  { %1553 = vmax.xlane.f32.xlu1 %v1552_v28  ;;  %v1546_v6 = vsel %vm63_vm0, %v6090_v45, -inf }
 0x40e   :  { %1544 = vmax.xlane.f32.xlu0 %v1543_v4 }
 0x410   :  { %1547 = vmax.xlane.f32.xlu1 %v1546_v6 }
 0x414   :  { %v6102_v7 = vpop.f32.mrb[16].mxu1 }
 0x415   :  { %v6104_v12 = vpop.f32.mrb[17].mxu1  ;;  %v1561_v25 = vsel %vm63_vm0, %v6102_v7, -inf }
 0x416   :  { %v6110_v55 = vpop.f32.mrb[18].mxu1  ;;  %1562 = vmax.xlane.f32.xlu0 %v1561_v25  ;;  %v1555_v57 = vsel %vm63_vm0, %v6104_v12, -inf }
 0x417   :  { %v6112_v15 = vpop.f32.mrb[19].mxu1  ;;  %v1564_v47 = vsel %vm63_vm0, %v6110_v55, -inf }
 0x418   :  { %1565 = vmax.xlane.f32.xlu1 %v1564_v47  ;;  %v1558_v60 = vsel %vm63_vm0, %v6112_v15, -inf }
 0x41c   :  { %v6120_v22 = vpop.f32.mrb[20].mxu1 }
 0x41d   :  { %v6122_v16 = vpop.f32.mrb[21].mxu1 }
 0x41e   :  { %v6124_v62 = vpop.f32.mrb[22].mxu1 }
 0x41f   :  { %v6128_v33 = vpop.f32.mrb[23].mxu1  ;;  %v1576_v26 = vsel %vm63_vm0, %v6124_v62, -inf }
 0x425   :  { %v6134_v39 = vpop.f32.mrb[40].mxu0 }
 0x426   :  { %v6136_v0 = vpop.f32.mrb[41].mxu0  ;;  %v1585_v18 = vsel %vm63_vm0, %v6134_v39, -inf }
 0x427   :  { %1586 = vmax.xlane.f32.xlu0 %v1585_v18  ;;  %v6140_v24 = vpop.f32.mrb[42].mxu0  ;;  %v1579_v25 = vsel %vm63_vm0, %v6136_v0, -inf }
 0x428   :  { %v6144_v31 = vpop.f32.mrb[43].mxu0  ;;  %v1588_v52 = vsel %vm63_vm0, %v6140_v24, -inf }
 0x429   :  { %1589 = vmax.xlane.f32.xlu1 %v1588_v52 }
 0x42b   :  { %1556 = vmax.xlane.f32.xlu0 %v1555_v57  ;;  %v1582_v57 = vsel %vm63_vm0, %v6144_v31, -inf }
 0x42c   :  { %v1491_v23 = vpop.xlane.xlu0 %1490 }
 0x42d   :  { %1559 = vmax.xlane.f32.xlu1 %v1558_v60  ;;  %v6154_v28 = vpop.f32.mrb[44].mxu0  ;;  %v1677_v4 = vsub.f32 %v5958_v63, %v1491_v23  ;;  %v1573_v63 = vsel %vm63_vm0, %v6120_v22, -inf }
 0x42e   :  { %v6157_v6 = vpop.f32.mrb[45].mxu0 }
 0x42f   :  { %1580 = vmax.xlane.f32.xlu0 %v1579_v25  ;;  %v6161_v47 = vpop.f32.mrb[46].mxu0  ;;  %v1488_v18 = vpop.xlane.xlu1 %1487  ;;  %v1743_v60 = vmul.f32 1.442695, %v1677_v4 }
 0x430   :  { %v6163_v52 = vpop.f32.mrb[47].mxu0  ;;  %v1485_v58 = vpop.xlane.xlu0 %1484  ;;  %v1676_v23 = vsub.f32 %v5967_v5, %v1488_v18 }
 0x431   :  { %1583 = vmax.xlane.f32.xlu1 %v1582_v57  ;;  %v1675_v38 = vsub.f32 %v5960_v2, %v1485_v58  ;;  %4854 = vpow2.f32 %v1743_v60  ;;  %v1597_v2 = vsel %vm63_vm0, %v6154_v28, -inf }
 0x432   :  { %v1741_v58 = vmul.f32 1.442695, %v1676_v23 }
 0x433   :  { %1574 = vmax.xlane.f32.xlu0 %v1573_v63  ;;  %v1739_v25 = vmul.f32 1.442695, %v1675_v38 }
 0x434   :  { %v1494_v54 = vpop.xlane.xlu0 %1493 }
 0x435   :  { %1577 = vmax.xlane.f32.xlu1 %v1576_v26  ;;  %v1678_v48 = vsub.f32 %v5965_v3, %v1494_v54  ;;  %4856 = vpow2.f32 %v1739_v25  ;;  %v1600_v26 = vsel %vm63_vm0, %v6161_v47, -inf  ;;  %v1570_v25 = vsel %vm63_vm0, %v6128_v33, -inf }
 0x436   :  { %v6174_v17 = vpop.f32.mrb[24].mxu1  ;;  %v1506_v4 = vpop.xlane.xlu1 %1505 }
 0x437   :  { %v1745_v57 = vmul.f32 1.442695, %v1678_v48  ;;  %v6178_v21 = vpop.f32.mrb[25].mxu1  ;;  %v1682_v5 = vsub.f32 %v5987_v13, %v1506_v4  ;;  %1598 = vmax.xlane.f32.xlu0 %v1597_v2  ;;  %v1567_v48 = vsel %vm63_vm0, %v6122_v16, -inf }
 0x438   :  { %7398 = vst [vmem:[#allocation21_spill] sm:$0xff] %v6178_v21  ;;  %v6181_v38 = vpop.f32.mrb[26].mxu1  ;;  %v1503_v3 = vpop.xlane.xlu0 %1502 }
 0x439   :  { %4858 = vpow2.f32 %v1745_v57  ;;  %v6185_v54 = vpop.f32.mrb[27].mxu1  ;;  %1601 = vmax.xlane.f32.xlu1 %v1600_v26  ;;  %v1681_v18 = vsub.f32 %v5977_v35, %v1503_v3  ;;  %v1753_v13 = vmul.f32 1.442695, %v1682_v5  ;;  %v1591_v35 = vsel %vm63_vm0, %v6157_v6, -inf }
 0x43a   :  { %7399 = vst [vmem:[#allocation22_spill] sm:$0xff] %v6185_v54  ;;  %v1500_v60 = vpop.xlane.xlu1 %1499  ;;  %4860 = vpow2.f32 %v1741_v58  ;;  %v1606_v10 = vsel %vm63_vm0, %v6185_v54, -inf }
 0x43b   :  { %v1751_v63 = vmul.f32 1.442695, %v1681_v18  ;;  %v1680_v23 = vsub.f32 %v5989_v14, %v1500_v60  ;;  %1568 = vmax.xlane.f32.xlu0 %v1567_v48  ;;  %v6198_v26 = vpop.eup %4854  ;;  %v1594_v18 = vsel %vm63_vm0, %v6163_v52, -inf }
 0x43c   :  { %v1497_v4 = vpop.xlane.xlu0 %1496  ;;  %v1873_v48 = vsel %vm63_vm0, %v6198_v26, 0.0 }
 0x43d   :  { %4862 = vpow2.f32 %v1751_v63  ;;  %1571 = vmax.xlane.f32.xlu1 %v1570_v25  ;;  %v1679_v2 = vsub.f32 %v5982_v8, %v1497_v4  ;;  %v1749_v58 = vmul.f32 1.442695, %v1680_v23 }
 0x43e   :  { %v6194_v57 = vpop.f32.mrb[28].mxu1  ;;  %4864 = vpow2.f32 %v1753_v13 }
 0x43f   :  { %v1747_v5 = vmul.f32 1.442695, %v1679_v2  ;;  %v6200_v14 = vpop.f32.mrb[29].mxu1  ;;  %1592 = vmax.xlane.f32.xlu0 %v1591_v35  ;;  %v6208_v60 = vpop.eup %4856 }
 0x440   :  { %v6202_v3 = vpop.f32.mrb[30].mxu1  ;;  %v1867_v25 = vsel %vm63_vm0, %v6208_v60, 0.0 }
 0x441   :  { %4866 = vpow2.f32 %v1747_v5  ;;  %v6206_v8 = vpop.f32.mrb[31].mxu1  ;;  %1595 = vmax.xlane.f32.xlu1 %v1594_v18 }
 0x442   :  { %7400 = vst [vmem:[#allocation23_spill] sm:$0xff] %v6206_v8  ;;  %4868 = vpow2.f32 %v1749_v58 }
 0x443   :  { %v6212_v13 = vpop.eup %4858  ;;  %1874 = vadd.xlane.f32.xlu0 %v1873_v48 }
 0x444   :  { %v1876_v63 = vsel %vm63_vm0, %v6212_v13, 0.0  ;;  %v6216_v23 = vpop.eup %4860 }
 0x445   :  { %1877 = vadd.xlane.f32.xlu1 %v1876_v63  ;;  %v1870_v2 = vsel %vm63_vm0, %v6216_v23, 0.0 }
 0x447   :  { %v6220_v4 = vpop.eup %4862  ;;  %1868 = vadd.xlane.f32.xlu0 %v1867_v25 }
 0x448   :  { %v1885_v35 = vsel %vm63_vm0, %v6220_v4, 0.0  ;;  %v6226_v58 = vpop.eup %4864 }
 0x449   :  { %1871 = vadd.xlane.f32.xlu1 %v1870_v2  ;;  %v1888_v18 = vsel %vm63_vm0, %v6226_v58, 0.0  ;;  %v1609_v2 = vsel %vm63_vm0, %v6174_v17, -inf }
 0x44b   :  { %v6228_v5 = vpop.eup %4866  ;;  %1886 = vadd.xlane.f32.xlu0 %v1885_v35  ;;  %v1612_v35 = vsel %vm63_vm0, %v6181_v38, -inf }
 0x44c   :  { %v1879_v48 = vsel %vm63_vm0, %v6228_v5, 0.0  ;;  %v6234_v63 = vpop.eup %4868 }
 0x44d   :  { %1889 = vadd.xlane.f32.xlu1 %v1888_v18  ;;  %v1882_v25 = vsel %vm63_vm0, %v6234_v63, 0.0  ;;  %v1515_v32 = vpop.xlane.xlu0 %1514 }
 0x44e   :  { %v1685_v34 = vsub.f32 %v6015_v27, %v1515_v32 }
 0x44f   :  { %1880 = vadd.xlane.f32.xlu0 %v1879_v48  ;;  %v1518_v44 = vpop.xlane.xlu1 %1517 }
 0x450   :  { %v1759_v27 = vmul.f32 1.442695, %v1685_v34 }
 0x451   :  { %1883 = vadd.xlane.f32.xlu1 %v1882_v25  ;;  %v1509_v49 = vpop.xlane.xlu0 %1508 }
 0x452   :  { %v1683_v32 = vsub.f32 %v6017_v30, %v1509_v49  ;;  %4870 = vpow2.f32 %v1759_v27 }
 0x453   :  { %1610 = vmax.xlane.f32.xlu0 %v1609_v2  ;;  %v1512_v40 = vpop.xlane.xlu1 %1511 }
 0x455   :  { %1613 = vmax.xlane.f32.xlu1 %v1612_v35  ;;  %v1603_v35 = vsel %vm63_vm0, %v6178_v21, -inf }
 0x477   :  { %v6242_v59 = vpop.f32.mrb[48].mxu0 }
 0x478   :  { %7401 = vst [vmem:[#allocation24_spill] sm:$0xff] %v6242_v59  ;;  %v6244_v51 = vpop.f32.mrb[49].mxu0  ;;  %v1633_v18 = vsel %vm63_vm0, %v6242_v59, -inf  ;;  %v1621_v59 = vsel %vm63_vm0, %v6194_v57, -inf }
 0x479   :  { %7402 = vst [vmem:[#allocation25_spill] sm:$0xff] %v6244_v51  ;;  %v6248_v48 = vpop.f32.mrb[50].mxu0  ;;  %1634 = vmax.xlane.f32.xlu0 %v1633_v18  ;;  %v1627_v9 = vsel %vm63_vm0, %v6244_v51, -inf }
 0x47a   :  { %7403 = vst [vmem:[#allocation26_spill] sm:$0xff] %v6248_v48  ;;  %v6250_v25 = vpop.f32.mrb[51].mxu0  ;;  %v1636_v2 = vsel %vm63_vm0, %v6248_v48, -inf }
 0x47b   :  { %1637 = vmax.xlane.f32.xlu1 %v1636_v2  ;;  %v1686_v2 = vsub.f32 %v6023_v1, %v1518_v44  ;;  %v1630_v54 = vsel %vm63_vm0, %v6250_v25, -inf  ;;  %v1684_v1 = vsub.f32 %v6025_v36, %v1512_v40  ;;  %v1624_v44 = vsel %vm63_vm0, %v6202_v3, -inf }
 0x47d   :  { %1604 = vmax.xlane.f32.xlu0 %v1603_v35  ;;  %v1527_v35 = vpop.xlane.xlu0 %1526  ;;  %v1761_v51 = vmul.f32 1.442695, %v1686_v2  ;;  %v1757_v49 = vmul.f32 1.442695, %v1684_v1 }
 0x47e   :  { %v1689_v20 = vsub.f32 %v6037_v43, %v1527_v35  ;;  %v1615_v35 = vsel %vm63_vm0, %v6200_v14, -inf }
 0x47f   :  { %v6259_v50 = vpop.f32.mrb[52].mxu0  ;;  %1607 = vmax.xlane.f32.xlu1 %v1606_v10  ;;  %v1530_v10 = vpop.xlane.xlu1 %1529  ;;  %4872 = vpow2.f32 %v1761_v51 }
 0x480   :  { %v6261_v18 = vpop.f32.mrb[53].mxu0  ;;  %v1645_v30 = vsel %vm63_vm0, %v6259_v50, -inf  ;;  %v1767_v40 = vmul.f32 1.442695, %v1689_v20  ;;  %v1618_v20 = vsel %vm63_vm0, %v6206_v8, -inf }
 0x481   :  { %7404 = vst [vmem:[#allocation27_spill] sm:$0xff] %v6261_v18  ;;  %v6266_v48 = vpop.f32.mrb[54].mxu0  ;;  %1628 = vmax.xlane.f32.xlu0 %v1627_v9  ;;  %v1755_v9 = vmul.f32 1.442695, %v1683_v32  ;;  %v1521_v34 = vpop.xlane.xlu0 %1520  ;;  %v1639_v1 = vsel %vm63_vm0, %v6261_v18, -inf }
 0x482   :  { %v6268_v21 = vpop.f32.mrb[55].mxu0  ;;  %v1648_v36 = vsel %vm63_vm0, %v6266_v48, -inf }
 0x483   :  { %7405 = vst [vmem:[#allocation28_spill] sm:$0xff] %v6268_v21  ;;  %1631 = vmax.xlane.f32.xlu1 %v1630_v54  ;;  %v1690_v54 = vsub.f32 %v6044_v19, %v1530_v10  ;;  %v1524_v2 = vpop.xlane.xlu1 %1523  ;;  %4874 = vpow2.f32 %v1755_v9  ;;  %v1642_v9 = vsel %vm63_vm0, %v6268_v21, -inf }
 0x484   :  { %4876 = vpow2.f32 %v1757_v49  ;;  %v1688_v27 = vsub.f32 %v6046_v46, %v1524_v2 }
 0x485   :  { %1622 = vmax.xlane.f32.xlu0 %v1621_v59  ;;  %v1687_v59 = vsub.f32 %v6039_v41, %v1521_v34  ;;  %v1769_v51 = vmul.f32 1.442695, %v1690_v54  ;;  %4878 = vpow2.f32 %v1767_v40 }
 0x486   :  { %v1765_v46 = vmul.f32 1.442695, %v1688_v27 }
 0x487   :  { %1625 = vmax.xlane.f32.xlu1 %v1624_v44  ;;  %v1763_v41 = vmul.f32 1.442695, %v1687_v59  ;;  %v6300_v44 = vpop.eup %4870  ;;  %4880 = vpow2.f32 %v1769_v51 }
 0x488   :  { %7406 = vst [vmem:[#allocation29_spill] sm:$0xff] %v6300_v44  ;;  %v1897_v49 = vsel %vm63_vm0, %v6300_v44, 0.0 }
 0x489   :  { %1646 = vmax.xlane.f32.xlu0 %v1645_v30  ;;  %v6304_v34 = vpop.eup %4872  ;;  %4882 = vpow2.f32 %v1763_v41 }
 0x48a   :  { %7407 = vst [vmem:[#allocation30_spill] sm:$0xff] %v6304_v34  ;;  %4884 = vpow2.f32 %v1765_v46  ;;  %v1900_v59 = vsel %vm63_vm0, %v6304_v34, 0.0 }
 0x48b   :  { %1649 = vmax.xlane.f32.xlu1 %v1648_v36 }
 0x48c   :  { %v6285_v43 = vpop.f32.mrb[32].mxu1 }
 0x48d   :  { %v6290_v19 = vpop.f32.mrb[33].mxu1  ;;  %1616 = vmax.xlane.f32.xlu0 %v1615_v35  ;;  %v6310_v54 = vpop.eup %4874  ;;  %v1657_v8 = vsel %vm63_vm0, %v6285_v43, -inf }
 0x48e   :  { %v6292_v32 = vpop.f32.mrb[34].mxu1  ;;  %7408 = vst [vmem:[#allocation31_spill] sm:$0xff] %v6310_v54  ;;  %v6318_v35 = vpop.eup %4876 }
 0x48f   :  { %v6296_v10 = vpop.f32.mrb[35].mxu1  ;;  %1619 = vmax.xlane.f32.xlu1 %v1618_v20  ;;  %v1539_v36 = vpop.xlane.xlu0 %1538  ;;  %7409 = vst [vmem:[#allocation32_spill] sm:$0xff] %v6318_v35  ;;  %v1891_v20 = vsel %vm63_vm0, %v6310_v54, 0.0 }
 0x490   :  { %v6324_v41 = vpop.eup %4878 }
 0x491   :  { %1640 = vmax.xlane.f32.xlu0 %v1639_v1  ;;  %v1542_v27 = vpop.xlane.xlu1 %1541  ;;  %7410 = vst [vmem:[#allocation33_spill] sm:$0xff] %v6324_v41  ;;  %v1894_v1 = vsel %vm63_vm0, %v6318_v35, 0.0  ;;  %v6328_v46 = vpop.eup %4880 }
 0x492   :  { %7411 = vst [vmem:[#allocation34_spill] sm:$0xff] %v6328_v46  ;;  %v1912_v54 = vsel %vm63_vm0, %v6328_v46, 0.0 }
 0x493   :  { %1643 = vmax.xlane.f32.xlu1 %v1642_v9  ;;  %v1533_v9 = vpop.xlane.xlu0 %1532  ;;  %v6332_v44 = vpop.eup %4882 }
 0x494   :  { %v6306_v30 = vpop.f32.mrb[36].mxu1  ;;  %v6336_v34 = vpop.eup %4884  ;;  %v1903_v35 = vsel %vm63_vm0, %v6332_v44, 0.0  ;;  %v1691_v18 = vsub.f32 %v6066_v29, %v1533_v9  ;;  %v1651_v29 = vsel %vm63_vm0, %v6290_v19, -inf }
 0x495   :  { %v6312_v2 = vpop.f32.mrb[37].mxu1  ;;  %1898 = vadd.xlane.f32.xlu0 %v1897_v49  ;;  %v1909_v49 = vsel %vm63_vm0, %v6324_v41, 0.0  ;;  %v1906_v41 = vsel %vm63_vm0, %v6336_v34, 0.0 }
 0x496   :  { %v6314_v40 = vpop.f32.mrb[38].mxu1 }
 0x497   :  { %v6320_v51 = vpop.f32.mrb[39].mxu1  ;;  %1901 = vadd.xlane.f32.xlu1 %v1900_v59  ;;  %v1536_v59 = vpop.xlane.xlu1 %1535 }
 0x498   :  { %v1551_v21 = vpop.xlane.xlu0 %1550 }
 0x499   :  { %1892 = vadd.xlane.f32.xlu0 %v1891_v20  ;;  %v1693_v20 = vsub.f32 %v6062_v11, %v1539_v36  ;;  %v1771_v36 = vmul.f32 1.442695, %v1691_v18 }
 0x49b   :  { %1895 = vadd.xlane.f32.xlu1 %v1894_v1  ;;  %v1694_v1 = vsub.f32 %v6070_v53, %v1542_v27  ;;  %v1554_v46 = vpop.xlane.xlu1 %1553  ;;  %v1660_v53 = vsel %vm63_vm0, %v6292_v32, -inf }
 0x49c   :  { %v1545_v27 = vpop.xlane.xlu0 %1544  ;;  %v1698_v9 = vsub.f32 %v6088_v42, %v1554_v46  ;;  %v1672_v42 = vsel %vm63_vm0, %v6314_v40, -inf }
 0x49d   :  { %1910 = vadd.xlane.f32.xlu0 %v1909_v49  ;;  %v1775_v49 = vmul.f32 1.442695, %v1693_v20  ;;  %v1777_v11 = vmul.f32 1.442695, %v1694_v1  ;;  %v1695_v18 = vsub.f32 %v6084_v37, %v1545_v27  ;;  %v1663_v37 = vsel %vm63_vm0, %v6312_v2, -inf }
 0x49f   :  { %1913 = vadd.xlane.f32.xlu1 %v1912_v54  ;;  %v1692_v54 = vsub.f32 %v6072_v56, %v1536_v59  ;;  %4886 = vpow2.f32 %v1775_v49  ;;  %v1548_v20 = vpop.xlane.xlu1 %1547  ;;  %v1654_v56 = vsel %vm63_vm0, %v6296_v10, -inf  ;;  %v1779_v46 = vmul.f32 1.442695, %v1695_v18 }
 0x4a0   :  { %4888 = vpow2.f32 %v1777_v11  ;;  %v1696_v59 = vsub.f32 %v6090_v45, %v1548_v20  ;;  %v1666_v45 = vsel %vm63_vm0, %v6320_v51, -inf }
 0x4a1   :  { %1904 = vadd.xlane.f32.xlu0 %v1903_v35  ;;  %v1697_v35 = vsub.f32 %v6082_v61, %v1551_v21  ;;  %4890 = vpow2.f32 %v1771_v36  ;;  %v1669_v61 = vsel %vm63_vm0, %v6306_v30, -inf  ;;  %v1785_v21 = vmul.f32 1.442695, %v1698_v9 }
 0x4a3   :  { %1907 = vadd.xlane.f32.xlu1 %v1906_v41  ;;  %v1773_v41 = vmul.f32 1.442695, %v1692_v54  ;;  %v1563_v1 = vpop.xlane.xlu0 %1562  ;;  %v1781_v54 = vmul.f32 1.442695, %v1696_v59 }
 0x4a4   :  { %v1701_v49 = vsub.f32 %v6102_v7, %v1563_v1 }
 0x4a5   :  { %1658 = vmax.xlane.f32.xlu0 %v1657_v8  ;;  %v1783_v8 = vmul.f32 1.442695, %v1697_v35  ;;  %4892 = vpow2.f32 %v1773_v41 }
 0x4a6   :  { %v1791_v35 = vmul.f32 1.442695, %v1701_v49 }
 0x4a7   :  { %1661 = vmax.xlane.f32.xlu1 %v1660_v53  ;;  %4894 = vpow2.f32 %v1783_v8  ;;  %v1566_v53 = vpop.xlane.xlu1 %1565 }
 0x4a8   :  { %4896 = vpow2.f32 %v1785_v21  ;;  %v1702_v49 = vsub.f32 %v6110_v55, %v1566_v53 }
 0x4a9   :  { %1652 = vmax.xlane.f32.xlu0 %v1651_v29  ;;  %v6365_v11 = vpop.eup %4886  ;;  %4898 = vpow2.f32 %v1779_v46 }
 0x4aa   :  { %v6369_v36 = vpop.eup %4888  ;;  %v1921_v7 = vsel %vm63_vm0, %v6365_v11, 0.0  ;;  %4900 = vpow2.f32 %v1781_v54 }
 0x4ab   :  { %1655 = vmax.xlane.f32.xlu1 %v1654_v56  ;;  %v6373_v29 = vpop.eup %4890  ;;  %v1924_v20 = vsel %vm63_vm0, %v6369_v36, 0.0  ;;  %4902 = vpow2.f32 %v1791_v35 }
 0x4ad   :  { %1670 = vmax.xlane.f32.xlu0 %v1669_v61  ;;  %v1915_v61 = vsel %vm63_vm0, %v6373_v29, 0.0 }
 0x4af   :  { %1673 = vmax.xlane.f32.xlu1 %v1672_v42  ;;  %v6378_v56 = vpop.eup %4892 }
 0x4b0   :  { %v1918_v1 = vsel %vm63_vm0, %v6378_v56, 0.0 }
 0x4b1   :  { %1664 = vmax.xlane.f32.xlu0 %v1663_v37  ;;  %v6382_v21 = vpop.eup %4894 }
 0x4b2   :  { %v6387_v42 = vpop.eup %4896  ;;  %v1933_v54 = vsel %vm63_vm0, %v6382_v21, 0.0 }
 0x4b3   :  { %1667 = vmax.xlane.f32.xlu1 %v1666_v45  ;;  %v6392_v45 = vpop.eup %4898 }
 0x4b4   :  { %v1587_v27 = vpop.xlane.xlu0 %1586 }
 0x4b5   :  { %v1709_v41 = vsub.f32 %v6134_v39, %v1587_v27  ;;  %1922 = vadd.xlane.f32.xlu0 %v1921_v7  ;;  %v1936_v27 = vsel %vm63_vm0, %v6387_v42, 0.0  ;;  %v6397_v7 = vpop.eup %4900 }
 0x4b6   :  { %v1590_v9 = vpop.xlane.xlu1 %1589 }
 0x4b7   :  { %v1807_v8 = vmul.f32 1.442695, %v1709_v41  ;;  %1925 = vadd.xlane.f32.xlu1 %v1924_v20  ;;  %v1793_v20 = vmul.f32 1.442695, %v1702_v49  ;;  %v1710_v55 = vsub.f32 %v6140_v24, %v1590_v9 }
 0x4b8   :  { %v1557_v18 = vpop.xlane.xlu0 %1556 }
 0x4b9   :  { %4904 = vpow2.f32 %v1807_v8  ;;  %v1699_v59 = vsub.f32 %v6104_v12, %v1557_v18  ;;  %1916 = vadd.xlane.f32.xlu0 %v1915_v61  ;;  %v1927_v8 = vsel %vm63_vm0, %v6392_v45, 0.0  ;;  %v1809_v24 = vmul.f32 1.442695, %v1710_v55 }
 0x4ba   :  { %v1560_v39 = vpop.xlane.xlu1 %1559 }
 0x4bb   :  { %v1787_v46 = vmul.f32 1.442695, %v1699_v59  ;;  %1919 = vadd.xlane.f32.xlu1 %v1918_v1  ;;  %v1930_v59 = vsel %vm63_vm0, %v6397_v7, 0.0 }
 0x4bc   :  { %v1581_v37 = vpop.xlane.xlu0 %1580 }
 0x4bd   :  { %4906 = vpow2.f32 %v1787_v46  ;;  %v1707_v12 = vsub.f32 %v6136_v0, %v1581_v37  ;;  %1934 = vadd.xlane.f32.xlu0 %v1933_v54  ;;  %v6403_v0 = vpop.eup %4902  ;;  %v1700_v37 = vsub.f32 %v6112_v15, %v1560_v39 }
 0x4be   :  { %v1584_v35 = vpop.xlane.xlu1 %1583 }
 0x4bf   :  { %v1803_v41 = vmul.f32 1.442695, %v1707_v12  ;;  %1937 = vadd.xlane.f32.xlu1 %v1936_v27  ;;  %v1945_v12 = vsel %vm63_vm0, %v6403_v0, 0.0 }
 0x4c0   :  { %v1575_v53 = vpop.xlane.xlu0 %1574 }
 0x4c1   :  { %4908 = vpow2.f32 %v1803_v41  ;;  %v1705_v18 = vsub.f32 %v6120_v22, %v1575_v53  ;;  %1928 = vadd.xlane.f32.xlu0 %v1927_v8  ;;  %v1708_v41 = vsub.f32 %v6144_v31, %v1584_v35  ;;  %v1789_v8 = vmul.f32 1.442695, %v1700_v37 }
 0x4c2   :  { %v1578_v61 = vpop.xlane.xlu1 %1577  ;;  %4910 = vpow2.f32 %v1793_v20 }
 0x4c3   :  { %v6407_v1 = vpop.eup %4904  ;;  %v1799_v46 = vmul.f32 1.442695, %v1705_v18  ;;  %1931 = vadd.xlane.f32.xlu1 %v1930_v59  ;;  %v1706_v55 = vsub.f32 %v6124_v62, %v1578_v61  ;;  %v1805_v59 = vmul.f32 1.442695, %v1708_v41 }
 0x4c4   :  { %v1599_v9 = vpop.xlane.xlu0 %1598  ;;  %v1969_v49 = vsel %vm63_vm0, %v6407_v1, 0.0 }
 0x4c5   :  { %4912 = vpow2.f32 %v1799_v46  ;;  %v1713_v22 = vsub.f32 %v6154_v28, %v1599_v9  ;;  %1970 = vadd.xlane.f32.xlu0 %v1969_v49  ;;  %v1801_v31 = vmul.f32 1.442695, %v1706_v55 }
 0x4c6   :  { %v1602_v54 = vpop.xlane.xlu1 %1601  ;;  %4914 = vpow2.f32 %v1809_v24 }
 0x4c7   :  { %v6415_v27 = vpop.eup %4906  ;;  %v1815_v20 = vmul.f32 1.442695, %v1713_v22  ;;  %1946 = vadd.xlane.f32.xlu1 %v1945_v12  ;;  %v1714_v15 = vsub.f32 %v6161_v47, %v1602_v54 }
 0x4c8   :  { %v1569_v53 = vpop.xlane.xlu0 %1568  ;;  %v1939_v39 = vsel %vm63_vm0, %v6415_v27, 0.0 }
 0x4c9   :  { %4916 = vpow2.f32 %v1815_v20  ;;  %v1703_v46 = vsub.f32 %v6122_v16, %v1569_v53  ;;  %v1817_v24 = vmul.f32 1.442695, %v1714_v15 }
 0x4ca   :  { %v1572_v28 = vpop.xlane.xlu1 %1571  ;;  %4918 = vpow2.f32 %v1789_v8 }
 0x4cb   :  { %v6422_v18 = vpop.eup %4908  ;;  %1940 = vadd.xlane.f32.xlu1 %v1939_v39  ;;  %4920 = vpow2.f32 %v1805_v59  ;;  %v1795_v37 = vmul.f32 1.442695, %v1703_v46  ;;  %v1704_v12 = vsub.f32 %v6128_v33, %v1572_v28 }
 0x4cc   :  { %v1593_v35 = vpop.xlane.xlu0 %1592  ;;  %v6426_v61 = vpop.eup %4910  ;;  %v1963_v47 = vsel %vm63_vm0, %v6422_v18, 0.0  ;;  %4922 = vpow2.f32 %v1801_v31 }
 0x4cd   :  { %v1711_v62 = vsub.f32 %v6157_v6, %v1593_v35  ;;  %v1948_v20 = vsel %vm63_vm0, %v6426_v61, 0.0  ;;  %v1797_v39 = vmul.f32 1.442695, %v1704_v12 }
 0x4ce   :  { %v1596_v9 = vpop.xlane.xlu1 %1595 }
 0x4cf   :  { %v6430_v49 = vpop.eup %4912  ;;  %v1811_v22 = vmul.f32 1.442695, %v1711_v62  ;;  %1964 = vadd.xlane.f32.xlu1 %v1963_v47  ;;  %v1712_v53 = vsub.f32 %v6163_v52, %v1596_v9 }
 0x4d0   :  { %v1875_v16 = vpop.xlane.xlu0 %1874  ;;  %v1957_v54 = vsel %vm63_vm0, %v6430_v49, 0.0  ;;  %v6434_v6 = vpop.eup %4914 }
 0x4d1   :  { %4924 = vpow2.f32 %v1811_v22  ;;  %1958 = vadd.xlane.f32.xlu0 %v1957_v54  ;;  %v1972_v28 = vsel %vm63_vm0, %v6434_v6, 0.0  ;;  %v1813_v46 = vmul.f32 1.442695, %v1712_v53 }
 0x4d2   :  { %4926 = vpow2.f32 %v1817_v24  ;;  %v1878_v41 = vpop.xlane.xlu1 %1877 }
 0x4d3   :  { %v6439_v55 = vpop.eup %4916  ;;  %4928 = vpow2.f32 %v1795_v37  ;;  %1949 = vadd.xlane.f32.xlu1 %v1948_v20 }
 0x4d4   :  { %4930 = vrcp.f32 %v1878_v41  ;;  %v1869_v8 = vpop.xlane.xlu0 %1868  ;;  %v1981_v15 = vsel %vm63_vm0, %v6439_v55, 0.0  ;;  %v6446_v59 = vpop.eup %4918 }
 0x4d5   :  { %4932 = vrcp.f32 %v1869_v8  ;;  %1982 = vadd.xlane.f32.xlu0 %v1981_v15  ;;  %v6448_v31 = vpop.eup %4920  ;;  %v1942_v24 = vsel %vm63_vm0, %v6446_v59, 0.0 }
 0x4d6   :  { %4934 = vrcp.f32 %v1875_v16  ;;  %v1872_v33 = vpop.xlane.xlu1 %1871  ;;  %v6450_v35 = vpop.eup %4922  ;;  %v1966_v41 = vsel %vm63_vm0, %v6448_v31, 0.0 }
 0x4d7   :  { %4936 = vrcp.f32 %v1872_v33  ;;  %1973 = vadd.xlane.f32.xlu1 %v1972_v28  ;;  %v1960_v15 = vsel %vm63_vm0, %v6450_v35, 0.0 }
 0x4d8   :  { %v1887_v52 = vpop.xlane.xlu0 %1886  ;;  %4938 = vpow2.f32 %v1797_v39 }
 0x4d9   :  { %4940 = vpow2.f32 %v1813_v46 }
 0x4da   :  { %v1890_v62 = vpop.xlane.xlu1 %1889 }
 0x4db   :  { %v6454_v9 = vpop.eup %4924  ;;  %1943 = vadd.xlane.f32.xlu1 %v1942_v24  ;;  %4942 = vrcp.f32 %v1890_v62 }
 0x4dc   :  { %v6456_v47 = vpop.eup %4926  ;;  %v1881_v37 = vpop.xlane.xlu0 %1880  ;;  %v1975_v22 = vsel %vm63_vm0, %v6454_v9, 0.0 }
 0x4dd   :  { %v6460_v16 = vpop.eup %4928  ;;  %4944 = vrcp.f32 %v1881_v37  ;;  %1976 = vadd.xlane.f32.xlu0 %v1975_v22 }
 0x4de   :  { %v4931_v54 = vpop.eup %4930  ;;  %4946 = vrcp.f32 %v1887_v52  ;;  %v1884_v12 = vpop.xlane.xlu1 %1883  ;;  %v1951_v52 = vsel %vm63_vm0, %v6460_v16, 0.0 }
 0x4df   :  { %v4933_v20 = vpop.eup %4932  ;;  %4948 = vrcp.f32 %v1884_v12  ;;  %1967 = vadd.xlane.f32.xlu1 %v1966_v41  ;;  %v2126_v33 = vmul.f32 %v4931_v54, %v6212_v13 }
 0x4e0   :  { %v4935_v53 = vpop.eup %4934  ;;  %v1611_v8 = vpop.xlane.xlu0 %1610  ;;  %v2123_v62 = vmul.f32 %v4933_v20, %v6208_v60 }
 0x4e1   :  { %v4937_v39 = vpop.eup %4936  ;;  %v1717_v28 = vsub.f32 %v6174_v17, %v1611_v8  ;;  %1961 = vadd.xlane.f32.xlu0 %v1960_v15  ;;  %v2125_v37 = vmul.f32 %v4935_v53, %v6198_v26  ;;  %v1984_v17 = vsel %vm63_vm0, %v6456_v47, 0.0 }
 0x4e2   :  { %v1614_v46 = vpop.xlane.xlu1 %1613  ;;  %v2124_v24 = vmul.f32 %v4937_v39, %v6216_v23  ;;  %v6474_v41 = vpop.eup %4938  ;;  %v5206_v23 = vld [vmem:[#allocation2 + $0x48] sm:$0xff]  ;;  %v5207_v39 = vld [vmem:[#allocation2 + $0x58] sm:$0xff] }
 0x4e3   :  { %v1823_v22 = vmul.f32 1.442695, %v1717_v28  ;;  %v1718_v12 = vsub.f32 %v6181_v38, %v1614_v46  ;;  %1952 = vadd.xlane.f32.xlu1 %v1951_v52  ;;  %v6478_v54 = vpop.eup %4940  ;;  %v2188_v8 = vpack.c.bf16 %v2126_v33, %v2125_v37  ;;  %v1954_v20 = vsel %vm63_vm0, %v6474_v41, 0.0  ;;  %v6490_v37 = vld [vmem:[#allocation2 + $0x68] sm:$0xff] }
 0x4e4   :  { %v2187_v13 = vpack.c.bf16 %v2124_v24, %v2123_v62  ;;  %v1978_v62 = vsel %vm63_vm0, %v6478_v54, 0.0 }
 0x4e5   :  { %4950 = vpow2.f32 %v1823_v22  ;;  %v1825_v15 = vmul.f32 1.442695, %v1718_v12  ;;  %1985 = vadd.xlane.f32.xlu0 %v1984_v17  ;;  %v4943_v60 = vpop.eup %4942  ;;  %v7412_v17 = vld [vmem:[#allocation3_spill] sm:$0xff] }
 0x4e6   :  { %4438 = vmatprep.mubr.msk.bf16.mxu0 %vm63_vm0, %v2187_v13  ;;  %v2130_v33 = vmul.f32 %v4943_v60, %v6226_v58 }
 0x4e7   :  { %v4945_v26 = vpop.eup %4944  ;;  %4952 = vpow2.f32 %v1825_v15  ;;  %4439 = vmatmul.mubr.msk.bf16.vlgmr.msra.gmra.mrb[56].mxu0 %vm63_vm0, %v2188_v8  ;;  %v7413_v8 = vld [vmem:[#allocation24_spill] sm:$0xff] }
 0x4e8   :  { %v4947_v38 = vpop.eup %4946  ;;  %4447 = vmatpush3.bf16.msra.mxu0 %v5206_v23  ;;  %v2127_v28 = vmul.f32 %v4945_v26, %v6228_v5 }
 0x4e9   :  { %v4949_v53 = vpop.eup %4948  ;;  %1955 = vadd.xlane.f32.xlu0 %v1954_v20  ;;  %4448 = vmatprep.subr.bf16.mxu0 %v5207_v39  ;;  %v2129_v52 = vmul.f32 %v4947_v38, %v6220_v4  ;;  %v7414_v38 = vld [vmem:[#allocation26_spill] sm:$0xff] }
 0x4ea   :  { %v2128_v46 = vmul.f32 %v4949_v53, %v6234_v63  ;;  %v6502_v63 = vld [vmem:[#allocation2 + $0x78] sm:$0xff] }
 0x4eb   :  { %v2190_v22 = vpack.c.bf16 %v2130_v33, %v2129_v52  ;;  %v7416_v52 = vld [vmem:[#allocation22_spill] sm:$0xff] }
 0x4ec   :  { %4449 = vmatpush3.bf16.msra.mxu0 %v5207_v39  ;;  %v2189_v24 = vpack.c.bf16 %v2128_v46, %v2127_v28  ;;  %v7415_v39 = vld [vmem:[#allocation21_spill] sm:$0xff] }
 0x4ed   :  { %1979 = vadd.xlane.f32.xlu0 %v1978_v62  ;;  %4450 = vmatprep.subr.bf16.mxu0 %v6490_v37 }
 0x4ee   :  { %4442 = vmatprep.mubr.msk.bf16.mxu0 %vm63_vm0, %v2189_v24 }
 0x4ef   :  { %v6494_v58 = vpop.eup %4950  ;;  %4443 = vmatmul.mubr.msk.bf16.gmra.mrb[60].mxu0 %vm63_vm0, %v2190_v22 }
 0x4f0   :  { %4451 = vmatpush3.bf16.msra.mxu0 %v6490_v37  ;;  %v1993_v4 = vsel %vm63_vm0, %v6494_v58, 0.0 }
 0x4f1   :  { %v6500_v5 = vpop.eup %4952  ;;  %4452 = vmatprep.subr.bf16.mxu0 %v6502_v63  ;;  %1994 = vadd.xlane.f32.xlu0 %v1993_v4  ;;  %v7417_v4 = vld [vmem:[#allocation25_spill] sm:$0xff] }
 0x4f2   :  { %v1996_v12 = vsel %vm63_vm0, %v6500_v5, 0.0 }
 0x4f3   :  { %1997 = vadd.xlane.f32.xlu1 %v1996_v12 }
 0x4f4   :  { %4453 = vmatpush3.bf16.msra.mxu0 %v6502_v63 }
 0x4f5   :  { %4478 = vmatprep.subr.bf16.mxu0 %v7412_v17 }
 0x506   :  { %v1635_v13 = vpop.xlane.xlu0 %1634 }
 0x507   :  { %v1725_v15 = vsub.f32 %v7413_v8, %v1635_v13 }
 0x508   :  { %v1638_v60 = vpop.xlane.xlu1 %1637 }
 0x509   :  { %v1839_v26 = vmul.f32 1.442695, %v1725_v15  ;;  %v1726_v23 = vsub.f32 %v7414_v38, %v1638_v60 }
 0x50a   :  { %v1605_v20 = vpop.xlane.xlu0 %1604 }
 0x50b   :  { %4954 = vpow2.f32 %v1839_v26  ;;  %v1841_v53 = vmul.f32 1.442695, %v1726_v23  ;;  %v1715_v33 = vsub.f32 %v7415_v39, %v1605_v20 }
 0x50c   :  { %v1608_v28 = vpop.xlane.xlu1 %1607 }
 0x50d   :  { %4956 = vpow2.f32 %v1841_v53  ;;  %v1819_v46 = vmul.f32 1.442695, %v1715_v33  ;;  %v1716_v62 = vsub.f32 %v7416_v52, %v1608_v28 }
 0x50e   :  { %v1629_v24 = vpop.xlane.xlu0 %1628 }
 0x50f   :  { %4958 = vpow2.f32 %v1819_v46  ;;  %v1821_v22 = vmul.f32 1.442695, %v1716_v62  ;;  %v1723_v12 = vsub.f32 %v7417_v4, %v1629_v24 }
 0x510   :  { %v1632_v13 = vpop.xlane.xlu1 %1631 }
 0x511   :  { %4960 = vpow2.f32 %v1821_v22  ;;  %v1835_v8 = vmul.f32 1.442695, %v1723_v12  ;;  %v1724_v15 = vsub.f32 %v6250_v25, %v1632_v13 }
 0x512   :  { %v1623_v60 = vpop.xlane.xlu0 %1622 }
 0x513   :  { %4962 = vpow2.f32 %v1835_v8  ;;  %v1837_v26 = vmul.f32 1.442695, %v1724_v15  ;;  %v1721_v38 = vsub.f32 %v6194_v57, %v1623_v60 }
 0x514   :  { %v1626_v23 = vpop.xlane.xlu1 %1625 }
 0x515   :  { %v6516_v20 = vpop.eup %4954  ;;  %4964 = vpow2.f32 %v1837_v26  ;;  %v1831_v53 = vmul.f32 1.442695, %v1721_v38  ;;  %v1722_v39 = vsub.f32 %v6202_v3, %v1626_v23  ;;  %v7421_v38 = vld [vmem:[#allocation23_spill] sm:$0xff] }
 0x516   :  { %7418 = vst [vmem:[#allocation3_spill] sm:$0xff] %v6516_v20  ;;  %v1647_v33 = vpop.xlane.xlu0 %1646  ;;  %v2017_v28 = vsel %vm63_vm0, %v6516_v20, 0.0 }
 0x517   :  { %v6521_v46 = vpop.eup %4956  ;;  %v1833_v52 = vmul.f32 1.442695, %v1722_v39  ;;  %v1729_v25 = vsub.f32 %v6259_v50, %v1647_v33  ;;  %2018 = vadd.xlane.f32.xlu0 %v2017_v28  ;;  %4966 = vpow2.f32 %v1831_v53  ;;  %v7423_v28 = vld [vmem:[#allocation27_spill] sm:$0xff] }
 0x518   :  { %7419 = vst [vmem:[#allocation24_spill] sm:$0xff] %v6521_v46  ;;  %v1650_v62 = vpop.xlane.xlu1 %1649  ;;  %v2020_v57 = vsel %vm63_vm0, %v6521_v46, 0.0 }
 0x519   :  { %v6526_v24 = vpop.eup %4958  ;;  %4968 = vpow2.f32 %v1833_v52  ;;  %v1847_v22 = vmul.f32 1.442695, %v1729_v25  ;;  %v1730_v3 = vsub.f32 %v6266_v48, %v1650_v62  ;;  %2021 = vadd.xlane.f32.xlu1 %v2020_v57  ;;  %v7424_v57 = vld [vmem:[#allocation28_spill] sm:$0xff] }
 0x51a   :  { %v1617_v4 = vpop.xlane.xlu0 %1616  ;;  %v1987_v12 = vsel %vm63_vm0, %v6526_v24, 0.0 }
 0x51b   :  { %v6531_v13 = vpop.eup %4960  ;;  %v1849_v50 = vmul.f32 1.442695, %v1730_v3  ;;  %v1719_v8 = vsub.f32 %v6200_v14, %v1617_v4  ;;  %1988 = vadd.xlane.f32.xlu0 %v1987_v12  ;;  %4970 = vpow2.f32 %v1847_v22 }
 0x51c   :  { %v1620_v15 = vpop.xlane.xlu1 %1619  ;;  %v1990_v60 = vsel %vm63_vm0, %v6531_v13, 0.0 }
 0x51d   :  { %v6536_v26 = vpop.eup %4962  ;;  %4972 = vpow2.f32 %v1849_v50  ;;  %v1827_v48 = vmul.f32 1.442695, %v1719_v8  ;;  %v1720_v23 = vsub.f32 %v7421_v38, %v1620_v15  ;;  %1991 = vadd.xlane.f32.xlu1 %v1990_v60 }
 0x51e   :  { %7420 = vst [vmem:[#allocation26_spill] sm:$0xff] %v6536_v26  ;;  %v1641_v53 = vpop.xlane.xlu0 %1640  ;;  %v2011_v39 = vsel %vm63_vm0, %v6536_v26, 0.0 }
 0x51f   :  { %v6541_v33 = vpop.eup %4964  ;;  %v1829_v14 = vmul.f32 1.442695, %v1720_v23  ;;  %v1727_v52 = vsub.f32 %v7423_v28, %v1641_v53  ;;  %2012 = vadd.xlane.f32.xlu0 %v2011_v39  ;;  %4974 = vpow2.f32 %v1827_v48 }
 0x520   :  { %7422 = vst [vmem:[#allocation21_spill] sm:$0xff] %v6541_v33  ;;  %v1644_v25 = vpop.xlane.xlu1 %1643  ;;  %v2014_v12 = vsel %vm63_vm0, %v6541_v33, 0.0 }
 0x521   :  { %4976 = vpow2.f32 %v1829_v14  ;;  %v1843_v62 = vmul.f32 1.442695, %v1727_v52  ;;  %v1728_v22 = vsub.f32 %v7424_v57, %v1644_v25  ;;  %v6545_v3 = vpop.eup %4966 }
 0x522   :  { %7425 = vst [vmem:[#allocation22_spill] sm:$0xff] %v6545_v3  ;;  %v1899_v4 = vpop.xlane.xlu0 %1898  ;;  %v2005_v23 = vsel %vm63_vm0, %v6545_v3, 0.0 }
 0x523   :  { %v6549_v50 = vpop.eup %4968  ;;  %2015 = vadd.xlane.f32.xlu0 %v2014_v12  ;;  %4978 = vpow2.f32 %v1843_v62  ;;  %v1845_v8 = vmul.f32 1.442695, %v1728_v22 }
 0x524   :  { %7426 = vst [vmem:[#allocation25_spill] sm:$0xff] %v6549_v50  ;;  %v1902_v15 = vpop.xlane.xlu1 %1901  ;;  %v2008_v60 = vsel %vm63_vm0, %v6549_v50, 0.0  ;;  %4980 = vrcp.f32 %v1899_v4 }
 0x525   :  { %2009 = vadd.xlane.f32.xlu1 %v2008_v60  ;;  %v6553_v48 = vpop.eup %4970  ;;  %4982 = vrcp.f32 %v1902_v15 }
 0x526   :  { %7427 = vst [vmem:[#allocation23_spill] sm:$0xff] %v6553_v48  ;;  %v1893_v38 = vpop.xlane.xlu0 %1892  ;;  %v2029_v25 = vsel %vm63_vm0, %v6553_v48, 0.0 }
 0x527   :  { %v6557_v53 = vpop.eup %4972  ;;  %4984 = vrcp.f32 %v1893_v38  ;;  %2006 = vadd.xlane.f32.xlu0 %v2005_v23 }
 0x528   :  { %7428 = vst [vmem:[#allocation27_spill] sm:$0xff] %v6557_v53  ;;  %4986 = vpow2.f32 %v1845_v8  ;;  %v1896_v39 = vpop.xlane.xlu1 %1895  ;;  %v2032_v14 = vsel %vm63_vm0, %v6557_v53, 0.0 }
 0x529   :  { %4988 = vrcp.f32 %v1896_v39  ;;  %2033 = vadd.xlane.f32.xlu1 %v2032_v14  ;;  %v6561_v28 = vpop.eup %4974 }
 0x52a   :  { %7429 = vst [vmem:[#allocation28_spill] sm:$0xff] %v6561_v28  ;;  %v1911_v52 = vpop.xlane.xlu0 %1910  ;;  %v1999_v8 = vsel %vm63_vm0, %v6561_v28, 0.0  ;;  %v7435_v28 = vld [vmem:[#allocation29_spill] sm:$0xff] }
 0x52b   :  { %v6565_v62 = vpop.eup %4976  ;;  %2030 = vadd.xlane.f32.xlu0 %v2029_v25 }
 0x52c   :  { %7430 = vst [vmem:[#allocation35_spill] sm:$0xff] %v6565_v62  ;;  %v1914_v57 = vpop.xlane.xlu1 %1913  ;;  %v2002_v22 = vsel %vm63_vm0, %v6565_v62, 0.0  ;;  %v7434_v62 = vld [vmem:[#allocation32_spill] sm:$0xff] }
 0x52d   :  { %2003 = vadd.xlane.f32.xlu1 %v2002_v22  ;;  %v6569_v4 = vpop.eup %4978  ;;  %4990 = vrcp.f32 %v1914_v57  ;;  %v7432_v57 = vld [vmem:[#allocation30_spill] sm:$0xff] }
 0x52e   :  { %7431 = vst [vmem:[#allocation36_spill] sm:$0xff] %v6569_v4  ;;  %v1905_v12 = vpop.xlane.xlu0 %1904  ;;  %v4981_v15 = vpop.eup %4980  ;;  %v2023_v25 = vsel %vm63_vm0, %v6569_v4, 0.0 }
 0x52f   :  { %4992 = vrcp.f32 %v1905_v12  ;;  %2000 = vadd.xlane.f32.xlu0 %v1999_v8  ;;  %v4983_v60 = vpop.eup %4982  ;;  %v7433_v12 = vld [vmem:[#allocation31_spill] sm:$0xff]  ;;  %v2133_v3 = vmul.f32 %v4981_v15, %v7435_v28 }
 0x530   :  { %4994 = vrcp.f32 %v1911_v52  ;;  %v1908_v38 = vpop.xlane.xlu1 %1907  ;;  %v2134_v53 = vmul.f32 %v4983_v60, %v7432_v57 }
 0x531   :  { %v4985_v23 = vpop.eup %4984  ;;  %4996 = vrcp.f32 %v1908_v38 }
 0x532   :  { %v6573_v39 = vpop.eup %4986  ;;  %v1659_v14 = vpop.xlane.xlu0 %1658  ;;  %v2131_v8 = vmul.f32 %v4985_v23, %v7433_v12  ;;  %v2192_v46 = vpack.c.bf16 %v2134_v53, %v2133_v3 }
 0x533   :  { %v4989_v22 = vpop.eup %4988  ;;  %v1733_v48 = vsub.f32 %v6285_v43, %v1659_v14  ;;  %2024 = vadd.xlane.f32.xlu0 %v2023_v25  ;;  %v2026_v4 = vsel %vm63_vm0, %v6573_v39, 0.0  ;;  %v7438_v25 = vld [vmem:[#allocation33_spill] sm:$0xff] }
 0x534   :  { %v1662_v50 = vpop.xlane.xlu1 %1661  ;;  %v2132_v52 = vmul.f32 %v4989_v22, %v7434_v62 }
 0x535   :  { %v1855_v38 = vmul.f32 1.442695, %v1733_v48  ;;  %v1734_v20 = vsub.f32 %v6292_v32, %v1662_v50 }
 0x536   :  { %v1653_v33 = vpop.xlane.xlu0 %1652  ;;  %v2191_v26 = vpack.c.bf16 %v2132_v52, %v2131_v8 }
 0x537   :  { %4998 = vpow2.f32 %v1855_v38  ;;  %v1731_v43 = vsub.f32 %v6290_v19, %v1653_v33  ;;  %2027 = vadd.xlane.f32.xlu0 %v2026_v4  ;;  %v4991_v60 = vpop.eup %4990  ;;  %v1857_v14 = vmul.f32 1.442695, %v1734_v20  ;;  %v7436_v19 = vld [vmem:[#allocation13_spill] sm:$0xff]  ;;  %v7437_v33 = vld [vmem:[#allocation34_spill] sm:$0xff] }
 0x538   :  { %v1656_v23 = vpop.xlane.xlu1 %1655  ;;  %4454 = vmatprep.mubr.msk.bf16.mxu0 %vm63_vm0, %v2191_v26  ;;  %v2138_v4 = vmul.f32 %v4991_v60, %v7437_v33 }
 0x539   :  { %v4993_v62 = vpop.eup %4992  ;;  %v1851_v28 = vmul.f32 1.442695, %v1731_v43  ;;  %v1732_v48 = vsub.f32 %v6296_v10, %v1656_v23  ;;  %4455 = vmatmul.mubr.msk.bf16.vlgmr.msra.gmra.mrb[64].mxu0 %vm63_vm0, %v2192_v46  ;;  %v7440_v23 = vld [vmem:[#allocation15_spill] sm:$0xff] }
 0x53a   :  { %v4995_v32 = vpop.eup %4994  ;;  %4479 = vmatpush3.bf16.msra.mxu0 %v7412_v17  ;;  %v1671_v50 = vpop.xlane.xlu0 %1670  ;;  %v2135_v15 = vmul.f32 %v4993_v62, %v6332_v44 }
 0x53b   :  { %v4997_v3 = vpop.eup %4996  ;;  %5000 = vpow2.f32 %v1851_v28  ;;  %v1853_v53 = vmul.f32 1.442695, %v1732_v48  ;;  %4480 = vmatprep.subr.bf16.mxu0 %v7436_v19  ;;  %v1737_v20 = vsub.f32 %v6306_v30, %v1671_v50  ;;  %v2137_v22 = vmul.f32 %v4995_v32, %v7438_v25  ;;  %v7439_v30 = vld [vmem:[#allocation6_spill] sm:$0xff] }
 0x53c   :  { %5002 = vpow2.f32 %v1857_v14  ;;  %v1674_v26 = vpop.xlane.xlu1 %1673  ;;  %v2136_v10 = vmul.f32 %v4997_v3, %v6336_v34  ;;  %v7441_v3 = vld [vmem:[#allocation9_spill] sm:$0xff] }
 0x53d   :  { %5004 = vpow2.f32 %v1853_v53  ;;  %v1863_v46 = vmul.f32 1.442695, %v1737_v20  ;;  %v1738_v17 = vsub.f32 %v6314_v40, %v1674_v26  ;;  %v2194_v38 = vpack.c.bf16 %v2138_v4, %v2137_v22 }
 0x53e   :  { %4481 = vmatpush3.bf16.msra.mxu0 %v7436_v19  ;;  %v1665_v57 = vpop.xlane.xlu0 %1664  ;;  %v2193_v12 = vpack.c.bf16 %v2136_v10, %v2135_v15 }
 0x53f   :  { %v1865_v8 = vmul.f32 1.442695, %v1738_v17  ;;  %4482 = vmatprep.subr.bf16.mxu0 %v7439_v30  ;;  %v1735_v52 = vsub.f32 %v6312_v2, %v1665_v57  ;;  %5006 = vpow2.f32 %v1863_v46 }
 0x540   :  { %v1668_v43 = vpop.xlane.xlu1 %1667  ;;  %4458 = vmatprep.mubr.msk.bf16.mxu0 %vm63_vm0, %v2193_v12 }
 0x541   :  { %v6601_v44 = vpop.eup %4998  ;;  %v1859_v34 = vmul.f32 1.442695, %v1735_v52  ;;  %v1736_v40 = vsub.f32 %v6320_v51, %v1668_v43  ;;  %4459 = vmatmul.mubr.msk.bf16.gmra.mrb[68].mxu0 %vm63_vm0, %v2194_v38  ;;  %5008 = vpow2.f32 %v1865_v8 }
 0x542   :  { %4483 = vmatpush3.bf16.msra.mxu0 %v7439_v30  ;;  %v1923_v60 = vpop.xlane.xlu0 %1922  ;;  %v2041_v14 = vsel %vm63_vm0, %v6601_v44, 0.0 }
 0x543   :  { %v1861_v2 = vmul.f32 1.442695, %v1736_v40  ;;  %4484 = vmatprep.subr.bf16.mxu0 %v7440_v23  ;;  %2042 = vadd.xlane.f32.xlu0 %v2041_v14  ;;  %5010 = vpow2.f32 %v1859_v34 }
 0x544   :  { %v1926_v62 = vpop.xlane.xlu1 %1925 }
 0x545   :  { %v6609_v28 = vpop.eup %5000  ;;  %5012 = vpow2.f32 %v1861_v2 }
 0x546   :  { %v6611_v48 = vpop.eup %5002  ;;  %5014 = vrcp.f32 %v1926_v62  ;;  %4485 = vmatpush3.bf16.msra.mxu0 %v7440_v23  ;;  %v1917_v51 = vpop.xlane.xlu0 %1916  ;;  %v2035_v32 = vsel %vm63_vm0, %v6609_v28, 0.0 }
 0x547   :  { %v6616_v50 = vpop.eup %5004  ;;  %4510 = vmatprep.subr.bf16.mxu0 %v7441_v3  ;;  %5016 = vrcp.f32 %v1917_v51  ;;  %2036 = vadd.xlane.f32.xlu0 %v2035_v32  ;;  %v2044_v33 = vsel %vm63_vm0, %v6611_v48, 0.0 }
 0x548   :  { %5018 = vrcp.f32 %v1923_v60  ;;  %v1920_v53 = vpop.xlane.xlu1 %1919  ;;  %v2038_v19 = vsel %vm63_vm0, %v6616_v50, 0.0 }
 0x549   :  { %5020 = vrcp.f32 %v1920_v53  ;;  %2039 = vadd.xlane.f32.xlu1 %v2038_v19  ;;  %v6623_v4 = vpop.eup %5006  ;;  %v7442_v19 = vld [vmem:[#allocation4_spill] sm:$0xff] }
 0x54a   :  { %v1935_v20 = vpop.xlane.xlu0 %1934  ;;  %v2053_v17 = vsel %vm63_vm0, %v6623_v4, 0.0 }
 0x54b   :  { %2045 = vadd.xlane.f32.xlu0 %v2044_v33  ;;  %v6625_v15 = vpop.eup %5008 }
 0x54c   :  { %v1938_v26 = vpop.xlane.xlu1 %1937  ;;  %v2056_v2 = vsel %vm63_vm0, %v6625_v15, 0.0 }
 0x54d   :  { %v6627_v10 = vpop.eup %5010  ;;  %5022 = vrcp.f32 %v1938_v26 }
 0x54e   :  { %v1929_v46 = vpop.xlane.xlu0 %1928  ;;  %v2047_v52 = vsel %vm63_vm0, %v6627_v10, 0.0 }
 0x54f   :  { %v6631_v25 = vpop.eup %5012  ;;  %5024 = vrcp.f32 %v1929_v46  ;;  %2054 = vadd.xlane.f32.xlu0 %v2053_v17 }
 0x550   :  { %v5015_v22 = vpop.eup %5014  ;;  %5026 = vrcp.f32 %v1935_v20  ;;  %v1932_v57 = vpop.xlane.xlu1 %1931  ;;  %v2050_v12 = vsel %vm63_vm0, %v6631_v25, 0.0 }
 0x551   :  { %v5017_v8 = vpop.eup %5016  ;;  %5028 = vrcp.f32 %v1932_v57  ;;  %2051 = vadd.xlane.f32.xlu1 %v2050_v12  ;;  %v2142_v43 = vmul.f32 %v5015_v22, %v6369_v36  ;;  %v7444_v57 = vld [vmem:[#allocation7_spill] sm:$0xff] }
 0x552   :  { %v5019_v30 = vpop.eup %5018  ;;  %v2139_v40 = vmul.f32 %v5017_v8, %v6373_v29  ;;  %v1971_v20 = vpop.xlane.xlu0 %1970 }
 0x553   :  { %v5021_v38 = vpop.eup %5020  ;;  %2048 = vadd.xlane.f32.xlu0 %v2047_v52  ;;  %v2141_v14 = vmul.f32 %v5019_v30, %v6365_v11 }
 0x554   :  { %v1947_v34 = vpop.xlane.xlu1 %1946  ;;  %v2140_v60 = vmul.f32 %v5021_v38, %v6378_v56  ;;  %v7443_v56 = vld [vmem:[#allocation5_spill] sm:$0xff] }
 0x555   :  { %v2196_v62 = vpack.c.bf16 %v2142_v43, %v2141_v14 }
 0x556   :  { %v2195_v23 = vpack.c.bf16 %v2140_v60, %v2139_v40 }
 0x557   :  { %2057 = vadd.xlane.f32.xlu0 %v2056_v2  ;;  %v5023_v51 = vpop.eup %5022 }
 0x558   :  { %v1941_v32 = vpop.xlane.xlu1 %1940  ;;  %4470 = vmatprep.mubr.msk.bf16.mxu1 %vm63_vm0, %v2195_v23  ;;  %v2146_v11 = vmul.f32 %v5023_v51, %v6387_v42  ;;  %v7445_v42 = vld [vmem:[#allocation8_spill] sm:$0xff] }
 0x559   :  { %v5025_v53 = vpop.eup %5024  ;;  %4471 = vmatmul.mubr.msk.bf16.vlgmr.msra.gmra.mrb[40].mxu1 %vm63_vm0, %v2196_v62 }
 0x55a   :  { %v5027_v36 = vpop.eup %5026  ;;  %4495 = vmatpush3.bf16.msra.mxu1 %v7442_v19  ;;  %v2143_v26 = vmul.f32 %v5025_v53, %v6392_v45 }
 0x55b   :  { %v5029_v29 = vpop.eup %5028  ;;  %4496 = vmatprep.subr.bf16.mxu1 %v7443_v56  ;;  %v2145_v17 = vmul.f32 %v5027_v36, %v6382_v21 }
 0x55c   :  { %v1965_v33 = vpop.xlane.xlu1 %1964  ;;  %v2144_v46 = vmul.f32 %v5029_v29, %v6397_v7  ;;  %v7446_v7 = vld [vmem:[#allocation10_spill] sm:$0xff] }
 0x55d   :  { %v2198_v12 = vpack.c.bf16 %v2146_v11, %v2145_v17  ;;  %v7449_v17 = vld [vmem:[#allocation11_spill] sm:$0xff] }
 0x55e   :  { %4497 = vmatpush3.bf16.msra.mxu1 %v7443_v56  ;;  %v2197_v22 = vpack.c.bf16 %v2144_v46, %v2143_v26  ;;  %v1959_v8 = vpop.xlane.xlu0 %1958 }
 0x55f   :  { %4498 = vmatprep.subr.bf16.mxu1 %v7444_v57 }
 0x560   :  { %v1950_v30 = vpop.xlane.xlu1 %1949  ;;  %4474 = vmatprep.mubr.msk.bf16.mxu1 %vm63_vm0, %v2197_v22 }
 0x561   :  { %4475 = vmatmul.mubr.msk.bf16.gmra.mrb[44].mxu1 %vm63_vm0, %v2198_v12  ;;  %5030 = vrcp.f32 %v1950_v30 }
 0x562   :  { %4499 = vmatpush3.bf16.msra.mxu1 %v7444_v57  ;;  %696 = vrot.lane.b32.xlu1 %v6502_v63, %s5230_s27  ;;  %v1983_v45 = vpop.xlane.xlu0 %1982  ;;  %5032 = vrcp.f32 %v1941_v32 }
 0x563   :  { %4500 = vmatprep.subr.bf16.mxu1 %v7445_v42  ;;  %5034 = vrcp.f32 %v1947_v34 }
 0x564   :  { %v1974_v21 = vpop.xlane.xlu1 %1973 }
 0x566   :  { %4501 = vmatpush3.bf16.msra.mxu1 %v7445_v42 }
 0x567   :  { %4526 = vmatprep.subr.bf16.mxu1 %v7446_v7 }
 0x568   :  { %v1944_v52 = vpop.xlane.xlu1 %1943 }
 0x569   :  { %5036 = vrcp.f32 %v1944_v52 }
 0x56a   :  { %5038 = vrcp.f32 %v1974_v21  ;;  %v1977_v38 = vpop.xlane.xlu0 %1976  ;;  %v7450_v21 = vld [vmem:[#allocation19_spill] sm:$0xff] }
 0x56b   :  { %5040 = vrcp.f32 %v1965_v33  ;;  %v5031_v40 = vpop.eup %5030 }
 0x56c   :  { %5042 = vrcp.f32 %v1971_v20  ;;  %v1968_v43 = vpop.xlane.xlu1 %1967  ;;  %v5033_v60 = vpop.eup %5032  ;;  %v2150_v34 = vmul.f32 %v5031_v40, %v6426_v61  ;;  %v7452_v40 = vld [vmem:[#allocation16_spill] sm:$0xff] }
 0x56d   :  { %5044 = vrcp.f32 %v1968_v43  ;;  %694 = vrot.lane.b32.xlu0 %v6490_v37, %s5230_s27  ;;  %v5035_v14 = vpop.eup %5034  ;;  %v2147_v32 = vmul.f32 %v5033_v60, %v6415_v27 }
 0x56e   :  { %v1962_v63 = vpop.xlane.xlu0 %1961  ;;  %v2149_v19 = vmul.f32 %v5035_v14, %v6403_v0 }
 0x56f   :  { %5046 = vrcp.f32 %v1962_v63 }
 0x570   :  { %v1953_v2 = vpop.xlane.xlu1 %1952  ;;  %v2200_v20 = vpack.c.bf16 %v2150_v34, %v2149_v19 }
 0x571   :  { %5048 = vrcp.f32 %v1953_v2 }
 0x572   :  { %v1986_v23 = vpop.xlane.xlu0 %1985  ;;  %5050 = vrcp.f32 %v1959_v8 }
 0x573   :  { %v5037_v62 = vpop.eup %5036 }
 0x574   :  { %v5039_v51 = vpop.eup %5038  ;;  %v2148_v53 = vmul.f32 %v5037_v62, %v6446_v59 }
 0x575   :  { %v5041_v36 = vpop.eup %5040  ;;  %v2158_v33 = vmul.f32 %v5039_v51, %v6434_v6  ;;  %v7447_v6 = vld [vmem:[#allocation17_spill] sm:$0xff] }
 0x576   :  { %v5043_v37 = vpop.eup %5042  ;;  %v1956_v29 = vpop.xlane.xlu0 %1955  ;;  %v2199_v56 = vpack.c.bf16 %v2148_v53, %v2147_v32  ;;  %v2155_v27 = vmul.f32 %v5041_v36, %v6422_v18 }
 0x577   :  { %v5045_v11 = vpop.eup %5044  ;;  %5052 = vrcp.f32 %v1956_v29  ;;  %v2157_v59 = vmul.f32 %v5043_v37, %v6407_v1 }
 0x578   :  { %5054 = vrcp.f32 %v1977_v38  ;;  %4486 = vmatprep.mubr.msk.bf16.mxu0 %vm63_vm0, %v2199_v56  ;;  %v2156_v61 = vmul.f32 %v5045_v11, %v6448_v31  ;;  %v7448_v31 = vld [vmem:[#allocation12_spill] sm:$0xff] }
 0x579   :  { %5056 = vrcp.f32 %v1986_v23  ;;  %4487 = vmatmul.mubr.msk.bf16.vlgmr.msra.gmra.mrb[72].mxu0 %vm63_vm0, %v2200_v20  ;;  %v2204_v46 = vpack.c.bf16 %v2158_v33, %v2157_v59  ;;  %v5047_v18 = vpop.eup %5046 }
 0x57a   :  { %5058 = vrcp.f32 %v1983_v45  ;;  %4511 = vmatpush3.bf16.msra.mxu0 %v7441_v3  ;;  %v1980_v0 = vpop.xlane.xlu0 %1979  ;;  %v2203_v26 = vpack.c.bf16 %v2156_v61, %v2155_v27  ;;  %v2154_v57 = vmul.f32 %v5047_v18, %v6450_v35  ;;  %v7451_v45 = vld [vmem:[#allocation14_spill] sm:$0xff] }
 0x57b   :  { %5060 = vrcp.f32 %v1980_v0  ;;  %4512 = vmatprep.subr.bf16.mxu0 %v7447_v6  ;;  %v5049_v1 = vpop.eup %5048 }
 0x57c   :  { %4502 = vmatprep.mubr.msk.bf16.mxu1 %vm63_vm0, %v2203_v26  ;;  %v5051_v3 = vpop.eup %5050  ;;  %v2151_v8 = vmul.f32 %v5049_v1, %v6460_v16 }
 0x57d   :  { %4503 = vmatmul.mubr.msk.bf16.vlgmr.msra.gmra.mrb[48].mxu1 %vm63_vm0, %v2204_v46 }
 0x57e   :  { %4513 = vmatpush3.bf16.msra.mxu0 %v7447_v6  ;;  %4527 = vmatpush3.bf16.msra.mxu1 %v7446_v7  ;;  %v2153_v7 = vmul.f32 %v5051_v3, %v6430_v49  ;;  %v7453_v49 = vld [vmem:[#allocation18_spill] sm:$0xff] }
 0x57f   :  { %4514 = vmatprep.subr.bf16.mxu0 %v7448_v31  ;;  %4528 = vmatprep.subr.bf16.mxu1 %v7449_v17  ;;  %v7455_v3 = vld [vmem:[#allocation26_spill] sm:$0xff] }
 0x580   :  { %v2202_v35 = vpack.c.bf16 %v2154_v57, %v2153_v7  ;;  %v7456_v57 = vld [vmem:[#allocation21_spill] sm:$0xff] }
 0x581   :  { %v5053_v22 = vpop.eup %5052 }
 0x582   :  { %v5055_v12 = vpop.eup %5054  ;;  %4515 = vmatpush3.bf16.msra.mxu0 %v7448_v31  ;;  %4529 = vmatpush3.bf16.msra.mxu1 %v7449_v17  ;;  %v2152_v30 = vmul.f32 %v5053_v22, %v6474_v41  ;;  %v7454_v31 = vld [vmem:[#allocation24_spill] sm:$0xff] }
 0x583   :  { %v5057_v42 = vpop.eup %5056  ;;  %4516 = vmatprep.subr.bf16.mxu0 %v7450_v21  ;;  %4530 = vmatprep.subr.bf16.mxu1 %v7451_v45  ;;  %v2159_v63 = vmul.f32 %v5055_v12, %v6454_v9  ;;  %v1995_v9 = vpop.xlane.xlu0 %1994 }
 0x584   :  { %v5059_v52 = vpop.eup %5058  ;;  %v2201_v38 = vpack.c.bf16 %v2152_v30, %v2151_v8  ;;  %v2162_v41 = vmul.f32 %v5057_v42, %v6456_v47  ;;  %v1998_v47 = vpop.xlane.xlu1 %1997  ;;  %v7457_v8 = vld [vmem:[#allocation3_spill] sm:$0xff]  ;;  %v7458_v42 = vld [vmem:[#allocation20_spill] sm:$0xff] }
 0x585   :  { %v5061_v43 = vpop.eup %5060  ;;  %v2161_v14 = vmul.f32 %v5059_v52, %v6439_v55  ;;  %5062 = vrcp.f32 %v1998_v47 }
 0x586   :  { %4490 = vmatprep.mubr.msk.bf16.mxu0 %vm63_vm0, %v2201_v38  ;;  %4517 = vmatpush3.bf16.msra.mxu0 %v7450_v21  ;;  %v2160_v16 = vmul.f32 %v5061_v43, %v6478_v54 }
 0x587   :  { %4531 = vmatpush3.bf16.msra.mxu1 %v7451_v45  ;;  %4491 = vmatmul.mubr.msk.bf16.gmra.mrb[76].mxu0 %vm63_vm0, %v2202_v35  ;;  %v2206_v2 = vpack.c.bf16 %v2162_v41, %v2161_v14  ;;  %v7459_v14 = vld [vmem:[#allocation22_spill] sm:$0xff] }
 0x588   :  { %4532 = vmatprep.subr.bf16.mxu1 %v7452_v40  ;;  %4542 = vmatprep.subr.bf16.mxu0 %v7453_v49  ;;  %v2205_v60 = vpack.c.bf16 %v2160_v16, %v2159_v63 }
 0x58a   :  { %4506 = vmatprep.mubr.msk.bf16.mxu1 %vm63_vm0, %v2205_v60 }
 0x58b   :  { %4533 = vmatpush3.bf16.msra.mxu1 %v7452_v40 }
 0x58c   :  { %4507 = vmatmul.mubr.msk.bf16.gmra.mrb[52].mxu1 %vm63_vm0, %v2206_v2 }
 0x58f   :  { %v5063_v32 = vpop.eup %5062 }
 0x590   :  { %v2166_v56 = vmul.f32 %v5063_v32, %v6500_v5 }
 0x5a4   :  { %v2019_v54 = vpop.xlane.xlu0 %2018 }
 0x5a6   :  { %v2022_v23 = vpop.xlane.xlu1 %2021 }
 0x5a8   :  { %v1989_v62 = vpop.xlane.xlu0 %1988 }
 0x5a9   :  { %5064 = vrcp.f32 %v1989_v62  ;;  %v7462_v62 = vld [vmem:[#allocation25_spill] sm:$0xff] }
 0x5aa   :  { %5066 = vrcp.f32 %v1995_v9  ;;  %v1992_v34 = vpop.xlane.xlu1 %1991  ;;  %v7460_v9 = vld [vmem:[#allocation28_spill] sm:$0xff] }
 0x5ab   :  { %5068 = vrcp.f32 %v1992_v34 }
 0x5ac   :  { %v2013_v51 = vpop.xlane.xlu0 %2012  ;;  %5070 = vrcp.f32 %v2022_v23 }
 0x5ad   :  { %5072 = vrcp.f32 %v2013_v51 }
 0x5ae   :  { %5074 = vrcp.f32 %v2019_v54  ;;  %v7461_v54 = vld [vmem:[#allocation35_spill] sm:$0xff] }
 0x5b0   :  { %v2016_v55 = vpop.xlane.xlu0 %2015 }
 0x5b1   :  { %5076 = vrcp.f32 %v2016_v55 }
 0x5b2   :  { %v2010_v53 = vpop.xlane.xlu1 %2009 }
 0x5b3   :  { %v5065_v36 = vpop.eup %5064 }
 0x5b4   :  { %v5067_v19 = vpop.eup %5066  ;;  %v2007_v37 = vpop.xlane.xlu0 %2006  ;;  %v2163_v20 = vmul.f32 %v5065_v36, %v6526_v24 }
 0x5b5   :  { %v5069_v29 = vpop.eup %5068  ;;  %v2165_v27 = vmul.f32 %v5067_v19, %v6494_v58  ;;  %5078 = vrcp.f32 %v2007_v37  ;;  %v7463_v37 = vld [vmem:[#allocation23_spill] sm:$0xff] }
 0x5b6   :  { %v2034_v11 = vpop.xlane.xlu1 %2033  ;;  %v2164_v33 = vmul.f32 %v5069_v29, %v6531_v13  ;;  %v5071_v61 = vpop.eup %5070 }
 0x5b7   :  { %v5073_v26 = vpop.eup %5072  ;;  %v2208_v46 = vpack.c.bf16 %v2166_v56, %v2165_v27  ;;  %v2174_v17 = vmul.f32 %v5071_v61, %v7454_v31  ;;  %v7465_v27 = vld [vmem:[#allocation27_spill] sm:$0xff] }
 0x5b8   :  { %v2031_v59 = vpop.xlane.xlu0 %2030  ;;  %v2207_v0 = vpack.c.bf16 %v2164_v33, %v2163_v20  ;;  %v5075_v6 = vpop.eup %5074  ;;  %v2171_v22 = vmul.f32 %v5073_v26, %v7455_v3 }
 0x5b9   :  { %v2173_v30 = vmul.f32 %v5075_v6, %v7457_v8 }
 0x5ba   :  { %v2004_v18 = vpop.xlane.xlu1 %2003  ;;  %v6706_v1 = vpop.f32.mrb[56].mxu0  ;;  %4518 = vmatprep.mubr.msk.bf16.mxu0 %vm63_vm0, %v2207_v0 }
 0x5bb   :  { %v5077_v5 = vpop.eup %5076  ;;  %5080 = vrcp.f32 %v2004_v18  ;;  %v6710_v24 = vpop.f32.mrb[57].mxu0  ;;  %4519 = vmatmul.mubr.msk.bf16.vlgmr.msra.gmra.mrb[80].mxu0 %vm63_vm0, %v2208_v46  ;;  %v2212_v7 = vpack.c.bf16 %v2174_v17, %v2173_v30 }
 0x5bc   :  { %5082 = vrcp.f32 %v2010_v53  ;;  %4543 = vmatpush3.bf16.msra.mxu0 %v7453_v49  ;;  %v6714_v58 = vpop.f32.mrb[58].mxu0  ;;  %v2001_v13 = vpop.xlane.xlu0 %2000  ;;  %v2172_v12 = vmul.f32 %v5077_v5, %v7456_v57 }
 0x5bd   :  { %4544 = vmatprep.subr.bf16.mxu0 %v7458_v42  ;;  %5084 = vrcp.f32 %v2001_v13  ;;  %v6720_v21 = vpop.f32.mrb[59].mxu0 }
 0x5be   :  { %v2211_v45 = vpack.c.bf16 %v2172_v12, %v2171_v22  ;;  %5086 = vrcp.f32 %v2031_v59 }
 0x5bf   :  { %v5079_v35 = vpop.eup %5078 }
 0x5c0   :  { %4545 = vmatpush3.bf16.msra.mxu0 %v7458_v42  ;;  %4534 = vmatprep.mubr.msk.bf16.mxu1 %vm63_vm0, %v2211_v45  ;;  %v2025_v52 = vpop.xlane.xlu0 %2024  ;;  %v2169_v2 = vmul.f32 %v5079_v35, %v7459_v14 }
 0x5c1   :  { %4535 = vmatmul.mubr.msk.bf16.vlgmr.msra.gmra.mrb[56].mxu1 %vm63_vm0, %v2212_v7  ;;  %5088 = vrcp.f32 %v2025_v52 }
 0x5c2   :  { %v6725_v38 = vpop.f32.mrb[60].mxu0  ;;  %5090 = vrcp.f32 %v2034_v11  ;;  %v7464_v11 = vld [vmem:[#allocation36_spill] sm:$0xff] }
 0x5c3   :  { %v6727_v43 = vpop.f32.mrb[61].mxu0 }
 0x5c4   :  { %v6729_v63 = vpop.f32.mrb[62].mxu0  ;;  %v2028_v16 = vpop.xlane.xlu0 %2027 }
 0x5c5   :  { %v5081_v41 = vpop.eup %5080  ;;  %5092 = vrcp.f32 %v2028_v16  ;;  %v6731_v40 = vpop.f32.mrb[63].mxu0 }
 0x5c6   :  { %v5083_v49 = vpop.eup %5082  ;;  %v2168_v23 = vmul.f32 %v5081_v41, %v7461_v54 }
 0x5c7   :  { %v5085_v60 = vpop.eup %5084  ;;  %v2170_v34 = vmul.f32 %v5083_v49, %v7462_v62 }
 0x5c8   :  { %v2167_v47 = vmul.f32 %v5085_v60, %v7460_v9  ;;  %v5087_v32 = vpop.eup %5086 }
 0x5c9   :  { %v2210_v55 = vpack.c.bf16 %v2170_v34, %v2169_v2  ;;  %v2177_v29 = vmul.f32 %v5087_v32, %v7463_v37 }
 0x5ca   :  { %v2209_v51 = vpack.c.bf16 %v2168_v23, %v2167_v47 }
 0x5cb   :  { %v5089_v53 = vpop.eup %5088 }
 0x5cc   :  { %4522 = vmatprep.mubr.msk.bf16.mxu0 %vm63_vm0, %v2209_v51  ;;  %v5091_v36 = vpop.eup %5090  ;;  %v2175_v20 = vmul.f32 %v5089_v53, %v7464_v11 }
 0x5cd   :  { %4523 = vmatmul.mubr.msk.bf16.gmra.mrb[84].mxu0 %vm63_vm0, %v2210_v55  ;;  %v2178_v61 = vmul.f32 %v5091_v36, %v7465_v27 }
 0x5cf   :  { %v5093_v19 = vpop.eup %5092  ;;  %v2214_v0 = vpack.c.bf16 %v2178_v61, %v2177_v29 }
 0x5d0   :  { %v2043_v56 = vpop.xlane.xlu0 %2042  ;;  %v2176_v33 = vmul.f32 %v5093_v19, %v6573_v39 }
 0x5d2   :  { %v2213_v59 = vpack.c.bf16 %v2176_v33, %v2175_v20 }
 0x5d4   :  { %4538 = vmatprep.mubr.msk.bf16.mxu1 %vm63_vm0, %v2213_v59  ;;  %v2037_v26 = vpop.xlane.xlu0 %2036 }
 0x5d5   :  { %5094 = vrcp.f32 %v2037_v26  ;;  %4539 = vmatmul.mubr.msk.bf16.gmra.mrb[60].mxu1 %vm63_vm0, %v2214_v0 }
 0x5d6   :  { %v2040_v46 = vpop.xlane.xlu1 %2039 }
 0x5d7   :  { %5096 = vrcp.f32 %v2040_v46 }
 0x5d8   :  { %v2046_v6 = vpop.xlane.xlu0 %2045 }
 0x5d9   :  { %5098 = vrcp.f32 %v2046_v6 }
 0x5da   :  { %5100 = vrcp.f32 %v2043_v56 }
 0x5dc   :  { %v2055_v18 = vpop.xlane.xlu0 %2054 }
 0x5de   :  { %v2052_v5 = vpop.xlane.xlu1 %2051 }
 0x5df   :  { %v5095_v31 = vpop.eup %5094  ;;  %5102 = vrcp.f32 %v2052_v5 }
 0x5e0   :  { %v2049_v39 = vpop.xlane.xlu0 %2048  ;;  %v2179_v13 = vmul.f32 %v5095_v31, %v6609_v28 }
 0x5e1   :  { %v5097_v17 = vpop.eup %5096  ;;  %5104 = vrcp.f32 %v2049_v39 }
 0x5e2   :  { %v2180_v3 = vmul.f32 %v5097_v17, %v6616_v50  ;;  %v697_v45 = vpop.permute.xlu1 %696  ;;  %v4810_v17 = vld [vmem:[%s7328_s5] sm:$0xff]  }
 0x5e3   :  { %v5099_v12 = vpop.eup %5098  ;;  %4558 = vmatprep.subr.bf16.mxu1 %v4810_v17 }
 0x5e4   :  { %v2058_v22 = vpop.xlane.xlu0 %2057  ;;  %v2215_v57 = vpack.c.bf16 %v2180_v3, %v2179_v13  ;;  %v5101_v30 = vpop.eup %5100  ;;  %v2182_v52 = vmul.f32 %v5099_v12, %v6611_v48  ;;  %v4811_v3 = vld [vmem:[%s7328_s5 + $0x8] sm:$0xff]   ;;  %4559 = vmatpush3.bf16.msra.mxu1 %v4810_v17 }
 0x5e5   :  { %5106 = vrcp.f32 %v2058_v22  ;;  %v2181_v50 = vmul.f32 %v5101_v30, %v6601_v44  ;;  %4560 = vmatprep.subr.bf16.mxu1 %v4811_v3  ;;  %v4812_v30 = vld [vmem:[%s7328_s5 + $0x10] sm:$0xff]  }
 0x5e6   :  { %4550 = vmatprep.mubr.msk.bf16.mxu0 %vm63_vm0, %v2215_v57  ;;  %5108 = vrcp.f32 %v2055_v18 }
 0x5e7   :  { %v2216_v16 = vpack.c.bf16 %v2182_v52, %v2181_v50 }
 0x5e8   :  { %v695_v8 = vpop.permute.xlu0 %694  ;;  %4561 = vmatpush3.bf16.msra.mxu1 %v4811_v3 }
 0x5e9   :  { %4546 = vmatprep.subr.bf16.mxu0 %v695_v8  ;;  %v5103_v42 = vpop.eup %5102  ;;  %4562 = vmatprep.subr.bf16.mxu1 %v4812_v30 }
 0x5ea   :  { %4547 = vmatpush3.bf16.msra.mxu0 %v695_v8  ;;  %v2184_v35 = vmul.f32 %v5103_v42, %v6631_v25 }
 0x5eb   :  { %v5105_v7 = vpop.eup %5104  ;;  %4548 = vmatprep.subr.bf16.mxu0 %v697_v45 }
 0x5ec   :  { %v2183_v28 = vmul.f32 %v5105_v7, %v6627_v10  ;;  %4563 = vmatpush3.bf16.msra.mxu1 %v4812_v30 }
 0x5ee   :  { %4549 = vmatpush3.bf16.msra.mxu0 %v697_v45  ;;  %v2217_v49 = vpack.c.bf16 %v2184_v35, %v2183_v28 }
 0x5ef   :  { %v5107_v41 = vpop.eup %5106 }
 0x5f0   :  { %v5109_v60 = vpop.eup %5108  ;;  %v2186_v14 = vmul.f32 %v5107_v41, %v6625_v15 }
 0x5f1   :  { %4551 = vmatmul.mubr.msk.bf16.vlgmr.msra.gmra.mrb[88].mxu0 %vm63_vm0, %v2216_v16  ;;  %v2185_v48 = vmul.f32 %v5109_v60, %v6623_v4  ;;  %v4813_v16 = vld [vmem:[%s7328_s5 + $0x18] sm:$0xff]  }
 0x5f2   :  { %4554 = vmatprep.mubr.msk.bf16.mxu0 %vm63_vm0, %v2217_v49  ;;  %4564 = vmatprep.subr.bf16.mxu1 %v4813_v16 }
 0x5f3   :  { %v2218_v2 = vpack.c.bf16 %v2186_v14, %v2185_v48  ;;  %4565 = vmatpush3.bf16.msra.mxu1 %v4813_v16 }
 0x5f9   :  { %4555 = vmatmul.mubr.msk.bf16.gmra.mrb[92].mxu0 %vm63_vm0, %v2218_v2 }
 0x60c   :  { %v6757_v10 = vpop.f32.mrb[64].mxu0 }
 0x60d   :  { %v6759_v44 = vpop.f32.mrb[65].mxu0 }
 0x60e   :  { %v6761_v25 = vpop.f32.mrb[66].mxu0 }
 0x60f   :  { %v6763_v9 = vpop.f32.mrb[67].mxu0 }
 0x614   :  { %v6765_v47 = vpop.f32.mrb[68].mxu0 }
 0x615   :  { %v6767_v54 = vpop.f32.mrb[69].mxu0 }
 0x616   :  { %v6769_v23 = vpop.f32.mrb[70].mxu0 }
 0x617   :  { %v6771_v15 = vpop.f32.mrb[71].mxu0 }
 0x62c   :  { %v4472_v4 = vpop.f32.mrb[40].mxu1 }
 0x62d   :  { %v2419_v62 = vpop.f32.mrb[41].mxu1 }
 0x62e   :  { %v4473_v34 = vpop.f32.mrb[42].mxu1 }
 0x62f   :  { %v4678_v51 = vpack.i.bf16 %v4473_v34, %v4472_v4  ;;  %v2422_v55 = vpop.f32.mrb[43].mxu1 }
 0x630   :  { %v4683_v32 = vpack.i.bf16 %v2422_v55, %v2419_v62 }
 0x631   :  { %4679 = vrot.lane.b32.xlu1 %v4678_v51, %s5231_s28 }
 0x632   :  { %4684 = vrot.lane.b32.xlu0 %v4683_v32, %s5231_s28 }
 0x634   :  { %v4476_v53 = vpop.f32.mrb[44].mxu1 }
 0x635   :  { %v2435_v36 = vpop.f32.mrb[45].mxu1 }
 0x636   :  { %v4477_v19 = vpop.f32.mrb[46].mxu1 }
 0x637   :  { %v4688_v37 = vpack.i.bf16 %v4477_v19, %v4476_v53  ;;  %v2438_v29 = vpop.f32.mrb[47].mxu1 }
 0x638   :  { %v4693_v56 = vpack.i.bf16 %v2438_v29, %v2435_v36 }
 0x639   :  { %4689 = vrot.lane.b32.xlu1 %v4688_v37, %s5231_s28 }
 0x63a   :  { %4694 = vrot.lane.b32.xlu0 %v4693_v56, %s5231_s28 }
 0x64c   :  { %v4488_v11 = vpop.f32.mrb[72].mxu0 }
 0x64d   :  { %v2496_v20 = vpop.f32.mrb[73].mxu0 }
 0x64e   :  { %v4489_v33 = vpop.f32.mrb[74].mxu0 }
 0x64f   :  { %v4703_v27 = vpack.i.bf16 %v4489_v33, %v4488_v11  ;;  %v2499_v61 = vpop.f32.mrb[75].mxu0 }
 0x650   :  { %v4713_v59 = vpack.i.bf16 %v2499_v61, %v2496_v20  ;;  %v4504_v0 = vpop.f32.mrb[48].mxu1 }
 0x651   :  { %v2573_v26 = vpop.f32.mrb[49].mxu1 }
 0x652   :  { %v4505_v46 = vpop.f32.mrb[50].mxu1 }
 0x653   :  { %v4698_v6 = vpack.i.bf16 %v4505_v46, %v4504_v0  ;;  %v2576_v18 = vpop.f32.mrb[51].mxu1 }
 0x654   :  { %v4708_v5 = vpack.i.bf16 %v2576_v18, %v2573_v26 }
 0x655   :  { %4699 = vrot.lane.b32.xlu1 %v4698_v6, %s5232_s29 }
 0x656   :  { %4709 = vrot.lane.b32.xlu0 %v4708_v5, %s5232_s29 }
 0x659   :  { %4704 = vrot.lane.b32.xlu1 %v4703_v27, %s5231_s28 }
 0x65a   :  { %v4492_v31 = vpop.f32.mrb[76].mxu0  ;;  %4714 = vrot.lane.b32.xlu0 %v4713_v59, %s5231_s28 }
 0x65b   :  { %v2512_v39 = vpop.f32.mrb[77].mxu0 }
 0x65c   :  { %v4493_v13 = vpop.f32.mrb[78].mxu0 }
 0x65d   :  { %v4763_v22 = vpack.i.bf16 %v4493_v13, %v4492_v31  ;;  %v2515_v57 = vpop.f32.mrb[79].mxu0 }
 0x65e   :  { %v4758_v12 = vpack.i.bf16 %v2515_v57, %v2512_v39 }
 0x65f   :  { %v4508_v8 = vpop.f32.mrb[52].mxu1 }
 0x660   :  { %v2589_v42 = vpop.f32.mrb[53].mxu1 }
 0x661   :  { %v4509_v45 = vpop.f32.mrb[54].mxu1 }
 0x662   :  { %v4718_v7 = vpack.i.bf16 %v4509_v45, %v4508_v8  ;;  %v2592_v52 = vpop.f32.mrb[55].mxu1 }
 0x663   :  { %v4723_v28 = vpack.i.bf16 %v2592_v52, %v2589_v42 }
 0x664   :  { %4719 = vrot.lane.b32.xlu1 %v4718_v7, %s5232_s29 }
 0x665   :  { %4724 = vrot.lane.b32.xlu0 %v4723_v28, %s5232_s29 }
 0x68e   :  { %v4520_v50 = vpop.f32.mrb[80].mxu0 }
 0x68f   :  { %v2650_v35 = vpop.f32.mrb[81].mxu0 }
 0x690   :  { %v4521_v41 = vpop.f32.mrb[82].mxu0 }
 0x691   :  { %v4733_v49 = vpack.i.bf16 %v4521_v41, %v4520_v50  ;;  %v2653_v60 = vpop.f32.mrb[83].mxu0 }
 0x692   :  { %v4743_v14 = vpack.i.bf16 %v2653_v60, %v2650_v35 }
 0x694   :  { %v4536_v48 = vpop.f32.mrb[56].mxu1 }
 0x695   :  { %v2727_v2 = vpop.f32.mrb[57].mxu1 }
 0x696   :  { %v4537_v4 = vpop.f32.mrb[58].mxu1 }
 0x697   :  { %v4728_v62 = vpack.i.bf16 %v4537_v4, %v4536_v48  ;;  %v2730_v34 = vpop.f32.mrb[59].mxu1 }
 0x698   :  { %v4738_v51 = vpack.i.bf16 %v2730_v34, %v2727_v2 }
 0x699   :  { %4729 = vrot.lane.b32.xlu1 %v4728_v62, %s5233_s21 }
 0x69a   :  { %4739 = vrot.lane.b32.xlu0 %v4738_v51, %s5233_s21 }
 0x69d   :  { %4734 = vrot.lane.b32.xlu1 %v4733_v49, %s5232_s29 }
 0x69e   :  { %4744 = vrot.lane.b32.xlu0 %v4743_v14, %s5232_s29 }
 0x6a0   :  { %v4524_v55 = vpop.f32.mrb[84].mxu0 }
 0x6a1   :  { %v2666_v32 = vpop.f32.mrb[85].mxu0 }
 0x6a2   :  { %v4525_v53 = vpop.f32.mrb[86].mxu0 }
 0x6a3   :  { %v4783_v36 = vpack.i.bf16 %v4525_v53, %v4524_v55  ;;  %v2669_v19 = vpop.f32.mrb[87].mxu0  ;;  %v4680_v3 = vpop.permute.xlu1 %4679 }
 0x6a4   :  { %v4778_v37 = vpack.i.bf16 %v2669_v19, %v2666_v32  ;;  %v4682_v7 = vunpack.i.h.bf16 %v4680_v3  ;;  %v4681_v52 = vunpack.i.l.bf16 %v4680_v3 }
 0x6a6   :  { %v3030_v48 = vsel %vm714_vm1, %v6714_v58, %v4682_v7  ;;  %v3029_v2 = vsel %vm714_vm1, %v6706_v1, %v4681_v52 }
 0x6a8   :  { %v4540_v29 = vpop.f32.mrb[60].mxu1 }
 0x6a9   :  { %v2743_v56 = vpop.f32.mrb[61].mxu1 }
 0x6aa   :  { %v4541_v11 = vpop.f32.mrb[62].mxu1 }
 0x6ab   :  { %v4748_v20 = vpack.i.bf16 %v4541_v11, %v4540_v29  ;;  %v2746_v33 = vpop.f32.mrb[63].mxu1  ;;  %v4690_v57 = vpop.permute.xlu1 %4689 }
 0x6ac   :  { %v4753_v27 = vpack.i.bf16 %v2746_v33, %v2743_v56  ;;  %v4692_v33 = vunpack.i.h.bf16 %v4690_v57 }
 0x6ad   :  { %4749 = vrot.lane.b32.xlu1 %v4748_v20, %s5233_s21 }
 0x6ae   :  { %4754 = vrot.lane.b32.xlu0 %v4753_v27, %s5233_s21  ;;  %v4691_v27 = vunpack.i.l.bf16 %v4690_v57 }
 0x6b1   :  { %4764 = vrot.lane.b32.xlu1 %v4763_v22, %s5231_s28  ;;  %v4685_v22 = vpop.permute.xlu0 %4684 }
 0x6b2   :  { %4759 = vrot.lane.b32.xlu0 %v4758_v12, %s5231_s28  ;;  %v4687_v50 = vunpack.i.h.bf16 %v4685_v22  ;;  %v4686_v35 = vunpack.i.l.bf16 %v4685_v22 }
 0x6b4   :  { %v3028_v62 = vsel %vm714_vm1, %v6720_v21, %v4687_v50  ;;  %v3027_v34 = vsel %vm714_vm1, %v6710_v24, %v4686_v35 }
 0x6b5   :  { %v4695_v12 = vpop.permute.xlu0 %4694 }
 0x6c4   :  { %v4552_v61 = vpop.f32.mrb[88].mxu0 }
 0x6c5   :  { %v2804_v59 = vpop.f32.mrb[89].mxu0 }
 0x6c6   :  { %v4553_v0 = vpop.f32.mrb[90].mxu0 }
 0x6c7   :  { %v4768_v26 = vpack.i.bf16 %v4553_v0, %v4552_v61  ;;  %v2807_v46 = vpop.f32.mrb[91].mxu0  ;;  %v4700_v8 = vpop.permute.xlu1 %4699  ;;  %v4696_v0 = vunpack.i.l.bf16 %v4695_v12 }
 0x6c8   :  { %v4773_v6 = vpack.i.bf16 %v2807_v46, %v2804_v59  ;;  %v4710_v30 = vpop.permute.xlu0 %4709  ;;  %v4702_v41 = vunpack.i.h.bf16 %v4700_v8  ;;  %v4701_v49 = vunpack.i.l.bf16 %v4700_v8  ;;  %v4697_v59 = vunpack.i.h.bf16 %v4695_v12 }
 0x6c9   :  { %4769 = vrot.lane.b32.xlu1 %v4768_v26, %s5233_s21  ;;  %v4712_v60 = vunpack.i.h.bf16 %v4710_v30  ;;  %v4711_v14 = vunpack.i.l.bf16 %v4710_v30  ;;  %v3031_v3 = vsel %vm714_vm1, %v6727_v43, %v4696_v0 }
 0x6ca   :  { %4774 = vrot.lane.b32.xlu0 %v4773_v6, %s5233_s21  ;;  %v3047_v53 = vsel %vm3043_vm2, %v3030_v48, %v4702_v41 }
 0x6cb   :  { %v6809_v42 = vpop.permute.xlu1 %4704  ;;  %v3045_v1 = vsel %vm3043_vm2, %v3028_v62, %v4712_v60 }
 0x6cc   :  { %v4556_v18 = vpop.f32.mrb[92].mxu0  ;;  %v6811_v45 = vpop.permute.xlu0 %4714  ;;  %v4707_v41 = vunpack.i.h.bf16 %v6809_v42 }
 0x6cd   :  { %4784 = vrot.lane.b32.xlu1 %v4783_v36, %s5232_s29  ;;  %v2820_v5 = vpop.f32.mrb[93].mxu0  ;;  %v3046_v36 = vsel %vm3043_vm2, %v3029_v2, %v4701_v49  ;;  %v4706_v49 = vunpack.i.l.bf16 %v6809_v42  ;;  %v4717_v60 = vunpack.i.h.bf16 %v6811_v45  ;;  %v4716_v48 = vunpack.i.l.bf16 %v6811_v45 }
 0x6ce   :  { %4779 = vrot.lane.b32.xlu0 %v4778_v37, %s5232_s29  ;;  %v4557_v31 = vpop.f32.mrb[94].mxu0  ;;  %v3044_v37 = vsel %vm3043_vm2, %v3027_v34, %v4711_v14 }
 0x6cf   :  { %v4793_v39 = vpack.i.bf16 %v4557_v31, %v4556_v18  ;;  %v2823_v17 = vpop.f32.mrb[95].mxu0  ;;  %v3034_v31 = vsel %vm714_vm1, %v6729_v63, %v4692_v33 }
 0x6d0   :  { %v4788_v13 = vpack.i.bf16 %v2823_v17, %v2820_v5 }
 0x6d1   :  { %4794 = vrot.lane.b32.xlu1 %v4793_v39, %s5233_s21  ;;  %v3033_v39 = vsel %vm714_vm1, %v6725_v38, %v4691_v27 }
 0x6d2   :  { %4789 = vrot.lane.b32.xlu0 %v4788_v13, %s5233_s21  ;;  %v3032_v13 = vsel %vm714_vm1, %v6731_v40, %v4697_v59 }
 0x6d6   :  { %v4720_v28 = vpop.permute.xlu1 %4719 }
 0x6d7   :  { %v4725_v16 = vpop.permute.xlu0 %4724  ;;  %v4722_v46 = vunpack.i.h.bf16 %v4720_v28  ;;  %v4721_v6 = vunpack.i.l.bf16 %v4720_v28 }
 0x6d8   :  { %v4727_v18 = vunpack.i.h.bf16 %v4725_v16  ;;  %v4726_v5 = vunpack.i.l.bf16 %v4725_v16 }
 0x6d9   :  { %v3051_v8 = vsel %vm3043_vm2, %v3034_v31, %v4722_v46  ;;  %v3050_v30 = vsel %vm3043_vm2, %v3033_v39, %v4721_v6 }
 0x6da   :  { %v3048_v63 = vsel %vm3043_vm2, %v3031_v3, %v4726_v5  ;;  %v3049_v38 = vsel %vm3043_vm2, %v3032_v13, %v4727_v18 }
 0x70b   :  { %v4730_v4 = vpop.permute.xlu1 %4729 }
 0x70c   :  { %v4732_v51 = vunpack.i.h.bf16 %v4730_v4  ;;  %v4731_v55 = vunpack.i.l.bf16 %v4730_v4  ;;  %v4740_v32 = vpop.permute.xlu0 %4739 }
 0x70d   :  { %v4742_v19 = vunpack.i.h.bf16 %v4740_v32  ;;  %v4741_v58 = vunpack.i.l.bf16 %v4740_v32  ;;  %v3037_v32 = vsel %vm714_vm1, %v6757_v10, %v4706_v49 }
 0x70e   :  { %v3064_v29 = vsel %vm3060_vm3, %v3047_v53, %v4732_v51  ;;  %v3063_v21 = vsel %vm3060_vm3, %v3046_v36, %v4731_v55  ;;  %v3038_v55 = vsel %vm714_vm1, %v6761_v25, %v4707_v41  ;;  %v3036_v53 = vsel %vm714_vm1, %v6763_v9, %v4717_v60 }
 0x70f   :  { %v3078_v56 = vpack.c.bf16 %v3064_v29, %v3063_v21  ;;  %v3061_v24 = vsel %vm3060_vm3, %v3044_v37, %v4741_v58  ;;  %v3062_v11 = vsel %vm3060_vm3, %v3045_v1, %v4742_v19  ;;  %v4735_v61 = vpop.permute.xlu1 %4734  ;;  %v3035_v36 = vsel %vm714_vm1, %v6759_v44, %v4716_v48 }
 0x710   :  { %v3077_v20 = vpack.c.bf16 %v3062_v11, %v3061_v24  ;;  %v4745_v26 = vpop.permute.xlu0 %4744  ;;  %v4737_v2 = vunpack.i.h.bf16 %v4735_v61  ;;  %v4736_v62 = vunpack.i.l.bf16 %v4735_v61 }
 0x711   :  { %v4746_v34 = vunpack.i.l.bf16 %v4745_v26  ;;  %v4747_v51 = vunpack.i.h.bf16 %v4745_v26 }
 0x712   :  { %4566 = vmatprep.mubr.msk.bf16.mxu1 %vm63_vm0, %v3077_v20  ;;  %v3055_v45 = vsel %vm3043_vm2, %v3038_v55, %v4737_v2  ;;  %v3054_v1 = vsel %vm3043_vm2, %v3037_v32, %v4736_v62 }
 0x713   :  { %4567 = vmatmul.mubr.msk.bf16.vlgmr.msra.gmra.mrb[64].mxu1 %vm63_vm0, %v3078_v56  ;;  %v3052_v29 = vsel %vm3043_vm2, %v3035_v36, %v4746_v34  ;;  %v3053_v10 = vsel %vm3043_vm2, %v3036_v53, %v4747_v51  ;;  %v5212_v51 = vld [vmem:[%s7323_s0 + $0x8] sm:$0xff] }
 0x71f   :  { %v4750_v17 = vpop.permute.xlu1 %4749 }
 0x720   :  { %v4752_v22 = vunpack.i.h.bf16 %v4750_v17  ;;  %v4751_v57 = vunpack.i.l.bf16 %v4750_v17  ;;  %v4755_v12 = vpop.permute.xlu0 %4754 }
 0x721   :  { %v4757_v7 = vunpack.i.h.bf16 %v4755_v12  ;;  %v4756_v52 = vunpack.i.l.bf16 %v4755_v12 }
 0x722   :  { %v3068_v28 = vsel %vm3060_vm3, %v3051_v8, %v4752_v22  ;;  %v3067_v40 = vsel %vm3060_vm3, %v3050_v30, %v4751_v57 }
 0x723   :  { %v3080_v50 = vpack.c.bf16 %v3068_v28, %v3067_v40  ;;  %v3065_v43 = vsel %vm3060_vm3, %v3048_v63, %v4756_v52  ;;  %v3066_v35 = vsel %vm3060_vm3, %v3049_v38, %v4757_v7  ;;  %v4765_v14 = vpop.permute.xlu1 %4764 }
 0x724   :  { %v3079_v16 = vpack.c.bf16 %v3066_v35, %v3065_v43  ;;  %v4760_v4 = vpop.permute.xlu0 %4759  ;;  %v4767_v56 = vunpack.i.h.bf16 %v4765_v14  ;;  %v4766_v11 = vunpack.i.l.bf16 %v4765_v14  ;;  %v5210_v14 = vld [vmem:[%s7323_s0] sm:$0xff] }
 0x725   :  { %v4762_v61 = vunpack.i.h.bf16 %v4760_v4  ;;  %v4761_v59 = vunpack.i.l.bf16 %v4760_v4  ;;  %v5211_v4 = vld [vmem:[%s7323_s0 + $0x10] sm:$0xff] }
 0x726   :  { %4570 = vmatprep.mubr.msk.bf16.mxu1 %vm63_vm0, %v3079_v16  ;;  %v3042_v31 = vsel %vm714_vm1, %v6769_v23, %v4767_v56  ;;  %v3041_v39 = vsel %vm714_vm1, %v6765_v47, %v4766_v11  ;;  %v5215_v11 = vld [vmem:[%s7323_s0 + $0x30] sm:$0xff] }
 0x727   :  { %4571 = vmatmul.mubr.msk.bf16.gmra.mrb[68].mxu1 %vm63_vm0, %v3080_v50  ;;  %v3040_v13 = vsel %vm714_vm1, %v6771_v15, %v4762_v61  ;;  %v3039_v3 = vsel %vm714_vm1, %v6767_v54, %v4761_v59  ;;  %v6892_v50 = vld [vmem:[%s7329_s6] ss:$0 sm:$0xff]  ;;  %v5217_v61 = vld [vmem:[%s7323_s0 + $0x38] sm:$0xff] }
 0x73b   :  { %v4770_v42 = vpop.permute.xlu1 %4769 }
 0x73c   :  { %v4772_v19 = vunpack.i.h.bf16 %v4770_v42  ;;  %v4771_v58 = vunpack.i.l.bf16 %v4770_v42  ;;  %v4775_v37 = vpop.permute.xlu0 %4774  ;;  %v5213_v42 = vld [vmem:[%s7323_s0 + $0x18] sm:$0xff] }
 0x73d   :  { %v4777_v25 = vunpack.i.h.bf16 %v4775_v37  ;;  %v4776_v21 = vunpack.i.l.bf16 %v4775_v37 }
 0x73e   :  { %v3072_v9 = vsel %vm3060_vm3, %v3055_v45, %v4772_v19  ;;  %v3071_v24 = vsel %vm3060_vm3, %v3054_v1, %v4771_v58 }
 0x73f   :  { %v3082_v44 = vpack.c.bf16 %v3072_v9, %v3071_v24  ;;  %v3069_v20 = vsel %vm3060_vm3, %v3052_v29, %v4776_v21  ;;  %v3070_v33 = vsel %vm3060_vm3, %v3053_v10, %v4777_v25  ;;  %v4785_v27 = vpop.permute.xlu1 %4784  ;;  %v5214_v10 = vld [vmem:[%s7323_s0 + $0x20] sm:$0xff] }
 0x740   :  { %v3081_v0 = vpack.c.bf16 %v3070_v33, %v3069_v20  ;;  %v4780_v26 = vpop.permute.xlu0 %4779  ;;  %v4787_v46 = vunpack.i.h.bf16 %v4785_v27  ;;  %v4786_v6 = vunpack.i.l.bf16 %v4785_v27  ;;  %v5216_v20 = vld [vmem:[%s7323_s0 + $0x28] sm:$0xff] }
 0x741   :  { %v4782_v18 = vunpack.i.h.bf16 %v4780_v26  ;;  %v4781_v5 = vunpack.i.l.bf16 %v4780_v26 }
 0x742   :  { %4574 = vmatprep.mubr.msk.bf16.mxu1 %vm63_vm0, %v3081_v0  ;;  %v3059_v8 = vsel %vm3043_vm2, %v3042_v31, %v4787_v46  ;;  %v3058_v30 = vsel %vm3043_vm2, %v3041_v39, %v4786_v6 }
 0x743   :  { %v4795_v17 = vpop.permute.xlu1 %4794  ;;  %4575 = vmatmul.mubr.msk.bf16.gmra.mrb[72].mxu1 %vm63_vm0, %v3082_v44  ;;  %v3056_v47 = vsel %vm3043_vm2, %v3039_v3, %v4781_v5  ;;  %v3057_v52 = vsel %vm3043_vm2, %v3040_v13, %v4782_v18  ;;  %v5218_v13 = vld [vmem:[%s7323_s0 + $0x40] sm:$0xff] }
 0x744   :  { %v4797_v22 = vunpack.i.h.bf16 %v4795_v17  ;;  %v4796_v57 = vunpack.i.l.bf16 %v4795_v17  ;;  %v4790_v12 = vpop.permute.xlu0 %4789 }
 0x745   :  { %v4792_v23 = vunpack.i.h.bf16 %v4790_v12  ;;  %v4791_v7 = vunpack.i.l.bf16 %v4790_v12  ;;  %v5219_v12 = vld [vmem:[%s7323_s0 + $0x50] sm:$0xff] }
 0x746   :  { %v3076_v63 = vsel %vm3060_vm3, %v3059_v8, %v4797_v22  ;;  %v3075_v15 = vsel %vm3060_vm3, %v3058_v30, %v4796_v57  ;;  %v5220_v30 = vld [vmem:[%s7323_s0 + $0x48] sm:$0xff] }
 0x747   :  { %v3084_v38 = vpack.c.bf16 %v3076_v63, %v3075_v15  ;;  %v3073_v54 = vsel %vm3060_vm3, %v3056_v47, %v4791_v7  ;;  %v3074_v28 = vsel %vm3060_vm3, %v3057_v52, %v4792_v23  ;;  %v5221_v47 = vld [vmem:[%s7323_s0 + $0x58] sm:$0xff] }
 0x748   :  { %v3083_v40 = vpack.c.bf16 %v3074_v28, %v3073_v54 }
 0x74a   :  { %4578 = vmatprep.mubr.msk.bf16.mxu1 %vm63_vm0, %v3083_v40 }
 0x74b   :  { %4579 = vmatmul.mubr.msk.bf16.gmra.mrb[76].mxu1 %vm63_vm0, %v3084_v38 }
 0x7e6   :  { %v4568_v43 = vpop.f32.mrb[64].mxu1 }
 0x7e7   :  { %v3182_v35 = vpop.f32.mrb[65].mxu1  ;;  %v3191_v16 = vadd.f32 %v4568_v43, %v6892_v50 }
 0x7e8   :  { %v3183_v41 = vadd.f32 %v6892_v50, %v3182_v35  ;;  %v4569_v49 = vpop.f32.mrb[66].mxu1 }
 0x7e9   :  { %v3185_v60 = vpop.f32.mrb[67].mxu1  ;;  %v6905_v62 = vadd.f32 %v5211_v4, %v3191_v16  ;;  %v3194_v34 = vadd.f32 %v4569_v49, %v6892_v50  ;;  %v5222_v16 = vld [vmem:[%s7323_s0 + $0x60] sm:$0xff] }
 0x7ea   :  { %v6899_v48 = vadd.f32 %v5210_v14, %v3183_v41  ;;  %v3186_v2 = vadd.f32 %v6892_v50, %v3185_v60 }
 0x7eb   :  { %v6920_v36 = vadd.f32 %v5213_v42, %v3194_v34  ;;  %v3269_v45 = vsel %vm63_vm0, %v6905_v62, 0.0  ;;  %v5224_v34 = vld [vmem:[%s7323_s0 + $0x68] sm:$0xff] }
 0x7ec   :  { %v6911_v55 = vadd.f32 %v5212_v51, %v3186_v2  ;;  %v3263_v32 = vsel %vm63_vm0, %v6899_v48, 0.0  ;;  %v5223_v2 = vld [vmem:[%s7323_s0 + $0x70] sm:$0xff] }
 0x7ed   :  { %3264 = vadd.xlane.f32.xlu0 %v3263_v32  ;;  %v3272_v19 = vsel %vm63_vm0, %v6920_v36, 0.0 }
 0x7ee   :  { %v3266_v53 = vsel %vm63_vm0, %v6911_v55, 0.0 }
 0x7ef   :  { %3267 = vadd.xlane.f32.xlu1 %v3266_v53 }
 0x7f1   :  { %3270 = vadd.xlane.f32.xlu0 %v3269_v45 }
 0x7f5   :  { %3273 = vadd.xlane.f32.xlu0 %v3272_v19 }
 0x7fa   :  { %v4572_v58 = vpop.f32.mrb[68].mxu1 }
 0x7fb   :  { %v3198_v37 = vpop.f32.mrb[69].mxu1  ;;  %v3207_v1 = vadd.f32 %v4572_v58, %v6892_v50 }
 0x7fc   :  { %v3199_v29 = vadd.f32 %v6892_v50, %v3198_v37  ;;  %v4573_v25 = vpop.f32.mrb[70].mxu1 }
 0x7fd   :  { %v3201_v21 = vpop.f32.mrb[71].mxu1  ;;  %v3210_v9 = vadd.f32 %v4573_v25, %v6892_v50  ;;  %v6938_v44 = vadd.f32 %v5215_v11, %v3207_v1 }
 0x7fe   :  { %v6931_v56 = vadd.f32 %v5214_v10, %v3199_v29  ;;  %v3202_v24 = vadd.f32 %v6892_v50, %v3201_v21 }
 0x7ff   :  { %v6950_v59 = vadd.f32 %v5217_v61, %v3210_v9  ;;  %v3281_v26 = vsel %vm63_vm0, %v6938_v44, 0.0 }
 0x800   :  { %v6943_v33 = vadd.f32 %v5216_v20, %v3202_v24  ;;  %v3275_v27 = vsel %vm63_vm0, %v6931_v56, 0.0 }
 0x801   :  { %3276 = vadd.xlane.f32.xlu0 %v3275_v27  ;;  %v3284_v46 = vsel %vm63_vm0, %v6950_v59, 0.0 }
 0x802   :  { %v3278_v0 = vsel %vm63_vm0, %v6943_v33, 0.0 }
 0x803   :  { %3279 = vadd.xlane.f32.xlu1 %v3278_v0 }
 0x805   :  { %3282 = vadd.xlane.f32.xlu0 %v3281_v26 }
 0x807   :  { %3285 = vadd.xlane.f32.xlu1 %v3284_v46 }
 0x816   :  { %v4576_v6 = vpop.f32.mrb[72].mxu1 }
 0x817   :  { %v3214_v18 = vpop.f32.mrb[73].mxu1  ;;  %v3223_v5 = vadd.f32 %v4576_v6, %v6892_v50 }
 0x818   :  { %v3215_v31 = vadd.f32 %v6892_v50, %v3214_v18  ;;  %v4577_v39 = vpop.f32.mrb[74].mxu1 }
 0x819   :  { %v3217_v17 = vpop.f32.mrb[75].mxu1  ;;  %v3226_v22 = vadd.f32 %v4577_v39, %v6892_v50  ;;  %v6970_v8 = vadd.f32 %v5219_v12, %v3223_v5 }
 0x81a   :  { %v6963_v3 = vadd.f32 %v5218_v13, %v3215_v31  ;;  %v3218_v57 = vadd.f32 %v6892_v50, %v3217_v17 }
 0x81b   :  { %v6982_v52 = vadd.f32 %v5221_v47, %v3226_v22  ;;  %v3293_v43 = vsel %vm63_vm0, %v6970_v8, 0.0 }
 0x81c   :  { %v6975_v23 = vadd.f32 %v5220_v30, %v3218_v57  ;;  %v3287_v7 = vsel %vm63_vm0, %v6963_v3, 0.0 }
 0x81d   :  { %3288 = vadd.xlane.f32.xlu0 %v3287_v7  ;;  %v3296_v14 = vsel %vm63_vm0, %v6982_v52, 0.0 }
 0x81e   :  { %v4580_v63 = vpop.f32.mrb[76].mxu1  ;;  %v3290_v15 = vsel %vm63_vm0, %v6975_v23, 0.0 }
 0x81f   :  { %v3230_v38 = vpop.f32.mrb[77].mxu1  ;;  %3291 = vadd.xlane.f32.xlu1 %v3290_v15  ;;  %v3239_v54 = vadd.f32 %v4580_v63, %v6892_v50 }
 0x820   :  { %v3231_v28 = vadd.f32 %v6892_v50, %v3230_v38  ;;  %v4581_v40 = vpop.f32.mrb[78].mxu1 }
 0x821   :  { %v3233_v35 = vpop.f32.mrb[79].mxu1  ;;  %3294 = vadd.xlane.f32.xlu0 %v3293_v43  ;;  %v3242_v49 = vadd.f32 %v4581_v40, %v6892_v50  ;;  %v7002_v4 = vadd.f32 %v5223_v2, %v3239_v54  ;;  %v4815_v2 = vld [vmem:[%s7330_s9 + $0x8] sm:$0xff]  }
 0x822   :  { %v6993_v41 = vadd.f32 %v5222_v16, %v3231_v28  ;;  %v3234_v60 = vadd.f32 %v6892_v50, %v3233_v35  ;;  %v5225_v50 = vld [vmem:[%s7323_s0 + $0x78] sm:$0xff] }
 0x823   :  { %3297 = vadd.xlane.f32.xlu1 %v3296_v14  ;;  %v7014_v53 = vadd.f32 %v5225_v50, %v3242_v49  ;;  %v3305_v45 = vsel %vm63_vm0, %v7002_v4, 0.0  ;;  %v4814_v14 = vld [vmem:[%s7330_s9] sm:$0xff]  }
 0x824   :  { %v7007_v51 = vadd.f32 %v5224_v34, %v3234_v60  ;;  %v3299_v32 = vsel %vm63_vm0, %v6993_v41, 0.0  ;;  %4582 = vmatprep.subr.bf16.mxu0 %v4814_v14  ;;  %v4816_v34 = vld [vmem:[%s7330_s9 + $0x10] sm:$0xff]  }
 0x825   :  { %3300 = vadd.xlane.f32.xlu0 %v3299_v32  ;;  %v3308_v19 = vsel %vm63_vm0, %v7014_v53, 0.0  ;;  %4583 = vmatpush3.bf16.msra.mxu0 %v4814_v14 }
 0x826   :  { %v3302_v42 = vsel %vm63_vm0, %v7007_v51, 0.0  ;;  %4584 = vmatprep.subr.bf16.mxu0 %v4815_v2 }
 0x827   :  { %3303 = vadd.xlane.f32.xlu1 %v3302_v42  ;;  %v4817_v42 = vld [vmem:[%s7330_s9 + $0x18] sm:$0xff]  }
 0x829   :  { %3306 = vadd.xlane.f32.xlu0 %v3305_v45  ;;  %4585 = vmatpush3.bf16.msra.mxu0 %v4815_v2 }
 0x82a   :  { %4586 = vmatprep.subr.bf16.mxu0 %v4816_v34 }
 0x82b   :  { %3309 = vadd.xlane.f32.xlu1 %v3308_v19 }
 0x82d   :  { %4587 = vmatpush3.bf16.msra.mxu0 %v4816_v34 }
 0x82e   :  { %4588 = vmatprep.subr.bf16.mxu0 %v4817_v42 }
 0x831   :  { %4589 = vmatpush3.bf16.msra.mxu0 %v4817_v42 }
 0x87a   :  { %v3265_v58 = vpop.xlane.xlu0 %3264 }
 0x87b   :  { %v3311_v37 = vmul.f32 0.015625, %v3265_v58 }
 0x87c   :  { %v3268_v1 = vpop.xlane.xlu1 %3267 }
 0x87d   :  { %v7023_v29 = vsub.f32 %v6899_v48, %v3311_v37  ;;  %v3312_v25 = vmul.f32 0.015625, %v3268_v1 }
 0x87e   :  { %v3271_v21 = vpop.xlane.xlu0 %3270 }
 0x87f   :  { %v7026_v10 = vsub.f32 %v6911_v55, %v3312_v25  ;;  %v3313_v9 = vmul.f32 0.015625, %v3271_v21  ;;  %v3343_v24 = vmul.f32 %v7023_v29, %v7023_v29 }
 0x881   :  { %v7031_v11 = vsub.f32 %v6905_v62, %v3313_v9  ;;  %v3359_v20 = vsel %vm63_vm0, %v3343_v24, 0.0  ;;  %v3344_v27 = vmul.f32 %v7026_v10, %v7026_v10 }
 0x882   :  { %3360 = vadd.xlane.f32.xlu0 %v3359_v20  ;;  %v3274_v61 = vpop.xlane.xlu0 %3273 }
 0x883   :  { %v3314_v0 = vmul.f32 0.015625, %v3274_v61  ;;  %v3362_v26 = vsel %vm63_vm0, %v3344_v27, 0.0  ;;  %v3345_v46 = vmul.f32 %v7031_v11, %v7031_v11 }
 0x884   :  { %3363 = vadd.xlane.f32.xlu1 %v3362_v26 }
 0x885   :  { %v7040_v6 = vsub.f32 %v6920_v36, %v3314_v0  ;;  %v3365_v18 = vsel %vm63_vm0, %v3345_v46, 0.0 }
 0x886   :  { %3366 = vadd.xlane.f32.xlu0 %v3365_v18 }
 0x887   :  { %v3346_v5 = vmul.f32 %v7040_v6, %v7040_v6 }
 0x889   :  { %v3368_v31 = vsel %vm63_vm0, %v3346_v5, 0.0 }
 0x88a   :  { %3369 = vadd.xlane.f32.xlu1 %v3368_v31 }
 0x88e   :  { %v3277_v39 = vpop.xlane.xlu0 %3276 }
 0x88f   :  { %v3315_v17 = vmul.f32 0.015625, %v3277_v39 }
 0x890   :  { %v3280_v13 = vpop.xlane.xlu1 %3279 }
 0x891   :  { %v7047_v22 = vsub.f32 %v6931_v56, %v3315_v17  ;;  %v3316_v57 = vmul.f32 0.015625, %v3280_v13 }
 0x892   :  { %v3283_v12 = vpop.xlane.xlu0 %3282 }
 0x893   :  { %v7050_v30 = vsub.f32 %v6943_v33, %v3316_v57  ;;  %v3317_v7 = vmul.f32 0.015625, %v3283_v12  ;;  %v3347_v47 = vmul.f32 %v7047_v22, %v7047_v22 }
 0x894   :  { %v3286_v63 = vpop.xlane.xlu1 %3285 }
 0x895   :  { %v7055_v15 = vsub.f32 %v6938_v44, %v3317_v7  ;;  %v3318_v38 = vmul.f32 0.015625, %v3286_v63  ;;  %v3371_v54 = vsel %vm63_vm0, %v3347_v47, 0.0  ;;  %v3348_v28 = vmul.f32 %v7050_v30, %v7050_v30 }
 0x896   :  { %3372 = vadd.xlane.f32.xlu0 %v3371_v54 }
 0x897   :  { %v7061_v40 = vsub.f32 %v6950_v59, %v3318_v38  ;;  %v3374_v43 = vsel %vm63_vm0, %v3348_v28, 0.0  ;;  %v3349_v35 = vmul.f32 %v7055_v15, %v7055_v15 }
 0x898   :  { %3375 = vadd.xlane.f32.xlu1 %v3374_v43 }
 0x899   :  { %v3377_v16 = vsel %vm63_vm0, %v3349_v35, 0.0  ;;  %v3350_v49 = vmul.f32 %v7061_v40, %v7061_v40 }
 0x89a   :  { %3378 = vadd.xlane.f32.xlu0 %v3377_v16 }
 0x89b   :  { %v3380_v60 = vsel %vm63_vm0, %v3350_v49, 0.0 }
 0x89c   :  { %3381 = vadd.xlane.f32.xlu1 %v3380_v60 }
 0x8aa   :  { %v3289_v32 = vpop.xlane.xlu0 %3288 }
 0x8ab   :  { %v3319_v50 = vmul.f32 0.015625, %v3289_v32 }
 0x8ac   :  { %v3292_v45 = vpop.xlane.xlu1 %3291 }
 0x8ad   :  { %v7083_v19 = vsub.f32 %v6963_v3, %v3319_v50  ;;  %v3320_v58 = vmul.f32 0.015625, %v3292_v45 }
 0x8ae   :  { %v3295_v37 = vpop.xlane.xlu0 %3294 }
 0x8af   :  { %v7086_v1 = vsub.f32 %v6975_v23, %v3320_v58  ;;  %v3321_v25 = vmul.f32 0.015625, %v3295_v37  ;;  %v3351_v21 = vmul.f32 %v7083_v19, %v7083_v19 }
 0x8b0   :  { %v3298_v9 = vpop.xlane.xlu1 %3297 }
 0x8b1   :  { %v7091_v24 = vsub.f32 %v6970_v8, %v3321_v25  ;;  %v3322_v20 = vmul.f32 0.015625, %v3298_v9  ;;  %v3383_v27 = vsel %vm63_vm0, %v3351_v21, 0.0  ;;  %v3352_v61 = vmul.f32 %v7086_v1, %v7086_v1 }
 0x8b2   :  { %3384 = vadd.xlane.f32.xlu0 %v3383_v27  ;;  %v3301_v0 = vpop.xlane.xlu0 %3300 }
 0x8b3   :  { %v7097_v26 = vsub.f32 %v6982_v52, %v3322_v20  ;;  %v3323_v46 = vmul.f32 0.015625, %v3301_v0  ;;  %v3386_v18 = vsel %vm63_vm0, %v3352_v61, 0.0  ;;  %v3353_v5 = vmul.f32 %v7091_v24, %v7091_v24 }
 0x8b4   :  { %v3304_v31 = vpop.xlane.xlu1 %3303  ;;  %3387 = vadd.xlane.f32.xlu1 %v3386_v18  ;;  %v7133_v18 = vld [vmem:[%s7331_s7] ss:$0 sm:$0xff] }
 0x8b5   :  { %v7103_v39 = vsub.f32 %v6993_v41, %v3323_v46  ;;  %v3324_v17 = vmul.f32 0.015625, %v3304_v31  ;;  %v3389_v13 = vsel %vm63_vm0, %v3353_v5, 0.0  ;;  %v3354_v57 = vmul.f32 %v7097_v26, %v7097_v26 }
 0x8b6   :  { %3390 = vadd.xlane.f32.xlu0 %v3389_v13  ;;  %v3307_v12 = vpop.xlane.xlu0 %3306 }
 0x8b7   :  { %v7109_v7 = vsub.f32 %v7007_v51, %v3324_v17  ;;  %v3325_v47 = vmul.f32 0.015625, %v3307_v12  ;;  %v3392_v63 = vsel %vm63_vm0, %v3354_v57, 0.0  ;;  %v3355_v38 = vmul.f32 %v7103_v39, %v7103_v39  ;;  %v7141_v12 = vld [vmem:[%s7332_s8] ss:$0 sm:$0xff] }
 0x8b8   :  { %v3310_v54 = vpop.xlane.xlu1 %3309  ;;  %3393 = vadd.xlane.f32.xlu1 %v3392_v63 }
 0x8b9   :  { %v7115_v28 = vsub.f32 %v7002_v4, %v3325_v47  ;;  %v3326_v43 = vmul.f32 0.015625, %v3310_v54  ;;  %v3395_v35 = vsel %vm63_vm0, %v3355_v38, 0.0  ;;  %v3356_v16 = vmul.f32 %v7109_v7, %v7109_v7 }
 0x8ba   :  { %3396 = vadd.xlane.f32.xlu0 %v3395_v35 }
 0x8bb   :  { %v7121_v49 = vsub.f32 %v7014_v53, %v3326_v43  ;;  %v3398_v60 = vsel %vm63_vm0, %v3356_v16, 0.0  ;;  %v3357_v14 = vmul.f32 %v7115_v28, %v7115_v28 }
 0x8bc   :  { %3399 = vadd.xlane.f32.xlu1 %v3398_v60 }
 0x8bd   :  { %v3401_v2 = vsel %vm63_vm0, %v3357_v14, 0.0  ;;  %v3358_v34 = vmul.f32 %v7121_v49, %v7121_v49 }
 0x8be   :  { %3402 = vadd.xlane.f32.xlu0 %v3401_v2 }
 0x8bf   :  { %v3404_v32 = vsel %vm63_vm0, %v3358_v34, 0.0 }
 0x8c0   :  { %3405 = vadd.xlane.f32.xlu1 %v3404_v32 }
 0x90f   :  { %v3361_v50 = vpop.xlane.xlu0 %3360 }
 0x910   :  { %v3407_v42 = vmul.f32 0.015625, %v3361_v50 }
 0x911   :  { %v3364_v45 = vpop.xlane.xlu1 %3363 }
 0x912   :  { %v3423_v58 = vadd.f32 1e-05, %v3407_v42  ;;  %v3408_v37 = vmul.f32 0.015625, %v3364_v45 }
 0x913   :  { %v3367_v25 = vpop.xlane.xlu0 %3366 }
 0x914   :  { %5110 = vrsqrt.f32 %v3423_v58  ;;  %v3424_v21 = vadd.f32 1e-05, %v3408_v37  ;;  %v3409_v9 = vmul.f32 0.015625, %v3367_v25 }
 0x916   :  { %5112 = vrsqrt.f32 %v3424_v21  ;;  %v3425_v20 = vadd.f32 1e-05, %v3409_v9 }
 0x917   :  { %v3370_v27 = vpop.xlane.xlu1 %3369 }
 0x918   :  { %5114 = vrsqrt.f32 %v3425_v20  ;;  %v3410_v61 = vmul.f32 0.015625, %v3370_v27 }
 0x91a   :  { %v3426_v0 = vadd.f32 1e-05, %v3410_v61 }
 0x91c   :  { %5116 = vrsqrt.f32 %v3426_v0 }
 0x91e   :  { %v5111_v46 = vpop.eup %5110 }
 0x91f   :  { %v3455_v5 = vmul.f32 %v5111_v46, %v7023_v29 }
 0x920   :  { %v5113_v31 = vpop.eup %5112 }
 0x921   :  { %v3456_v17 = vmul.f32 %v5113_v31, %v7026_v10  ;;  %v3477_v13 = vmul.f32 %v7133_v18, %v3455_v5 }
 0x922   :  { %v5115_v57 = vpop.eup %5114 }
 0x923   :  { %v3457_v47 = vmul.f32 %v5115_v57, %v7031_v11  ;;  %v3373_v63 = vpop.xlane.xlu0 %3372  ;;  %v3478_v38 = vmul.f32 %v7133_v18, %v3456_v17  ;;  %v3499_v29 = vadd.f32 %v7141_v12, %v3477_v13 }
 0x924   :  { %v3411_v54 = vmul.f32 0.015625, %v3373_v63 }
 0x925   :  { %v3376_v43 = vpop.xlane.xlu1 %3375  ;;  %v3500_v35 = vadd.f32 %v7141_v12, %v3478_v38  ;;  %v3479_v14 = vmul.f32 %v7133_v18, %v3457_v47 }
 0x926   :  { %v5117_v10 = vpop.eup %5116  ;;  %v3427_v16 = vadd.f32 1e-05, %v3411_v54  ;;  %v3412_v60 = vmul.f32 0.015625, %v3376_v43 }
 0x927   :  { %v3458_v2 = vmul.f32 %v5117_v10, %v7040_v6  ;;  %v3379_v34 = vpop.xlane.xlu0 %3378  ;;  %v3515_v32 = vpack.c.bf16 %v3500_v35, %v3499_v29  ;;  %v3501_v25 = vadd.f32 %v7141_v12, %v3479_v14 }
 0x928   :  { %5118 = vrsqrt.f32 %v3427_v16  ;;  %v3428_v11 = vadd.f32 1e-05, %v3412_v60  ;;  %v3413_v50 = vmul.f32 0.015625, %v3379_v34 }
 0x929   :  { %v3480_v42 = vmul.f32 %v7133_v18, %v3458_v2  ;;  %v3382_v45 = vpop.xlane.xlu1 %3381  ;;  %4590 = vmatprep.mubr.msk.bf16.mxu0 %vm63_vm0, %v3515_v32 }
 0x92a   :  { %5120 = vrsqrt.f32 %v3428_v11  ;;  %v3429_v58 = vadd.f32 1e-05, %v3413_v50  ;;  %v3414_v37 = vmul.f32 0.015625, %v3382_v45 }
 0x92b   :  { %v3502_v21 = vadd.f32 %v7141_v12, %v3480_v42 }
 0x92c   :  { %5122 = vrsqrt.f32 %v3429_v58  ;;  %v3430_v9 = vadd.f32 1e-05, %v3414_v37 }
 0x92d   :  { %v3516_v6 = vpack.c.bf16 %v3502_v21, %v3501_v25 }
 0x92e   :  { %5124 = vrsqrt.f32 %v3430_v9 }
 0x92f   :  { %4591 = vmatmul.mubr.msk.bf16.vlgmr.msra.gmra.mrb[96].mxu0 %vm63_vm0, %v3516_v6 }
 0x932   :  { %v5119_v20 = vpop.eup %5118 }
 0x933   :  { %v3459_v27 = vmul.f32 %v5119_v20, %v7047_v22 }
 0x934   :  { %v5121_v61 = vpop.eup %5120 }
 0x935   :  { %v3460_v0 = vmul.f32 %v5121_v61, %v7050_v30  ;;  %v3481_v46 = vmul.f32 %v7133_v18, %v3459_v27 }
 0x936   :  { %v5123_v5 = vpop.eup %5122 }
 0x937   :  { %v3461_v31 = vmul.f32 %v5123_v5, %v7055_v15  ;;  %v3482_v17 = vmul.f32 %v7133_v18, %v3460_v0  ;;  %v3503_v47 = vadd.f32 %v7141_v12, %v3481_v46 }
 0x938   :  { %v5125_v13 = vpop.eup %5124 }
 0x939   :  { %v3462_v57 = vmul.f32 %v5125_v13, %v7061_v40  ;;  %v3504_v63 = vadd.f32 %v7141_v12, %v3482_v17  ;;  %v3483_v38 = vmul.f32 %v7133_v18, %v3461_v31 }
 0x93b   :  { %v3517_v22 = vpack.c.bf16 %v3504_v63, %v3503_v47  ;;  %v3484_v54 = vmul.f32 %v7133_v18, %v3462_v57  ;;  %v3505_v30 = vadd.f32 %v7141_v12, %v3483_v38 }
 0x93d   :  { %4594 = vmatprep.mubr.msk.bf16.mxu0 %vm63_vm0, %v3517_v22  ;;  %v3506_v15 = vadd.f32 %v7141_v12, %v3484_v54 }
 0x93f   :  { %v3385_v43 = vpop.xlane.xlu0 %3384  ;;  %v3518_v29 = vpack.c.bf16 %v3506_v15, %v3505_v30 }
 0x940   :  { %v3415_v35 = vmul.f32 0.015625, %v3385_v43 }
 0x941   :  { %v3388_v10 = vpop.xlane.xlu1 %3387  ;;  %4595 = vmatmul.mubr.msk.bf16.gmra.mrb[100].mxu0 %vm63_vm0, %v3518_v29 }
 0x942   :  { %v3431_v40 = vadd.f32 1e-05, %v3415_v35  ;;  %v3416_v16 = vmul.f32 0.015625, %v3388_v10 }
 0x943   :  { %v3391_v60 = vpop.xlane.xlu0 %3390 }
 0x944   :  { %5126 = vrsqrt.f32 %v3431_v40  ;;  %v3432_v14 = vadd.f32 1e-05, %v3416_v16  ;;  %v3417_v2 = vmul.f32 0.015625, %v3391_v60 }
 0x945   :  { %v3394_v34 = vpop.xlane.xlu1 %3393 }
 0x946   :  { %5128 = vrsqrt.f32 %v3432_v14  ;;  %v3433_v32 = vadd.f32 1e-05, %v3417_v2  ;;  %v3418_v11 = vmul.f32 0.015625, %v3394_v34 }
 0x947   :  { %v3397_v50 = vpop.xlane.xlu0 %3396 }
 0x948   :  { %5130 = vrsqrt.f32 %v3433_v32  ;;  %v3434_v42 = vadd.f32 1e-05, %v3418_v11  ;;  %v3419_v45 = vmul.f32 0.015625, %v3397_v50 }
 0x949   :  { %v3400_v58 = vpop.xlane.xlu1 %3399 }
 0x94a   :  { %5132 = vrsqrt.f32 %v3434_v42  ;;  %v3435_v37 = vadd.f32 1e-05, %v3419_v45  ;;  %v3420_v25 = vmul.f32 0.015625, %v3400_v58 }
 0x94b   :  { %v3403_v21 = vpop.xlane.xlu0 %3402 }
 0x94c   :  { %5134 = vrsqrt.f32 %v3435_v37  ;;  %v3436_v9 = vadd.f32 1e-05, %v3420_v25  ;;  %v3421_v6 = vmul.f32 0.015625, %v3403_v21  ;;  %v4821_v37 = vld [vmem:[%s7333_s11 + $0x18] sm:$0xff]   ;;  %v7211_v25 = vld [vmem:[%s7334_s10] ss:$0 sm:$0xff] }
 0x94d   :  { %v3406_v20 = vpop.xlane.xlu1 %3405 }
 0x94e   :  { %v5127_v27 = vpop.eup %5126  ;;  %5136 = vrsqrt.f32 %v3436_v9  ;;  %v3437_v61 = vadd.f32 1e-05, %v3421_v6  ;;  %v3422_v0 = vmul.f32 0.015625, %v3406_v20 }
 0x94f   :  { %v3463_v46 = vmul.f32 %v5127_v27, %v7083_v19 }
 0x950   :  { %v5129_v5 = vpop.eup %5128  ;;  %5138 = vrsqrt.f32 %v3437_v61  ;;  %v3438_v31 = vadd.f32 1e-05, %v3422_v0 }
 0x951   :  { %v3464_v17 = vmul.f32 %v5129_v5, %v7086_v1  ;;  %v3485_v13 = vmul.f32 %v7133_v18, %v3463_v46 }
 0x952   :  { %v5131_v57 = vpop.eup %5130  ;;  %5140 = vrsqrt.f32 %v3438_v31 }
 0x953   :  { %v3465_v47 = vmul.f32 %v5131_v57, %v7091_v24  ;;  %v3486_v63 = vmul.f32 %v7133_v18, %v3464_v17  ;;  %v3507_v54 = vadd.f32 %v7141_v12, %v3485_v13 }
 0x954   :  { %v5133_v38 = vpop.eup %5132 }
 0x955   :  { %v3466_v22 = vmul.f32 %v5133_v38, %v7097_v26  ;;  %v3508_v19 = vadd.f32 %v7141_v12, %v3486_v63  ;;  %v3487_v30 = vmul.f32 %v7133_v18, %v3465_v47 }
 0x956   :  { %v5135_v15 = vpop.eup %5134 }
 0x957   :  { %v3467_v1 = vmul.f32 %v5135_v15, %v7103_v39  ;;  %v3519_v43 = vpack.c.bf16 %v3508_v19, %v3507_v54  ;;  %v3488_v29 = vmul.f32 %v7133_v18, %v3466_v22  ;;  %v3509_v10 = vadd.f32 %v7141_v12, %v3487_v30 }
 0x958   :  { %v5137_v35 = vpop.eup %5136 }
 0x959   :  { %v3468_v24 = vmul.f32 %v5137_v35, %v7109_v7  ;;  %4598 = vmatprep.mubr.msk.bf16.mxu0 %vm63_vm0, %v3519_v43  ;;  %v3510_v26 = vadd.f32 %v7141_v12, %v3488_v29  ;;  %v3489_v40 = vmul.f32 %v7133_v18, %v3467_v1 }
 0x95a   :  { %v5139_v16 = vpop.eup %5138 }
 0x95b   :  { %v3469_v60 = vmul.f32 %v5139_v16, %v7115_v28  ;;  %v3520_v14 = vpack.c.bf16 %v3510_v26, %v3509_v10  ;;  %v3490_v39 = vmul.f32 %v7133_v18, %v3468_v24  ;;  %v3511_v7 = vadd.f32 %v7141_v12, %v3489_v40 }
 0x95c   :  { %v5141_v2 = vpop.eup %5140 }
 0x95d   :  { %v3470_v34 = vmul.f32 %v5141_v2, %v7121_v49  ;;  %4599 = vmatmul.mubr.msk.bf16.gmra.mrb[104].mxu0 %vm63_vm0, %v3520_v14  ;;  %v3512_v32 = vadd.f32 %v7141_v12, %v3490_v39  ;;  %v3491_v11 = vmul.f32 %v7133_v18, %v3469_v60  ;;  %v4818_v49 = vld [vmem:[%s7333_s11] sm:$0xff]  }
 0x95e   :  { %4606 = vmatprep.subr.bf16.mxu0 %v4818_v49  ;;  %4630 = vmatprep.subr.bf16.mxu1 %v4818_v49 }
 0x95f   :  { %v3521_v50 = vpack.c.bf16 %v3512_v32, %v3511_v7  ;;  %v3492_v42 = vmul.f32 %v7133_v18, %v3470_v34  ;;  %v3513_v28 = vadd.f32 %v7141_v12, %v3491_v11  ;;  %4607 = vmatpush3.bf16.msra.mxu0 %v4818_v49  ;;  %4634 = vmatpush3.bf16.msra.mxu1 %v4818_v49  ;;  %v4819_v18 = vld [vmem:[%s7333_s11 + $0x8] sm:$0xff]  }
 0x960   :  { %4608 = vmatprep.subr.bf16.mxu0 %v4819_v18  ;;  %4631 = vmatprep.subr.bf16.mxu1 %v4819_v18 }
 0x961   :  { %4602 = vmatprep.mubr.msk.bf16.mxu0 %vm63_vm0, %v3521_v50  ;;  %v3514_v45 = vadd.f32 %v7141_v12, %v3492_v42  ;;  %v4820_v12 = vld [vmem:[%s7333_s11 + $0x10] sm:$0xff]  }
 0x963   :  { %v3522_v58 = vpack.c.bf16 %v3514_v45, %v3513_v28  ;;  %4609 = vmatpush3.bf16.msra.mxu0 %v4819_v18  ;;  %4635 = vmatpush3.bf16.msra.mxu1 %v4819_v18 }
 0x964   :  { %4610 = vmatprep.subr.bf16.mxu0 %v4820_v12  ;;  %4632 = vmatprep.subr.bf16.mxu1 %v4820_v12 }
 0x965   :  { %4603 = vmatmul.mubr.msk.bf16.gmra.mrb[108].mxu0 %vm63_vm0, %v3522_v58 }
 0x967   :  { %4611 = vmatpush3.bf16.msra.mxu0 %v4820_v12  ;;  %4636 = vmatpush3.bf16.msra.mxu1 %v4820_v12 }
 0x968   :  { %4612 = vmatprep.subr.bf16.mxu0 %v4821_v37  ;;  %4633 = vmatprep.subr.bf16.mxu1 %v4821_v37 }
 0x96b   :  { %4613 = vmatpush3.bf16.msra.mxu0 %v4821_v37  ;;  %4637 = vmatpush3.bf16.msra.mxu1 %v4821_v37 }
 0xa02   :  { %v4592_v21 = vpop.f32.mrb[96].mxu0 }
 0xa03   :  { %v3629_v9 = vadd.f32 %v4592_v21, %v7211_v25  ;;  %v3620_v6 = vpop.f32.mrb[97].mxu0 }
 0xa04   :  { %v3621_v20 = vadd.f32 %v7211_v25, %v3620_v6  ;;  %v4593_v27 = vpop.f32.mrb[98].mxu0 }
 0xa05   :  { %v3685_v61 = vsub.f32 0.0, %v3629_v9  ;;  %v3632_v0 = vadd.f32 %v4593_v27, %v7211_v25  ;;  %v3623_v46 = vpop.f32.mrb[99].mxu0 }
 0xa06   :  { %v3683_v5 = vsub.f32 0.0, %v3621_v20  ;;  %v3624_v31 = vadd.f32 %v7211_v25, %v3623_v46 }
 0xa07   :  { %v3703_v17 = vmul.f32 1.442695, %v3685_v61  ;;  %v3686_v13 = vsub.f32 0.0, %v3632_v0 }
 0xa08   :  { %v3699_v57 = vmul.f32 1.442695, %v3683_v5  ;;  %v3684_v47 = vsub.f32 0.0, %v3624_v31 }
 0xa09   :  { %5142 = vpow2.f32 %v3703_v17  ;;  %v3705_v63 = vmul.f32 1.442695, %v3686_v13 }
 0xa0a   :  { %5144 = vpow2.f32 %v3699_v57  ;;  %v3701_v38 = vmul.f32 1.442695, %v3684_v47 }
 0xa0b   :  { %5146 = vpow2.f32 %v3705_v63 }
 0xa0c   :  { %5148 = vpow2.f32 %v3701_v38 }
 0xa13   :  { %v5143_v22 = vpop.eup %5142 }
 0xa14   :  { %v5145_v54 = vpop.eup %5144  ;;  %v3733_v19 = vadd.f32 1.0, %v5143_v22  ;;  %v4596_v30 = vpop.f32.mrb[100].mxu0 }
 0xa15   :  { %v5147_v15 = vpop.eup %5146  ;;  %v3731_v1 = vadd.f32 1.0, %v5145_v54  ;;  %v7218_v43 = vadd.f32 %v4596_v30, %v7211_v25  ;;  %v3636_v29 = vpop.f32.mrb[101].mxu0 }
 0xa16   :  { %v5149_v35 = vpop.eup %5148  ;;  %5150 = vrcp.f32 %v3733_v19  ;;  %v3734_v24 = vadd.f32 1.0, %v5147_v15  ;;  %v7221_v10 = vadd.f32 %v7211_v25, %v3636_v29  ;;  %v4597_v26 = vpop.f32.mrb[102].mxu0 }
 0xa17   :  { %5152 = vrcp.f32 %v3731_v1  ;;  %v3732_v40 = vadd.f32 1.0, %v5149_v35  ;;  %v3689_v16 = vsub.f32 0.0, %v7218_v43  ;;  %v3648_v60 = vadd.f32 %v4597_v26, %v7211_v25  ;;  %v3639_v14 = vpop.f32.mrb[103].mxu0 }
 0xa18   :  { %5154 = vrcp.f32 %v3734_v24  ;;  %v3687_v39 = vsub.f32 0.0, %v7221_v10  ;;  %v3640_v2 = vadd.f32 %v7211_v25, %v3639_v14 }
 0xa19   :  { %5156 = vrcp.f32 %v3732_v40  ;;  %v3711_v34 = vmul.f32 1.442695, %v3689_v16  ;;  %v3690_v7 = vsub.f32 0.0, %v3648_v60 }
 0xa1a   :  { %v3707_v32 = vmul.f32 1.442695, %v3687_v39  ;;  %v3688_v11 = vsub.f32 0.0, %v3640_v2 }
 0xa1b   :  { %5158 = vpow2.f32 %v3711_v34  ;;  %v3713_v50 = vmul.f32 1.442695, %v3690_v7 }
 0xa1c   :  { %5160 = vpow2.f32 %v3707_v32  ;;  %v3709_v42 = vmul.f32 1.442695, %v3688_v11 }
 0xa1d   :  { %5162 = vpow2.f32 %v3713_v50 }
 0xa1e   :  { %5164 = vpow2.f32 %v3709_v42 }
 0xa20   :  { %v5151_v28 = vpop.eup %5150 }
 0xa21   :  { %v5153_v45 = vpop.eup %5152  ;;  %v3765_v18 = vmul.f32 %v5151_v28, %v3629_v9 }
 0xa22   :  { %v5155_v58 = vpop.eup %5154  ;;  %v3763_v37 = vmul.f32 %v5153_v45, %v3621_v20 }
 0xa23   :  { %v5157_v49 = vpop.eup %5156  ;;  %v3766_v12 = vmul.f32 %v5155_v58, %v3632_v0 }
 0xa24   :  { %v3764_v21 = vmul.f32 %v5157_v49, %v3624_v31 }
 0xa25   :  { %v5159_v6 = vpop.eup %5158  ;;  %v3780_v27 = vpack.c.bf16 %v3766_v12, %v3765_v18 }
 0xa26   :  { %v5161_v61 = vpop.eup %5160  ;;  %v3779_v46 = vpack.c.bf16 %v3764_v21, %v3763_v37  ;;  %v3737_v5 = vadd.f32 1.0, %v5159_v6 }
 0xa27   :  { %v5163_v17 = vpop.eup %5162  ;;  %v3735_v13 = vadd.f32 1.0, %v5161_v61 }
 0xa28   :  { %v5165_v57 = vpop.eup %5164  ;;  %5166 = vrcp.f32 %v3737_v5  ;;  %v3738_v47 = vadd.f32 1.0, %v5163_v17  ;;  %4614 = vmatprep.mubr.msk.bf16.mxu0 %vm63_vm0, %v3779_v46 }
 0xa29   :  { %5168 = vrcp.f32 %v3735_v13  ;;  %v3736_v63 = vadd.f32 1.0, %v5165_v57  ;;  %4615 = vmatmul.mubr.msk.bf16.vlgmr.msra.gmra.mrb[112].mxu0 %vm63_vm0, %v3780_v27 }
 0xa2a   :  { %5170 = vrcp.f32 %v3738_v47 }
 0xa2b   :  { %5172 = vrcp.f32 %v3736_v63 }
 0xa30   :  { %v4600_v9 = vpop.f32.mrb[104].mxu0 }
 0xa31   :  { %v7230_v20 = vadd.f32 %v4600_v9, %v7211_v25  ;;  %v3652_v0 = vpop.f32.mrb[105].mxu0 }
 0xa32   :  { %v5167_v31 = vpop.eup %5166  ;;  %v7233_v38 = vadd.f32 %v7211_v25, %v3652_v0  ;;  %v4601_v22 = vpop.f32.mrb[106].mxu0 }
 0xa33   :  { %v5169_v54 = vpop.eup %5168  ;;  %v3693_v19 = vsub.f32 0.0, %v7230_v20  ;;  %v7237_v30 = vadd.f32 %v4601_v22, %v7211_v25  ;;  %v3655_v15 = vpop.f32.mrb[107].mxu0  ;;  %v3769_v26 = vmul.f32 %v5167_v31, %v7218_v43 }
 0xa34   :  { %v5171_v1 = vpop.eup %5170  ;;  %v3691_v29 = vsub.f32 0.0, %v7233_v38  ;;  %v7241_v35 = vadd.f32 %v7211_v25, %v3655_v15  ;;  %v3767_v39 = vmul.f32 %v5169_v54, %v7221_v10 }
 0xa35   :  { %v5173_v24 = vpop.eup %5172  ;;  %v3770_v40 = vmul.f32 %v5171_v1, %v3648_v60  ;;  %v3719_v16 = vmul.f32 1.442695, %v3693_v19  ;;  %v3694_v14 = vsub.f32 0.0, %v7237_v30 }
 0xa36   :  { %v3768_v34 = vmul.f32 %v5173_v24, %v3640_v2  ;;  %v3715_v7 = vmul.f32 1.442695, %v3691_v29  ;;  %v3692_v32 = vsub.f32 0.0, %v7241_v35 }
 0xa37   :  { %v3782_v11 = vpack.c.bf16 %v3770_v40, %v3769_v26  ;;  %5174 = vpow2.f32 %v3719_v16  ;;  %v3721_v50 = vmul.f32 1.442695, %v3694_v14 }
 0xa38   :  { %v3781_v42 = vpack.c.bf16 %v3768_v34, %v3767_v39  ;;  %5176 = vpow2.f32 %v3715_v7  ;;  %v3717_v28 = vmul.f32 1.442695, %v3692_v32  ;;  %v4604_v45 = vpop.f32.mrb[108].mxu0 }
 0xa39   :  { %5178 = vpow2.f32 %v3721_v50  ;;  %v3677_v43 = vadd.f32 %v4604_v45, %v7211_v25  ;;  %v3668_v60 = vpop.f32.mrb[109].mxu0 }
 0xa3a   :  { %5180 = vpow2.f32 %v3717_v28  ;;  %v3669_v58 = vadd.f32 %v7211_v25, %v3668_v60  ;;  %v4605_v49 = vpop.f32.mrb[110].mxu0  ;;  %4618 = vmatprep.mubr.msk.bf16.mxu1 %vm63_vm0, %v3781_v42 }
 0xa3b   :  { %v3697_v10 = vsub.f32 0.0, %v3677_v43  ;;  %v3680_v2 = vadd.f32 %v4605_v49, %v7211_v25  ;;  %v3671_v18 = vpop.f32.mrb[111].mxu0  ;;  %4619 = vmatmul.mubr.msk.bf16.vlgmr.msra.gmra.mrb[80].mxu1 %vm63_vm0, %v3782_v11 }
 0xa3c   :  { %v3695_v12 = vsub.f32 0.0, %v3669_v58  ;;  %v3672_v37 = vadd.f32 %v7211_v25, %v3671_v18 }
 0xa3d   :  { %v3727_v21 = vmul.f32 1.442695, %v3697_v10  ;;  %v3698_v6 = vsub.f32 0.0, %v3680_v2 }
 0xa3e   :  { %v3723_v27 = vmul.f32 1.442695, %v3695_v12  ;;  %v3696_v61 = vsub.f32 0.0, %v3672_v37 }
 0xa3f   :  { %5182 = vpow2.f32 %v3727_v21  ;;  %v3729_v46 = vmul.f32 1.442695, %v3698_v6 }
 0xa40   :  { %5184 = vpow2.f32 %v3723_v27  ;;  %v3725_v5 = vmul.f32 1.442695, %v3696_v61 }
 0xa41   :  { %v5175_v17 = vpop.eup %5174  ;;  %5186 = vpow2.f32 %v3729_v46 }
 0xa42   :  { %v5177_v13 = vpop.eup %5176  ;;  %v3741_v57 = vadd.f32 1.0, %v5175_v17  ;;  %5188 = vpow2.f32 %v3725_v5 }
 0xa43   :  { %v5179_v47 = vpop.eup %5178  ;;  %v3739_v63 = vadd.f32 1.0, %v5177_v13 }
 0xa44   :  { %v5181_v9 = vpop.eup %5180  ;;  %5190 = vrcp.f32 %v3741_v57  ;;  %v3742_v0 = vadd.f32 1.0, %v5179_v47 }
 0xa45   :  { %5192 = vrcp.f32 %v3739_v63  ;;  %v3740_v25 = vadd.f32 1.0, %v5181_v9 }
 0xa46   :  { %5194 = vrcp.f32 %v3742_v0 }
 0xa47   :  { %5196 = vrcp.f32 %v3740_v25 }
 0xa49   :  { %v5183_v31 = vpop.eup %5182 }
 0xa4a   :  { %v5185_v22 = vpop.eup %5184  ;;  %v3745_v54 = vadd.f32 1.0, %v5183_v31 }
 0xa4b   :  { %v5187_v19 = vpop.eup %5186  ;;  %v3743_v15 = vadd.f32 1.0, %v5185_v22 }
 0xa4c   :  { %v5189_v1 = vpop.eup %5188  ;;  %5198 = vrcp.f32 %v3745_v54  ;;  %v3746_v29 = vadd.f32 1.0, %v5187_v19 }
 0xa4d   :  { %5200 = vrcp.f32 %v3743_v15  ;;  %v3744_v24 = vadd.f32 1.0, %v5189_v1 }
 0xa4e   :  { %v5191_v26 = vpop.eup %5190  ;;  %5202 = vrcp.f32 %v3746_v29 }
 0xa4f   :  { %v5193_v40 = vpop.eup %5192  ;;  %5204 = vrcp.f32 %v3744_v24  ;;  %v3773_v39 = vmul.f32 %v5191_v26, %v7230_v20 }
 0xa50   :  { %v5195_v16 = vpop.eup %5194  ;;  %v3771_v7 = vmul.f32 %v5193_v40, %v7233_v38  ;;  %v4125_v38 = vld [vmem:[%s7335_s12] ss:$0 sm:$0xff] }
 0xa51   :  { %v5197_v14 = vpop.eup %5196  ;;  %v3774_v34 = vmul.f32 %v5195_v16, %v7237_v30 }
 0xa52   :  { %v3772_v32 = vmul.f32 %v5197_v14, %v7241_v35 }
 0xa53   :  { %v3784_v11 = vpack.c.bf16 %v3774_v34, %v3773_v39 }
 0xa54   :  { %v3783_v50 = vpack.c.bf16 %v3772_v32, %v3771_v7 }
 0xa56   :  { %v5199_v42 = vpop.eup %5198  ;;  %4622 = vmatprep.mubr.msk.bf16.mxu1 %vm63_vm0, %v3783_v50 }
 0xa57   :  { %v5201_v28 = vpop.eup %5200  ;;  %4623 = vmatmul.mubr.msk.bf16.gmra.mrb[84].mxu1 %vm63_vm0, %v3784_v11  ;;  %v3777_v49 = vmul.f32 %v5199_v42, %v3677_v43 }
 0xa58   :  { %v5203_v45 = vpop.eup %5202  ;;  %v3775_v18 = vmul.f32 %v5201_v28, %v3669_v58 }
 0xa59   :  { %v5205_v60 = vpop.eup %5204  ;;  %v3778_v10 = vmul.f32 %v5203_v45, %v3680_v2 }
 0xa5a   :  { %v3776_v20 = vmul.f32 %v5205_v60, %v3672_v37 }
 0xa5b   :  { %v3786_v12 = vpack.c.bf16 %v3778_v10, %v3777_v49 }
 0xa5c   :  { %v3785_v30 = vpack.c.bf16 %v3776_v20, %v3775_v18 }
 0xa5e   :  { %4626 = vmatprep.mubr.msk.bf16.mxu1 %vm63_vm0, %v3785_v30 }
 0xa5f   :  { %4627 = vmatmul.mubr.msk.bf16.gmra.mrb[88].mxu1 %vm63_vm0, %v3786_v12 }
 0xafc   :  { %v4616_v35 = vpop.f32.mrb[112].mxu0 }
 0xafd   :  { %v3893_v21 = vadd.f32 %v4616_v35, %v4125_v38  ;;  %v3884_v6 = vpop.f32.mrb[113].mxu0 }
 0xafe   :  { %v3885_v27 = vadd.f32 %v4125_v38, %v3884_v6  ;;  %v4617_v61 = vpop.f32.mrb[114].mxu0 }
 0xaff   :  { %v3896_v46 = vadd.f32 %v4617_v61, %v4125_v38  ;;  %v3887_v43 = vpop.f32.mrb[115].mxu0 }
 0xb00   :  { %v3888_v2 = vadd.f32 %v4125_v38, %v3887_v43  ;;  %v3947_v50 = vadd.f32 %v3885_v27, %v6899_v48 }
 0xb01   :  { %v3950_v45 = vadd.f32 %v3896_v46, %v6920_v36 }
 0xb02   :  { %v3948_v48 = vadd.f32 %v3888_v2, %v6911_v55 }
 0xb0e   :  { %v4620_v58 = vpop.f32.mrb[80].mxu1 }
 0xb0f   :  { %v3909_v37 = vadd.f32 %v4620_v58, %v4125_v38  ;;  %v3900_v5 = vpop.f32.mrb[81].mxu1 }
 0xb10   :  { %v3901_v17 = vadd.f32 %v4125_v38, %v3900_v5  ;;  %v4621_v13 = vpop.f32.mrb[82].mxu1 }
 0xb11   :  { %v7264_v57 = vadd.f32 %v4621_v13, %v4125_v38  ;;  %v3903_v47 = vpop.f32.mrb[83].mxu1  ;;  %v3953_v55 = vadd.f32 %v3909_v37, %v6938_v44 }
 0xb12   :  { %v3904_v63 = vadd.f32 %v4125_v38, %v3903_v47  ;;  %v3951_v60 = vadd.f32 %v3901_v17, %v6931_v56 }
 0xb13   :  { %v3954_v35 = vadd.f32 %v7264_v57, %v6950_v59 }
 0xb14   :  { %v3952_v20 = vadd.f32 %v3904_v63, %v6943_v33 }
 0xb2a   :  { %v4624_v9 = vpop.f32.mrb[84].mxu1 }
 0xb2b   :  { %v3925_v0 = vadd.f32 %v4624_v9, %v4125_v38  ;;  %v3916_v25 = vpop.f32.mrb[85].mxu1 }
 0xb2c   :  { %v3917_v31 = vadd.f32 %v4125_v38, %v3916_v25  ;;  %v4625_v22 = vpop.f32.mrb[86].mxu1 }
 0xb2d   :  { %v3957_v54 = vadd.f32 %v3925_v0, %v6970_v8  ;;  %v3928_v19 = vadd.f32 %v4625_v22, %v4125_v38  ;;  %v3919_v15 = vpop.f32.mrb[87].mxu1 }
 0xb2e   :  { %v3955_v1 = vadd.f32 %v3917_v31, %v6963_v3  ;;  %v3920_v24 = vadd.f32 %v4125_v38, %v3919_v15 }
 0xb2f   :  { %3975 = vrot.lane.b32.xlu1 %v3957_v54, %s5228_s25  ;;  %v3958_v29 = vadd.f32 %v3928_v19, %v6982_v52 }
 0xb30   :  { %3971 = vrot.lane.b32.xlu0 %v3955_v1, %s5228_s25  ;;  %v3956_v39 = vadd.f32 %v3920_v24, %v6975_v23 }
 0xb32   :  { %v4628_v26 = vpop.f32.mrb[88].mxu1 }
 0xb33   :  { %3977 = vrot.lane.b32.xlu1 %v3958_v29, %s5228_s25  ;;  %v3932_v40 = vpop.f32.mrb[89].mxu1  ;;  %v3941_v34 = vadd.f32 %v4628_v26, %v4125_v38 }
 0xb34   :  { %v3933_v16 = vadd.f32 %v4125_v38, %v3932_v40  ;;  %v4629_v14 = vpop.f32.mrb[90].mxu1 }
 0xb35   :  { %v3935_v8 = vpop.f32.mrb[91].mxu1  ;;  %v3944_v52 = vadd.f32 %v4629_v14, %v4125_v38  ;;  %v3961_v11 = vadd.f32 %v3941_v34, %v7002_v4 }
 0xb36   :  { %v3959_v7 = vadd.f32 %v3933_v16, %v6993_v41  ;;  %v3936_v3 = vadd.f32 %v4125_v38, %v3935_v8  ;;  %v3949_v41 = vadd.f32 %v3893_v21, %v6905_v62 }
 0xb37   :  { %3973 = vrot.lane.b32.xlu1 %v3956_v39, %s5228_s25  ;;  %v3962_v23 = vadd.f32 %v3944_v52, %v7014_v53 }
 0xb38   :  { %v3960_v32 = vadd.f32 %v3936_v3, %v7007_v51  ;;  %3979 = vrot.lane.b32.xlu0 %v3959_v7, %s5228_s25 }
 0xb3b   :  { %3981 = vrot.lane.b32.xlu1 %v3960_v32, %s5228_s25 }
 0xb3c   :  { %3983 = vrot.lane.b32.xlu0 %v3961_v11, %s5228_s25 }
 0xb3f   :  { %3985 = vrot.lane.b32.xlu1 %v3962_v23, %s5228_s25 }
 0xba1   :  { %v3976_v42 = vpop.permute.xlu1 %3975 }
 0xba2   :  { %v3997_v51 = vsel %vm63_vm0, %v3949_v41, %v3976_v42  ;;  %v3972_v28 = vpop.permute.xlu0 %3971 }
 0xba3   :  { %4005 = vst [vmem:[%s7336_s13 + $0x10] sm:$0xff] %v3997_v51  ;;  %v3995_v4 = vsel %vm63_vm0, %v3947_v50, %v3972_v28 }
 0xba4   :  { %4003 = vst [vmem:[%s7336_s13] sm:$0xff] %v3995_v4 }
 0xba5   :  { %v3978_v53 = vpop.permute.xlu1 %3977 }
 0xba6   :  { %v3998_v62 = vsel %vm63_vm0, %v3950_v45, %v3978_v53 }
 0xba7   :  { %4006 = vst [vmem:[%s7336_s13 + $0x18] sm:$0xff] %v3998_v62 }
 0xba9   :  { %v3974_v49 = vpop.permute.xlu1 %3973 }
 0xbaa   :  { %v3996_v10 = vsel %vm63_vm0, %v3948_v48, %v3974_v49  ;;  %v3980_v18 = vpop.permute.xlu0 %3979 }
 0xbab   :  { %4004 = vst [vmem:[%s7336_s13 + $0x8] sm:$0xff] %v3996_v10  ;;  %v3999_v36 = vsel %vm63_vm0, %v3951_v60, %v3980_v18 }
 0xbac   :  { %4007 = vst [vmem:[%s7336_s13 + $0x20] sm:$0xff] %v3999_v36 }
 0xbad   :  { %v3982_v12 = vpop.permute.xlu1 %3981 }
 0xbae   :  { %v4000_v56 = vsel %vm63_vm0, %v3952_v20, %v3982_v12  ;;  %v3984_v30 = vpop.permute.xlu0 %3983 }
 0xbaf   :  { %4008 = vst [vmem:[%s7336_s13 + $0x28] sm:$0xff] %v4000_v56  ;;  %v4001_v38 = vsel %vm63_vm0, %v3953_v55, %v3984_v30 }
 0xbb0   :  { %4009 = vst [vmem:[%s7336_s13 + $0x30] sm:$0xff] %v4001_v38 }
 0xbb1   :  { %v3986_v33 = vpop.permute.xlu1 %3985 }
 0xbb2   :  { %v4002_v44 = vsel %vm63_vm0, %v3954_v35, %v3986_v33 }
 0xbb3   :  { %4010 = vst [vmem:[%s7336_s13 + $0x38] sm:$0xff] %v4002_v44 }

</bundles_post_ra>
